<compile_context>
chip_gen: v7x
topology: tpu7x:2x2x1
jax: 0.10.0
libtpu: 0.0.40
codegen_flags: <defaults>
</compile_context>

<pallas_src>
import jax
import jax.numpy as jnp
from jax.experimental import pallas as pl
from jax.experimental.pallas import tpu as pltpu

INPUT_SIZE = 32 * 32 * 3      # 3072
HIDDEN_SIZE = 50
OUTPUT_SIZE = 10
OUTPUT_PAD = 128              # lane-dense padded output width (store only)
BN_EPS = 1e-5


def batch_net_kernel(x_ref, w1_ref, w2_ref, vec_ref, out_ref):
    """Whole forward pass in one grid step.

    x_ref:   (N, 3072) f32   — cast to bf16 in-kernel (no wrapper copy)
    w1_ref:  (3072, 50) bf16 — unpadded
    w2_ref:  (50, 128)  bf16 — output dim zero-padded to 128
    vec_ref: (8, 128)   f32  — row 0 = gamma, row 1 = beta, row 2 = b2 (padded)
    out_ref: (N, 128)   f32  — lane-dense store; real outputs in cols [:10]

    fc1 bias is intentionally omitted: with training-mode batch statistics it
    is cancelled exactly by the batch-mean subtraction below.
    """
    # fc1 on the MXU: bf16 inputs (cast on the VPU, which has slack), f32 acc.
    x = x_ref[...].astype(jnp.bfloat16)
    h = jnp.dot(x, w1_ref[...], preferred_element_type=jnp.float32)   # (N, 50)

    # Unpack the small packed vectors.
    vec = vec_ref[...]
    gamma = vec[0:1, :HIDDEN_SIZE]          # (1, 50)
    beta = vec[1:2, :HIDDEN_SIZE]           # (1, 50)
    b2 = vec[2:3, :]                        # (1, 128)

    # BatchNorm1d (training mode), one-pass stats: sum and sum-of-squares,
    # biased variance; affine folded into a single scale/shift FMA.
    inv_n = 1.0 / h.shape[0]
    s1 = jnp.sum(h, axis=0, keepdims=True)                 # (1, 50)
    s2 = jnp.sum(h * h, axis=0, keepdims=True)             # (1, 50)
    mean = s1 * inv_n
    var = s2 * inv_n - mean * mean
    scale = gamma * jax.lax.rsqrt(var + BN_EPS)
    shift = beta - mean * scale
    h = jnp.maximum(h * scale + shift, 0.0)                # BN + ReLU, f32

    # fc2: bf16 inputs, f32 accumulation; lane-dense (N, 128) store.
    y = jnp.dot(h.astype(jnp.bfloat16), w2_ref[...],
                preferred_element_type=jnp.float32)
    out_ref[...] = (y + b2).astype(out_ref.dtype)
    # TODO(synk): BatchNorm1d running_mean/running_var momentum updates (a
    # training-time side effect) are not materialized; they do not affect the
    # forward output.


def prepare_params(w1, gamma, beta, w2, b2):
    """One-time (init-time) preprocessing — NOT part of the per-call path.

    * w1 -> bf16, unpadded (3072, 50)
    * w2 -> bf16, output dim zero-padded to 128: (50, 128)
    * gamma / beta / b2 packed into one (8, 128) f32 array (one DMA).
    fc1 bias is dropped (cancels against BN's batch-mean subtraction).
    """
    w1_bf16 = w1.astype(jnp.bfloat16)
    w2_pad = jnp.pad(w2, ((0, 0), (0, OUTPUT_PAD - OUTPUT_SIZE))
                     ).astype(jnp.bfloat16)
    vec = jnp.zeros((8, 128), jnp.float32)
    vec = vec.at[0, :HIDDEN_SIZE].set(gamma[0])
    vec = vec.at[1, :HIDDEN_SIZE].set(beta[0])
    vec = vec.at[2, :OUTPUT_SIZE].set(b2[0])
    return w1_bf16, w2_pad, vec


@jax.jit
def batch_net_forward(x_nchw, w1_bf16, w2_pad, vec):
    """x_nchw: (N, 3, 32, 32) f32.  Params already preprocessed (prepare_params)."""
    n = x_nchw.shape[0]
    x = x_nchw.reshape(n, -1)               # metadata-only view, stays f32

    out = pl.pallas_call(
        batch_net_kernel,
        out_shape=jax.ShapeDtypeStruct((n, OUTPUT_PAD), jnp.float32),
        grid_spec=pltpu.PrefetchScalarGridSpec(
            num_scalar_prefetch=0,
            grid=(1,),
            in_specs=[
                pl.BlockSpec((n, INPUT_SIZE), lambda i: (0, 0)),            # x (f32)
                pl.BlockSpec((INPUT_SIZE, HIDDEN_SIZE), lambda i: (0, 0)),  # w1 (bf16, unpadded)
                pl.BlockSpec((HIDDEN_SIZE, OUTPUT_PAD), lambda i: (0, 0)),  # w2 (bf16, out-padded)
                pl.BlockSpec((8, 128), lambda i: (0, 0)),                   # packed gamma/beta/b2
            ],
            out_specs=pl.BlockSpec((n, OUTPUT_PAD), lambda i: (0, 0)),
        ),
        compiler_params=pltpu.CompilerParams(
            dimension_semantics=("arbitrary",)),
    )(x, w1_bf16, w2_pad, vec)
    return out[:, :OUTPUT_SIZE]


def init_params(key):
    """Synthetic init matching the PyTorch module.

    fc1/fc2 weights ~ kaiming_normal_ (std = sqrt(2 / fan_in));
    biases ~ U(-1/sqrt(fan_in), 1/sqrt(fan_in)); BN gamma = 1, beta = 0.
    Weights are stored transposed: (in_features, out_features).
    """
    k1, k2, k3, k4 = jax.random.split(key, 4)
    std1 = (2.0 / INPUT_SIZE) ** 0.5
    std2 = (2.0 / HIDDEN_SIZE) ** 0.5
    w1 = jax.random.normal(k1, (INPUT_SIZE, HIDDEN_SIZE), jnp.float32) * std1
    w2 = jax.random.normal(k2, (HIDDEN_SIZE, OUTPUT_SIZE), jnp.float32) * std2
    bnd1 = 1.0 / (INPUT_SIZE ** 0.5)
    bnd2 = 1.0 / (HIDDEN_SIZE ** 0.5)
    b1 = jax.random.uniform(k3, (1, HIDDEN_SIZE), jnp.float32, -bnd1, bnd1)
    b2 = jax.random.uniform(k4, (1, OUTPUT_SIZE), jnp.float32, -bnd2, bnd2)
    gamma = jnp.ones((1, HIDDEN_SIZE), jnp.float32)
    beta = jnp.zeros((1, HIDDEN_SIZE), jnp.float32)
    return w1, b1, gamma, beta, w2, b2


def reference_forward(x2d, w1, b1, gamma, beta, w2, b2):
    """PyTorch-semantics reference on already-flattened (N, 3072) input."""
    h = x2d @ w1 + b1
    mean = jnp.mean(h, axis=0, keepdims=True)
    var = jnp.mean((h - mean) ** 2, axis=0, keepdims=True)
    h = (h - mean) * jax.lax.rsqrt(var + BN_EPS) * gamma + beta
    h = jnp.maximum(h, 0.0)
    return h @ w2 + b2


def reference_forward_matched(x2d, w1, b1, gamma, beta, w2, b2):
    """Reference with the same bf16 roundings as the kernel (x, w1, h, w2)."""
    xb = x2d.astype(jnp.bfloat16).astype(jnp.float32)
    w1b = w1.astype(jnp.bfloat16).astype(jnp.float32)
    h = xb @ w1b + b1
    mean = jnp.mean(h, axis=0, keepdims=True)
    var = jnp.mean((h - mean) ** 2, axis=0, keepdims=True)
    h = (h - mean) * jax.lax.rsqrt(var + BN_EPS) * gamma + beta
    h = jnp.maximum(h, 0.0)
    hb = h.astype(jnp.bfloat16).astype(jnp.float32)
    w2b = w2.astype(jnp.bfloat16).astype(jnp.float32)
    return hb @ w2b + b2


if __name__ == "__main__":
    key = jax.random.PRNGKey(0)
    pkey, xkey = jax.random.split(key)
    w1, b1, gamma, beta, w2, b2 = init_params(pkey)

    # One-time parameter preprocessing (outside the jitted per-call path).
    w1_bf16, w2_pad, vec = prepare_params(w1, gamma, beta, w2, b2)

    # Batch of CIFAR-shaped NCHW inputs.  N=256 fills the 256-wide MXU on
    # v6e/v7x and amortizes the weight load; BN needs the full batch in one
    # block anyway (whole problem is ~4 MiB resident in VMEM).
    N = 256
    x = jax.random.normal(xkey, (N, 3, 32, 32), jnp.float32)

    out = jax.block_until_ready(batch_net_forward(x, w1_bf16, w2_pad, vec))
    assert out.shape == (N, OUTPUT_SIZE)

    x2d = x.reshape(N, -1)
    # Full-f32 reference (includes fc1 bias, which the kernel provably drops).
    ref_f32 = reference_forward(x2d, w1, b1, gamma, beta, w2, b2)
    # Matched-precision reference: same bf16 roundings as the kernel.
    ref_bf16 = reference_forward_matched(x2d, w1, b1, gamma, beta, w2, b2)

    err_tight = float(jnp.max(jnp.abs(out - ref_bf16)))
    err_f32 = float(jnp.max(jnp.abs(out - ref_f32)))
    assert jnp.allclose(out, ref_bf16, atol=5e-3, rtol=5e-3), (
        f"matched-precision max abs err = {err_tight}")
    assert jnp.allclose(out, ref_f32, atol=1e-1, rtol=1e-1), (
        f"f32-reference max abs err = {err_f32}")

    print("KERNEL_OK")
</pallas_src>

<mosaic_0001>
module attributes {stable_mosaic.version = 11 : i64} {
  func.func @batch_net_kernel(%arg0: i32, %arg1: memref<256x3072xf32, #tpu.memory_space<vmem>>, %arg2: memref<3072x50xbf16, #tpu.memory_space<vmem>>, %arg3: memref<50x128xbf16, #tpu.memory_space<vmem>>, %arg4: memref<8x128xf32, #tpu.memory_space<vmem>>, %arg5: memref<256x128xf32, #tpu.memory_space<vmem>>) attributes {dimension_semantics = [#tpu.dimension_semantics<arbitrary>], iteration_bounds = array<i64: 1>, scalar_prefetch = 0 : i64, scratch_operands = 0 : i64, tpu.core_type = #tpu.core_type<tc>, window_params = [{pipeline_mode = #tpu.pipeline_mode<synchronous>, transform_indices = @transform_0, window_bounds = array<i64: 256, 3072>}, {pipeline_mode = #tpu.pipeline_mode<synchronous>, transform_indices = @transform_1, window_bounds = array<i64: 3072, 50>}, {pipeline_mode = #tpu.pipeline_mode<synchronous>, transform_indices = @transform_2, window_bounds = array<i64: 50, 128>}, {pipeline_mode = #tpu.pipeline_mode<synchronous>, transform_indices = @transform_3, window_bounds = array<i64: 8, 128>}, {pipeline_mode = #tpu.pipeline_mode<synchronous>, transform_indices = @transform_4, window_bounds = array<i64: 256, 128>}]} {
    %c0 = arith.constant 0 : index
    %c0_0 = arith.constant 0 : index
    %0 = vector.load %arg1[%c0, %c0_0] : memref<256x3072xf32, #tpu.memory_space<vmem>>, vector<256x3072xf32>
    %1 = arith.truncf %0 : vector<256x3072xf32> to vector<256x3072xbf16>
    %c0_1 = arith.constant 0 : index
    %c0_2 = arith.constant 0 : index
    %2 = vector.load %arg2[%c0_1, %c0_2] : memref<3072x50xbf16, #tpu.memory_space<vmem>>, vector<3072x50xbf16>
    %cst = arith.constant dense<0.000000e+00> : vector<256x50xf32>
    %3 = tpu.matmul %1, %2, %cst {dimension_numbers = #tpu.dot_dimension_numbers<[1], [0], [0], [1], [0, 0, 1, 1], [], []>} : vector<256x3072xbf16>, vector<3072x50xbf16>, vector<256x50xf32> -> vector<256x50xf32>
    %c0_3 = arith.constant 0 : index
    %c0_4 = arith.constant 0 : index
    %4 = vector.load %arg4[%c0_3, %c0_4] : memref<8x128xf32, #tpu.memory_space<vmem>>, vector<8x128xf32>
    %5 = vector.extract_strided_slice %4 {offsets = [0, 0], sizes = [1, 50], strides = [1, 1]} : vector<8x128xf32> to vector<1x50xf32>
    %6 = vector.extract_strided_slice %4 {offsets = [1, 0], sizes = [1, 50], strides = [1, 1]} : vector<8x128xf32> to vector<1x50xf32>
    %7 = vector.extract_strided_slice %4 {offsets = [2, 0], sizes = [1, 128], strides = [1, 1]} : vector<8x128xf32> to vector<1x128xf32>
    %cst_5 = arith.constant dense<0.000000e+00> : vector<50xf32>
    %8 = vector.multi_reduction <add>, %3, %cst_5 [0] : vector<256x50xf32> to vector<50xf32>
    %9 = vector.shape_cast %8 : vector<50xf32> to vector<1x50xf32>
    %10 = arith.mulf %3, %3 : vector<256x50xf32>
    %cst_6 = arith.constant dense<0.000000e+00> : vector<50xf32>
    %11 = vector.multi_reduction <add>, %10, %cst_6 [0] : vector<256x50xf32> to vector<50xf32>
    %12 = vector.shape_cast %11 : vector<50xf32> to vector<1x50xf32>
    %cst_7 = arith.constant 3.906250e-03 : f32
    %13 = vector.broadcast %cst_7 : f32 to vector<1x50xf32>
    %14 = arith.mulf %9, %13 : vector<1x50xf32>
    %cst_8 = arith.constant 3.906250e-03 : f32
    %15 = vector.broadcast %cst_8 : f32 to vector<1x50xf32>
    %16 = arith.mulf %12, %15 : vector<1x50xf32>
    %17 = arith.mulf %14, %14 : vector<1x50xf32>
    %18 = arith.subf %16, %17 : vector<1x50xf32>
    %cst_9 = arith.constant 9.99999974E-6 : f32
    %19 = vector.broadcast %cst_9 : f32 to vector<1x50xf32>
    %20 = arith.addf %18, %19 : vector<1x50xf32>
    %21 = math.rsqrt %20 : vector<1x50xf32>
    %22 = arith.mulf %5, %21 : vector<1x50xf32>
    %23 = arith.mulf %14, %22 : vector<1x50xf32>
    %24 = arith.subf %6, %23 : vector<1x50xf32>
    %25 = vector.broadcast %22 : vector<1x50xf32> to vector<256x50xf32>
    %26 = arith.mulf %3, %25 : vector<256x50xf32>
    %27 = vector.broadcast %24 : vector<1x50xf32> to vector<256x50xf32>
    %28 = arith.addf %26, %27 : vector<256x50xf32>
    %cst_10 = arith.constant 0.000000e+00 : f32
    %29 = vector.broadcast %cst_10 : f32 to vector<256x50xf32>
    %30 = arith.maximumf %28, %29 : vector<256x50xf32>
    %31 = arith.truncf %30 : vector<256x50xf32> to vector<256x50xbf16>
    %c0_11 = arith.constant 0 : index
    %c0_12 = arith.constant 0 : index
    %32 = vector.load %arg3[%c0_11, %c0_12] : memref<50x128xbf16, #tpu.memory_space<vmem>>, vector<50x128xbf16>
    %cst_13 = arith.constant dense<0.000000e+00> : vector<256x128xf32>
    %33 = tpu.matmul %31, %32, %cst_13 {dimension_numbers = #tpu.dot_dimension_numbers<[1], [0], [0], [1], [0, 0, 1, 1], [], []>} : vector<256x50xbf16>, vector<50x128xbf16>, vector<256x128xf32> -> vector<256x128xf32>
    %34 = vector.broadcast %7 : vector<1x128xf32> to vector<256x128xf32>
    %35 = arith.addf %33, %34 : vector<256x128xf32>
    %c0_14 = arith.constant 0 : index
    %c0_15 = arith.constant 0 : index
    %36 = vector.load %arg5[%c0_14, %c0_15] : memref<256x128xf32, #tpu.memory_space<vmem>>, vector<256x128xf32>
    tpu.vector_store %arg5[%c0_14, %c0_15], %35 {strides = array<i32>} : memref<256x128xf32, #tpu.memory_space<vmem>>, vector<256x128xf32>,
    return
  }
  func.func @transform_0(%arg0: i32) -> (i32, i32) {
    %c0_i32 = arith.constant 0 : i32
    %c0_i32_0 = arith.constant 0 : i32
    %c0_i32_1 = arith.constant 0 : i32
    return %c0_i32, %c0_i32_0 : i32, i32
  }
  func.func @transform_1(%arg0: i32) -> (i32, i32) {
    %c0_i32 = arith.constant 0 : i32
    %c0_i32_0 = arith.constant 0 : i32
    %c0_i32_1 = arith.constant 0 : i32
    return %c0_i32, %c0_i32_0 : i32, i32
  }
  func.func @transform_2(%arg0: i32) -> (i32, i32) {
    %c0_i32 = arith.constant 0 : i32
    %c0_i32_0 = arith.constant 0 : i32
    %c0_i32_1 = arith.constant 0 : i32
    return %c0_i32, %c0_i32_0 : i32, i32
  }
  func.func @transform_3(%arg0: i32) -> (i32, i32) {
    %c0_i32 = arith.constant 0 : i32
    %c0_i32_0 = arith.constant 0 : i32
    %c0_i32_1 = arith.constant 0 : i32
    return %c0_i32, %c0_i32_0 : i32, i32
  }
  func.func @transform_4(%arg0: i32) -> (i32, i32) {
    %c0_i32 = arith.constant 0 : i32
    %c0_i32_0 = arith.constant 0 : i32
    %c0_i32_1 = arith.constant 0 : i32
    return %c0_i32, %c0_i32_0 : i32, i32
  }
}

</mosaic_0001>

<bundles_post_ra>
// kernel: batch_net_forward.1
= control target key start
LH: loop header
LB: loop body
LE: loop exit
PB: predicated region body
PF: predicated region fallthrough
CT: control target
= control target key end

     0   :  { %vm4639_vm0 = vcmask 408576   ;;  %vm5022_vm1 = vcmask 1040384   ;;  %s11433_s1 = inlined_call_operand.vmem [shape: bf16[3072,50], index: 1, kind: input, shape index: {}]   ;;  %s11434_s0 = inlined_call_operand.vmem [shape: f32[256,3072], index: 0, kind: input, shape index: {}]   ;;  %s11435_s2 = inlined_call_operand.vmem [shape: bf16[50,128], index: 2, kind: input, shape index: {}]   ;;  %s11436_s3 = inlined_call_operand.vmem [shape: f32[8,128], index: 3, kind: input, shape index: {}]   ;;  %s11437_s4 = inlined_call_operand.vmem [shape: f32[256,128], index: 4, kind: output, shape index: {}]  }
   0x1   :  { %v6856_v0 = vld [vmem:[%s11433_s1 + $0x40] sm:$0xff]   ;;  %v6858_v2 = vld [vmem:[%s11433_s1 + $0x48] sm:$0xff]   ;;  %v6860_v4 = vld [vmem:[%s11433_s1 + $0x50] sm:$0xff]  }
   0x2   :  { %v6857_v1 = vld [vmem:[%s11433_s1] sm:$0xff]   ;;  %5435 = vmatprep.subr.bf16.mxu0 %v6856_v0  ;;  %6839 = vmatprep.subr.bf16.mxu1 %v6856_v0  ;;  %v6859_v3 = vld [vmem:[%s11433_s1 + $0x8] sm:$0xff]   ;;  %v6861_v5 = vld [vmem:[%s11433_s1 + $0x10] sm:$0xff]  }
   0x3   :  { %5436 = vmatpush3.bf16.msra.mxu0 %v6857_v1  ;;  %6847 = vmatpush3.bf16.msra.mxu1 %v6857_v1  ;;  %v6862_v6 = vld [vmem:[%s11433_s1 + $0x58] sm:$0xff]   ;;  %v6864_v8 = vld [vmem:[%s11433_s1 + $0x60] sm:$0xff]   ;;  %v6866_v10 = vld [vmem:[%s11433_s1 + $0x68] sm:$0xff]  }
   0x4   :  { %5437 = vmatprep.subr.bf16.mxu0 %v6858_v2  ;;  %6840 = vmatprep.subr.bf16.mxu1 %v6858_v2  ;;  %v6863_v7 = vld [vmem:[%s11433_s1 + $0x18] sm:$0xff]   ;;  %v6865_v9 = vld [vmem:[%s11433_s1 + $0x20] sm:$0xff]   ;;  %v19_v11 = vld [vmem:[%s11434_s0 + $0x8] sm:$0xff] }
   0x5   :  { %v43_v12 = vld [vmem:[%s11434_s0 + $0xc8] sm:$0xff]  ;;  %v6868_v18 = vld [vmem:[%s11433_s1 + $0x70] sm:$0xff]   ;;  %v6870_v20 = vld [vmem:[%s11433_s1 + $0x78] sm:$0xff]  }
   0x6   :  { %v595_v13 = vld [vmem:[%s11434_s0 + $0x1208] sm:$0xff]  ;;  %v787_v14 = vpack.c.bf16 %v43_v12, %v19_v11  ;;  %v6869_v19 = vld [vmem:[%s11433_s1 + $0x30] sm:$0xff]   ;;  %v6871_v21 = vld [vmem:[%s11433_s1 + $0x38] sm:$0xff]  }
   0x7   :  { %5438 = vmatpush3.bf16.msra.mxu0 %v6859_v3  ;;  %6848 = vmatpush3.bf16.msra.mxu1 %v6859_v3  ;;  %v619_v15 = vld [vmem:[%s11434_s0 + $0x12c8] sm:$0xff]  ;;  %v18_v22 = vld [vmem:[%s11434_s0] sm:$0xff]  ;;  %v6876_v42 = vld [vmem:[%s11433_s1 + $0xd0] sm:$0xff]  }
   0x8   :  { %5439 = vmatprep.subr.bf16.mxu0 %v6860_v4  ;;  %6841 = vmatprep.subr.bf16.mxu1 %v6860_v4  ;;  %v1075_v16 = vpack.c.bf16 %v619_v15, %v595_v13  ;;  %v6867_v17 = vld [vmem:[%s11433_s1 + $0x28] sm:$0xff]   ;;  %v42_v23 = vld [vmem:[%s11434_s0 + $0xc0] sm:$0xff]  ;;  %v6877_v49 = vld [vmem:[%s11433_s1 + $0x90] sm:$0xff]  }
   0x9   :  { %2738 = vmatprep.mubr.bf16.mxu0 %v787_v14  ;;  %v594_v24 = vld [vmem:[%s11434_s0 + $0x1200] sm:$0xff]  ;;  %v67_v27 = vld [vmem:[%s11434_s0 + $0x188] sm:$0xff]  ;;  %v786_v31 = vpack.c.bf16 %v42_v23, %v18_v22  ;;  %v6878_v51 = vld [vmem:[%s11433_s1 + $0xd8] sm:$0xff]  }
   0xa   :  { %2834 = vmatprep.mubr.bf16.mxu1 %v1075_v16  ;;  %v618_v25 = vld [vmem:[%s11434_s0 + $0x12c0] sm:$0xff]  ;;  %v91_v28 = vld [vmem:[%s11434_s0 + $0x248] sm:$0xff]  ;;  %v6879_v53 = vld [vmem:[%s11433_s1 + $0x98] sm:$0xff]  }
   0xb   :  { %5440 = vmatpush3.bf16.msra.mxu0 %v6861_v5  ;;  %6849 = vmatpush3.bf16.msra.mxu1 %v6861_v5  ;;  %v6872_v26 = vld [vmem:[%s11433_s1 + $0xc0] sm:$0xff]   ;;  %v643_v29 = vld [vmem:[%s11434_s0 + $0x1388] sm:$0xff]  ;;  %v1074_v32 = vpack.c.bf16 %v618_v25, %v594_v24  ;;  %v811_v34 = vpack.c.bf16 %v91_v28, %v67_v27  ;;  %v21_v13 = vld [vmem:[%s11434_s0 + $0x18] sm:$0xff] }
   0xc   :  { %5441 = vmatprep.subr.bf16.mxu0 %v6862_v6  ;;  %6842 = vmatprep.subr.bf16.mxu1 %v6862_v6  ;;  %v667_v30 = vld [vmem:[%s11434_s0 + $0x1448] sm:$0xff]  ;;  %v6873_v33 = vld [vmem:[%s11433_s1 + $0x80] sm:$0xff]   ;;  %v45_v14 = vld [vmem:[%s11434_s0 + $0xd8] sm:$0xff] }
   0xd   :  { %v6874_v35 = vld [vmem:[%s11433_s1 + $0xc8] sm:$0xff]   ;;  %v1099_v36 = vpack.c.bf16 %v667_v30, %v643_v29  ;;  %v66_v38 = vld [vmem:[%s11434_s0 + $0x180] sm:$0xff]  ;;  %v20_v24 = vld [vmem:[%s11434_s0 + $0x10] sm:$0xff] }
   0xe   :  { %v6875_v37 = vld [vmem:[%s11433_s1 + $0x88] sm:$0xff]   ;;  %v90_v39 = vld [vmem:[%s11434_s0 + $0x240] sm:$0xff]  ;;  %v44_v25 = vld [vmem:[%s11434_s0 + $0xd0] sm:$0xff] }
   0xf   :  { %5442 = vmatpush3.bf16.msra.mxu0 %v6863_v7  ;;  %6850 = vmatpush3.bf16.msra.mxu1 %v6863_v7  ;;  %v642_v40 = vld [vmem:[%s11434_s0 + $0x1380] sm:$0xff]  ;;  %v115_v43 = vld [vmem:[%s11434_s0 + $0x308] sm:$0xff]  ;;  %v810_v47 = vpack.c.bf16 %v90_v39, %v66_v38 }
  0x10   :  { %5443 = vmatprep.subr.bf16.mxu0 %v6864_v8  ;;  %6843 = vmatprep.subr.bf16.mxu1 %v6864_v8  ;;  %v666_v41 = vld [vmem:[%s11434_s0 + $0x1440] sm:$0xff]  ;;  %v139_v44 = vld [vmem:[%s11434_s0 + $0x3c8] sm:$0xff] }
  0x11   :  { %v691_v45 = vld [vmem:[%s11434_s0 + $0x1508] sm:$0xff]  ;;  %v1098_v48 = vpack.c.bf16 %v666_v41, %v642_v40  ;;  %v835_v50 = vpack.c.bf16 %v139_v44, %v115_v43  ;;  %v114_v54 = vld [vmem:[%s11434_s0 + $0x300] sm:$0xff]  ;;  %v68_v41 = vld [vmem:[%s11434_s0 + $0x190] sm:$0xff] }
  0x12   :  { %v715_v46 = vld [vmem:[%s11434_s0 + $0x15c8] sm:$0xff]  ;;  %v138_v55 = vld [vmem:[%s11434_s0 + $0x3c0] sm:$0xff]  ;;  %v92_v43 = vld [vmem:[%s11434_s0 + $0x250] sm:$0xff] }
  0x13   :  { %5444 = vmatpush3.bf16.msra.mxu0 %v6865_v9  ;;  %6851 = vmatpush3.bf16.msra.mxu1 %v6865_v9  ;;  %v1123_v52 = vpack.c.bf16 %v715_v46, %v691_v45  ;;  %v690_v56 = vld [vmem:[%s11434_s0 + $0x1500] sm:$0xff]  ;;  %v163_v59 = vld [vmem:[%s11434_s0 + $0x488] sm:$0xff]  ;;  %v834_v63 = vpack.c.bf16 %v138_v55, %v114_v54 }
  0x14   :  { %5445 = vmatprep.subr.bf16.mxu0 %v6866_v10  ;;  %6844 = vmatprep.subr.bf16.mxu1 %v6866_v10  ;;  %v714_v57 = vld [vmem:[%s11434_s0 + $0x15c0] sm:$0xff]  ;;  %v187_v60 = vld [vmem:[%s11434_s0 + $0x548] sm:$0xff]  ;;  %v6884_v10 = vld [vmem:[%s11433_s1 + $0xf0] sm:$0xff]  }
  0x15   :  { %v6880_v58 = vld [vmem:[%s11433_s1 + $0xe0] sm:$0xff]   ;;  %v739_v61 = vld [vmem:[%s11434_s0 + $0x1688] sm:$0xff]  ;;  %v1122_v0 = vpack.c.bf16 %v714_v57, %v690_v56  ;;  %v859_v2 = vpack.c.bf16 %v187_v60, %v163_v59  ;;  %v6895_v56 = vld [vmem:[%s11433_s1 + $0x190] sm:$0xff]  }
  0x16   :  { %v763_v62 = vld [vmem:[%s11434_s0 + $0x1748] sm:$0xff]  ;;  %v6881_v1 = vld [vmem:[%s11433_s1 + $0xa0] sm:$0xff]   ;;  %v6899_v57 = vld [vmem:[%s11433_s1 + $0x110] sm:$0xff]  }
  0x17   :  { %5446 = vmatpush3.bf16.msra.mxu0 %v6867_v17  ;;  %6852 = vmatpush3.bf16.msra.mxu1 %v6867_v17  ;;  %v6882_v3 = vld [vmem:[%s11433_s1 + $0xe8] sm:$0xff]   ;;  %v1147_v4 = vpack.c.bf16 %v763_v62, %v739_v61  ;;  %v162_v6 = vld [vmem:[%s11434_s0 + $0x480] sm:$0xff]  ;;  %v6885_v17 = vld [vmem:[%s11433_s1 + $0xb0] sm:$0xff]  }
  0x18   :  { %5447 = vmatprep.subr.bf16.mxu0 %v6868_v18  ;;  %6845 = vmatprep.subr.bf16.mxu1 %v6868_v18  ;;  %v6883_v5 = vld [vmem:[%s11433_s1 + $0xa8] sm:$0xff]   ;;  %v186_v7 = vld [vmem:[%s11434_s0 + $0x540] sm:$0xff]  ;;  %v116_v60 = vld [vmem:[%s11434_s0 + $0x310] sm:$0xff] }
  0x19   :  { %v738_v8 = vld [vmem:[%s11434_s0 + $0x1680] sm:$0xff]  ;;  %v211_v11 = vld [vmem:[%s11434_s0 + $0x608] sm:$0xff]  ;;  %v858_v15 = vpack.c.bf16 %v186_v7, %v162_v6  ;;  %v140_v61 = vld [vmem:[%s11434_s0 + $0x3d0] sm:$0xff] }
  0x1a   :  { %v762_v9 = vld [vmem:[%s11434_s0 + $0x1740] sm:$0xff]  ;;  %v235_v12 = vld [vmem:[%s11434_s0 + $0x6c8] sm:$0xff]  ;;  %v6900_v62 = vld [vmem:[%s11433_s1 + $0x158] sm:$0xff]   ;;  %v836_v7 = vpack.c.bf16 %v140_v61, %v116_v60 }
  0x1b   :  { %5448 = vmatpush3.bf16.msra.mxu0 %v6869_v19  ;;  %6853 = vmatpush3.bf16.msra.mxu1 %v6869_v19  ;;  %v1146_v16 = vpack.c.bf16 %v762_v9, %v738_v8  ;;  %v883_v18 = vpack.c.bf16 %v235_v12, %v211_v11  ;;  %v6886_v19 = vld [vmem:[%s11433_s1 + $0xf8] sm:$0xff]   ;;  %v210_v22 = vld [vmem:[%s11434_s0 + $0x600] sm:$0xff]  ;;  %v259_v28 = vld [vmem:[%s11434_s0 + $0x788] sm:$0xff] }
  0x1c   :  { %5449 = vmatprep.subr.bf16.mxu0 %v6870_v20  ;;  %6846 = vmatprep.subr.bf16.mxu1 %v6870_v20  ;;  %v789_v20 = vpack.c.bf16 %v45_v14, %v21_v13  ;;  %v234_v23 = vld [vmem:[%s11434_s0 + $0x6c0] sm:$0xff]  ;;  %v283_v29 = vld [vmem:[%s11434_s0 + $0x848] sm:$0xff]  ;;  %v308_v60 = vld [vmem:[%s11434_s0 + $0x910] sm:$0xff] }
  0x1d   :  { %v6888_v27 = vld [vmem:[%s11433_s1 + $0x1c0] sm:$0xff]   ;;  %v6890_v38 = vld [vmem:[%s11433_s1 + $0x1c8] sm:$0xff]   ;;  %v6916_v61 = vld [vmem:[%s11433_s1 + $0x1f0] sm:$0xff]  }
  0x1e   :  { %v6893_v30 = vld [vmem:[%s11433_s1 + $0x100] sm:$0xff]   ;;  %v307_v44 = vld [vmem:[%s11434_s0 + $0x908] sm:$0xff] }
  0x1f   :  { %5450 = vmatpush3.bf16.msra.mxu0 %v6871_v21  ;;  %6854 = vmatpush3.bf16.msra.mxu1 %v6871_v21  ;;  %v6887_v21 = vld [vmem:[%s11433_s1 + $0xb8] sm:$0xff]   ;;  %v258_v39 = vld [vmem:[%s11434_s0 + $0x780] sm:$0xff]  ;;  %v6897_v45 = vld [vmem:[%s11433_s1 + $0x108] sm:$0xff]  }
  0x20   :  { %5547 = vmatprep.subr.bf16.mxu1 %v6872_v26  ;;  %v6892_v26 = vld [vmem:[%s11433_s1 + $0x140] sm:$0xff]   ;;  %v331_v46 = vld [vmem:[%s11434_s0 + $0x9c8] sm:$0xff] }
  0x21   :  { %5659 = vmatprep.subr.bf16.mxu0 %v6892_v26  ;;  %v282_v40 = vld [vmem:[%s11434_s0 + $0x840] sm:$0xff]  ;;  %v931_v54 = vpack.c.bf16 %v331_v46, %v307_v44  ;;  %v6906_v14 = vld [vmem:[%s11433_s1 + $0x168] sm:$0xff]   ;;  %v260_v46 = vld [vmem:[%s11434_s0 + $0x790] sm:$0xff] }
  0x22   :  { %2739 = vmatmul.mubr.bf16.vlgmr.msra.gmra.mrb[0].mxu0 %v786_v31  ;;  %2835 = vmatmul.mubr.bf16.vlgmr.msra.gmra.mrb[0].mxu1 %v1074_v32  ;;  %v69_v31 = vld [vmem:[%s11434_s0 + $0x198] sm:$0xff]  ;;  %v330_v59 = vld [vmem:[%s11434_s0 + $0x9c0] sm:$0xff] }
  0x23   :  { %5548 = vmatpush3.bf16.msra.mxu1 %v6873_v33  ;;  %2746 = vmatprep.mubr.bf16.mxu0 %v811_v34  ;;  %v93_v32 = vld [vmem:[%s11434_s0 + $0x258] sm:$0xff]  ;;  %v882_v33 = vpack.c.bf16 %v234_v23, %v210_v22  ;;  %v788_v34 = vpack.c.bf16 %v44_v25, %v20_v24  ;;  %v6904_v11 = vld [vmem:[%s11433_s1 + $0x120] sm:$0xff]   ;;  %v6908_v22 = vld [vmem:[%s11433_s1 + $0x170] sm:$0xff]  }
  0x24   :  { %5549 = vmatprep.subr.bf16.mxu1 %v6874_v35  ;;  %2842 = vmatprep.mubr.bf16.mxu1 %v1099_v36  ;;  %v6889_v35 = vld [vmem:[%s11433_s1 + $0x180] sm:$0xff]   ;;  %v907_v36 = vpack.c.bf16 %v283_v29, %v259_v28 }
  0x25   :  { %5660 = vmatpush3.bf16.msra.mxu0 %v6893_v30  ;;  %v354_v12 = vld [vmem:[%s11434_s0 + $0xa80] sm:$0xff]  ;;  %v212_v30 = vld [vmem:[%s11434_s0 + $0x610] sm:$0xff] }
  0x26   :  { %v378_v13 = vld [vmem:[%s11434_s0 + $0xb40] sm:$0xff] }
  0x27   :  { %5550 = vmatpush3.bf16.msra.mxu1 %v6875_v37  ;;  %v813_v37 = vpack.c.bf16 %v93_v32, %v69_v31  ;;  %v954_v23 = vpack.c.bf16 %v378_v13, %v354_v12  ;;  %v402_v28 = vld [vmem:[%s11434_s0 + $0xc00] sm:$0xff]  ;;  %v236_v31 = vld [vmem:[%s11434_s0 + $0x6d0] sm:$0xff]  ;;  %v6910_v32 = vld [vmem:[%s11433_s1 + $0x178] sm:$0xff]  }
  0x28   :  { %5551 = vmatprep.subr.bf16.mxu1 %v6876_v42  ;;  %v6896_v42 = vld [vmem:[%s11433_s1 + $0x148] sm:$0xff]   ;;  %v426_v29 = vld [vmem:[%s11434_s0 + $0xcc0] sm:$0xff]  ;;  %v356_v12 = vld [vmem:[%s11434_s0 + $0xa90] sm:$0xff] }
  0x29   :  { %5661 = vmatprep.subr.bf16.mxu0 %v6896_v42  ;;  %v450_v44 = vld [vmem:[%s11434_s0 + $0xd80] sm:$0xff]  ;;  %v380_v13 = vld [vmem:[%s11434_s0 + $0xb50] sm:$0xff] }
  0x2a   :  { %2747 = vmatmul.mubr.bf16.gmra.mrb[4].mxu0 %v810_v47  ;;  %2843 = vmatmul.mubr.bf16.gmra.mrb[4].mxu1 %v1098_v48  ;;  %v117_v47 = vld [vmem:[%s11434_s0 + $0x318] sm:$0xff]  ;;  %v6891_v48 = vld [vmem:[%s11433_s1 + $0x188] sm:$0xff]  }
  0x2b   :  { %5552 = vmatpush3.bf16.msra.mxu1 %v6877_v49  ;;  %2754 = vmatprep.mubr.bf16.mxu0 %v835_v50  ;;  %v141_v49 = vld [vmem:[%s11434_s0 + $0x3d8] sm:$0xff]  ;;  %v6894_v50 = vld [vmem:[%s11433_s1 + $0x1d0] sm:$0xff]  }
  0x2c   :  { %5553 = vmatprep.subr.bf16.mxu1 %v6878_v51  ;;  %2850 = vmatprep.mubr.bf16.mxu1 %v1123_v52  ;;  %v6898_v51 = vld [vmem:[%s11433_s1 + $0x150] sm:$0xff]   ;;  %v906_v52 = vpack.c.bf16 %v282_v40, %v258_v39  ;;  %v837_v55 = vpack.c.bf16 %v141_v49, %v117_v47  ;;  %v6913_v39 = vld [vmem:[%s11433_s1 + $0x1a0] sm:$0xff]   ;;  %v978_v40 = vpack.c.bf16 %v426_v29, %v402_v28  ;;  %v6914_v49 = vld [vmem:[%s11433_s1 + $0x1e8] sm:$0xff]  }
  0x2d   :  { %5662 = vmatpush3.bf16.msra.mxu0 %v6897_v45  ;;  %v474_v45 = vld [vmem:[%s11434_s0 + $0xe40] sm:$0xff]  ;;  %v284_v47 = vld [vmem:[%s11434_s0 + $0x850] sm:$0xff]  ;;  %v453_v28 = vld [vmem:[%s11434_s0 + $0xd98] sm:$0xff] }
  0x2e   :  { %5663 = vmatprep.subr.bf16.mxu0 %v6898_v51  ;;  %v523_v51 = vld [vmem:[%s11434_s0 + $0xfc8] sm:$0xff]  ;;  %v477_v29 = vld [vmem:[%s11434_s0 + $0xe58] sm:$0xff] }
  0x2f   :  { %5554 = vmatpush3.bf16.msra.mxu1 %v6879_v53  ;;  %v812_v53 = vpack.c.bf16 %v92_v43, %v68_v41  ;;  %v884_v41 = vpack.c.bf16 %v236_v31, %v212_v30  ;;  %v71_v30 = vld [vmem:[%s11434_s0 + $0x1a8] sm:$0xff] }
  0x30   :  { %5555 = vmatprep.subr.bf16.mxu1 %v6880_v58  ;;  %v306_v58 = vld [vmem:[%s11434_s0 + $0x900] sm:$0xff]  ;;  %v95_v31 = vld [vmem:[%s11434_s0 + $0x268] sm:$0xff] }
  0x31   :  { %5664 = vmatpush3.bf16.msra.mxu0 %v6899_v57  ;;  %v930_v6 = vpack.c.bf16 %v330_v59, %v306_v58  ;;  %v498_v58 = vld [vmem:[%s11434_s0 + $0xf00] sm:$0xff] }
  0x32   :  { %2755 = vmatmul.mubr.bf16.gmra.mrb[8].mxu0 %v834_v63  ;;  %2851 = vmatmul.mubr.bf16.gmra.mrb[8].mxu1 %v1122_v0  ;;  %v355_v63 = vld [vmem:[%s11434_s0 + $0xa88] sm:$0xff]  ;;  %v522_v59 = vld [vmem:[%s11434_s0 + $0xfc0] sm:$0xff] }
  0x33   :  { %5556 = vmatpush3.bf16.msra.mxu1 %v6881_v1  ;;  %2762 = vmatprep.mubr.bf16.mxu0 %v859_v2  ;;  %v379_v0 = vld [vmem:[%s11434_s0 + $0xb48] sm:$0xff]  ;;  %v165_v1 = vld [vmem:[%s11434_s0 + $0x498] sm:$0xff] }
  0x34   :  { %5557 = vmatprep.subr.bf16.mxu1 %v6882_v3  ;;  %2858 = vmatprep.mubr.bf16.mxu1 %v1147_v4  ;;  %v189_v2 = vld [vmem:[%s11434_s0 + $0x558] sm:$0xff]  ;;  %v6902_v4 = vld [vmem:[%s11433_s1 + $0x160] sm:$0xff]   ;;  %v955_v8 = vpack.c.bf16 %v379_v0, %v355_v63  ;;  %v547_v63 = vld [vmem:[%s11434_s0 + $0x1088] sm:$0xff] }
  0x35   :  { %v6901_v3 = vld [vmem:[%s11433_s1 + $0x118] sm:$0xff]   ;;  %5665 = vmatprep.subr.bf16.mxu0 %v6900_v62  ;;  %v861_v9 = vpack.c.bf16 %v189_v2, %v165_v1  ;;  %v332_v62 = vld [vmem:[%s11434_s0 + $0x9d0] sm:$0xff]  ;;  %v571_v1 = vld [vmem:[%s11434_s0 + $0x1148] sm:$0xff] }
  0x36   :  { %5666 = vmatpush3.bf16.msra.mxu0 %v6901_v3  ;;  %v6917_v0 = vld [vmem:[%s11433_s1 + $0x1b0] sm:$0xff]   ;;  %v357_v2 = vld [vmem:[%s11434_s0 + $0xa98] sm:$0xff] }
  0x37   :  { %5558 = vmatpush3.bf16.msra.mxu1 %v6883_v5  ;;  %v6903_v5 = vld [vmem:[%s11433_s1 + $0x1d8] sm:$0xff]   ;;  %5667 = vmatprep.subr.bf16.mxu0 %v6902_v4  ;;  %v1026_v4 = vpack.c.bf16 %v522_v59, %v498_v58  ;;  %v6929_v58 = vld [vmem:[%s11433_s1 + $0x210] sm:$0xff]   ;;  %v167_v59 = vld [vmem:[%s11434_s0 + $0x4a8] sm:$0xff] }
  0x38   :  { %5559 = vmatprep.subr.bf16.mxu1 %v6884_v10  ;;  %v6905_v10 = vld [vmem:[%s11433_s1 + $0x198] sm:$0xff]  }
  0x39   :  { %v381_v3 = vld [vmem:[%s11434_s0 + $0xb58] sm:$0xff] }
  0x3a   :  { %2763 = vmatmul.mubr.bf16.gmra.mrb[12].mxu0 %v858_v15  ;;  %2859 = vmatmul.mubr.bf16.gmra.mrb[12].mxu1 %v1146_v16  ;;  %v164_v15 = vld [vmem:[%s11434_s0 + $0x490] sm:$0xff] }
  0x3b   :  { %5560 = vmatpush3.bf16.msra.mxu1 %v6885_v17  ;;  %2770 = vmatprep.mubr.bf16.mxu0 %v883_v18  ;;  %v188_v16 = vld [vmem:[%s11434_s0 + $0x550] sm:$0xff]  ;;  %v403_v17 = vld [vmem:[%s11434_s0 + $0xc08] sm:$0xff] }
  0x3c   :  { %5561 = vmatprep.subr.bf16.mxu1 %v6886_v19  ;;  %2899 = vmatprep.mubr.bf16.mxu1 %v789_v20  ;;  %v427_v18 = vld [vmem:[%s11434_s0 + $0xcc8] sm:$0xff]  ;;  %v213_v19 = vld [vmem:[%s11434_s0 + $0x618] sm:$0xff]  ;;  %v860_v24 = vpack.c.bf16 %v188_v16, %v164_v15 }
  0x3d   :  { %v237_v20 = vld [vmem:[%s11434_s0 + $0x6d8] sm:$0xff]  ;;  %5668 = vmatpush3.bf16.msra.mxu0 %v6904_v11  ;;  %v979_v25 = vpack.c.bf16 %v427_v18, %v403_v17  ;;  %v23_v16 = vld [vmem:[%s11434_s0 + $0x28] sm:$0xff] }
  0x3e   :  { %5669 = vmatprep.subr.bf16.mxu0 %v6906_v14  ;;  %v885_v26 = vpack.c.bf16 %v237_v20, %v213_v19  ;;  %v6919_v11 = vld [vmem:[%s11433_s1 + $0x1b8] sm:$0xff]   ;;  %v47_v17 = vld [vmem:[%s11434_s0 + $0xe8] sm:$0xff]  ;;  %v956_v19 = vpack.c.bf16 %v380_v13, %v356_v12  ;;  %v6920_v20 = vld [vmem:[%s11433_s1 + $0x240] sm:$0xff]  }
  0x3f   :  { %5562 = vmatpush3.bf16.msra.mxu1 %v6887_v21  ;;  %v6907_v21 = vld [vmem:[%s11433_s1 + $0x128] sm:$0xff]   ;;  %v405_v14 = vld [vmem:[%s11434_s0 + $0xc18] sm:$0xff]  ;;  %v6934_v13 = vld [vmem:[%s11433_s1 + $0x260] sm:$0xff]  }
  0x40   :  { %5771 = vmatprep.subr.bf16.mxu1 %v6888_v27  ;;  %v6909_v27 = vld [vmem:[%s11433_s1 + $0x130] sm:$0xff]   ;;  %v429_v15 = vld [vmem:[%s11434_s0 + $0xcd8] sm:$0xff] }
  0x41   :  { %5670 = vmatpush3.bf16.msra.mxu0 %v6907_v21  ;;  %v981_v21 = vpack.c.bf16 %v429_v15, %v405_v14 }
  0x42   :  { %2771 = vmatmul.mubr.bf16.gmra.mrb[16].mxu0 %v882_v33  ;;  %2900 = vmatmul.mubr.bf16.vlgmr.msra.gmra.mrb[16].mxu1 %v788_v34  ;;  %v451_v33 = vld [vmem:[%s11434_s0 + $0xd88] sm:$0xff] }
  0x43   :  { %5772 = vmatpush3.bf16.msra.mxu1 %v6889_v35  ;;  %2778 = vmatprep.mubr.bf16.mxu0 %v907_v36  ;;  %v475_v34 = vld [vmem:[%s11434_s0 + $0xe48] sm:$0xff]  ;;  %v261_v35 = vld [vmem:[%s11434_s0 + $0x798] sm:$0xff] }
  0x44   :  { %2907 = vmatprep.mubr.bf16.mxu1 %v813_v37  ;;  %5773 = vmatprep.subr.bf16.mxu1 %v6890_v38  ;;  %v285_v36 = vld [vmem:[%s11434_s0 + $0x858] sm:$0xff]  ;;  %v6912_v37 = vld [vmem:[%s11433_s1 + $0x1e0] sm:$0xff]   ;;  %v1003_v42 = vpack.c.bf16 %v475_v34, %v451_v33  ;;  %v1005_v34 = vpack.c.bf16 %v477_v29, %v453_v28 }
  0x45   :  { %5671 = vmatprep.subr.bf16.mxu0 %v6908_v22  ;;  %v6911_v38 = vld [vmem:[%s11433_s1 + $0x138] sm:$0xff]   ;;  %v909_v43 = vpack.c.bf16 %v285_v36, %v261_v35  ;;  %v791_v22 = vpack.c.bf16 %v47_v17, %v23_v16  ;;  %v815_v35 = vpack.c.bf16 %v95_v31, %v71_v30  ;;  %v6921_v36 = vld [vmem:[%s11433_s1 + $0x200] sm:$0xff]   ;;  %v596_v17 = vld [vmem:[%s11434_s0 + $0x1210] sm:$0xff] }
  0x46   :  { %5672 = vmatpush3.bf16.msra.mxu0 %v6909_v27  ;;  %v6922_v27 = vld [vmem:[%s11433_s1 + $0x2c0] sm:$0xff]   ;;  %v6940_v31 = vld [vmem:[%s11433_s1 + $0x270] sm:$0xff]  }
  0x47   :  { %5774 = vmatpush3.bf16.msra.mxu1 %v6891_v48  ;;  %5673 = vmatprep.subr.bf16.mxu0 %v6910_v32  ;;  %v499_v48 = vld [vmem:[%s11434_s0 + $0xf08] sm:$0xff]  ;;  %v6936_v16 = vld [vmem:[%s11433_s1 + $0x220] sm:$0xff]  }
  0x48   :  { %5775 = vmatprep.subr.bf16.mxu1 %v6894_v50  ;;  %v6915_v50 = vld [vmem:[%s11433_s1 + $0x1a8] sm:$0xff]  }
  0x4a   :  { %2779 = vmatmul.mubr.bf16.gmra.mrb[20].mxu0 %v906_v52  ;;  %2908 = vmatmul.mubr.bf16.gmra.mrb[20].mxu1 %v812_v53  ;;  %v309_v52 = vld [vmem:[%s11434_s0 + $0x918] sm:$0xff] }
  0x4b   :  { %2786 = vmatprep.mubr.bf16.mxu0 %v931_v54  ;;  %2915 = vmatprep.mubr.bf16.mxu1 %v837_v55  ;;  %v333_v53 = vld [vmem:[%s11434_s0 + $0x9d8] sm:$0xff]  ;;  %v1002_v54 = vpack.c.bf16 %v474_v45, %v450_v44  ;;  %v908_v55 = vpack.c.bf16 %v284_v47, %v260_v46  ;;  %v119_v44 = vld [vmem:[%s11434_s0 + $0x328] sm:$0xff] }
  0x4c   :  { %5776 = vmatpush3.bf16.msra.mxu1 %v6895_v56  ;;  %5674 = vmatpush3.bf16.msra.mxu0 %v6911_v38  ;;  %v1027_v56 = vpack.c.bf16 %v523_v51, %v499_v48  ;;  %v933_v57 = vpack.c.bf16 %v333_v53, %v309_v52  ;;  %v476_v38 = vld [vmem:[%s11434_s0 + $0xe50] sm:$0xff]  ;;  %v143_v45 = vld [vmem:[%s11434_s0 + $0x3e8] sm:$0xff] }
  0x4d   :  { %5777 = vmatprep.subr.bf16.mxu1 %v6903_v5  ;;  %v932_v5 = vpack.c.bf16 %v332_v62, %v308_v60  ;;  %5883 = vmatprep.subr.bf16.mxu0 %v6920_v20  ;;  %v6925_v46 = vld [vmem:[%s11433_s1 + $0x208] sm:$0xff]   ;;  %v6928_v51 = vld [vmem:[%s11433_s1 + $0x250] sm:$0xff]   ;;  %v238_v20 = vld [vmem:[%s11434_s0 + $0x6e0] sm:$0xff] }
  0x4e   :  { %v500_v52 = vld [vmem:[%s11434_s0 + $0xf10] sm:$0xff]  ;;  %v191_v60 = vld [vmem:[%s11434_s0 + $0x568] sm:$0xff] }
  0x4f   :  { %v524_v53 = vld [vmem:[%s11434_s0 + $0xfd0] sm:$0xff] }
  0x50   :  { %5778 = vmatpush3.bf16.msra.mxu1 %v6905_v10  ;;  %v570_v10 = vld [vmem:[%s11434_s0 + $0x1140] sm:$0xff] }
  0x51   :  { %5779 = vmatprep.subr.bf16.mxu1 %v6912_v37  ;;  %v452_v37 = vld [vmem:[%s11434_s0 + $0xd90] sm:$0xff] }
  0x52   :  { %2787 = vmatmul.mubr.bf16.gmra.mrb[24].mxu0 %v930_v6  ;;  %2916 = vmatmul.mubr.bf16.gmra.mrb[24].mxu1 %v836_v7  ;;  %v1051_v6 = vpack.c.bf16 %v571_v1, %v547_v63  ;;  %v957_v7 = vpack.c.bf16 %v381_v3, %v357_v2  ;;  %v1004_v47 = vpack.c.bf16 %v476_v38, %v452_v37  ;;  %v548_v1 = vld [vmem:[%s11434_s0 + $0x1090] sm:$0xff]  ;;  %v166_v3 = vld [vmem:[%s11434_s0 + $0x4a0] sm:$0xff]  ;;  %v693_v38 = vld [vmem:[%s11434_s0 + $0x1518] sm:$0xff] }
  0x53   :  { %2794 = vmatprep.mubr.bf16.mxu0 %v955_v8  ;;  %2923 = vmatprep.mubr.bf16.mxu1 %v861_v9  ;;  %v546_v8 = vld [vmem:[%s11434_s0 + $0x1080] sm:$0xff]  ;;  %v6918_v9 = vld [vmem:[%s11433_s1 + $0x1f8] sm:$0xff]   ;;  %v572_v2 = vld [vmem:[%s11434_s0 + $0x1150] sm:$0xff] }
  0x54   :  { %5780 = vmatpush3.bf16.msra.mxu1 %v6913_v39  ;;  %v1050_v18 = vpack.c.bf16 %v570_v10, %v546_v8  ;;  %v70_v39 = vld [vmem:[%s11434_s0 + $0x1a0] sm:$0xff]  ;;  %v621_v8 = vld [vmem:[%s11434_s0 + $0x12d8] sm:$0xff]  ;;  %v239_v10 = vld [vmem:[%s11434_s0 + $0x6e8] sm:$0xff] }
  0x55   :  { %5781 = vmatprep.subr.bf16.mxu1 %v6914_v49  ;;  %v286_v37 = vld [vmem:[%s11434_s0 + $0x860] sm:$0xff] }
  0x58   :  { %5782 = vmatpush3.bf16.msra.mxu1 %v6915_v50  ;;  %v839_v50 = vpack.c.bf16 %v143_v45, %v119_v44 }
  0x59   :  { %5783 = vmatprep.subr.bf16.mxu1 %v6916_v61  ;;  %v1028_v61 = vpack.c.bf16 %v524_v53, %v500_v52  ;;  %v765_v52 = vld [vmem:[%s11434_s0 + $0x1758] sm:$0xff]  ;;  %v359_v53 = vld [vmem:[%s11434_s0 + $0xaa8] sm:$0xff] }
  0x5a   :  { %2795 = vmatmul.mubr.bf16.gmra.mrb[28].mxu0 %v954_v23  ;;  %2924 = vmatmul.mubr.bf16.gmra.mrb[28].mxu1 %v860_v24  ;;  %v404_v23 = vld [vmem:[%s11434_s0 + $0xc10] sm:$0xff] }
  0x5b   :  { %2802 = vmatprep.mubr.bf16.mxu0 %v979_v25  ;;  %2931 = vmatprep.mubr.bf16.mxu1 %v885_v26  ;;  %v428_v24 = vld [vmem:[%s11434_s0 + $0xcd0] sm:$0xff]  ;;  %v22_v25 = vld [vmem:[%s11434_s0 + $0x20] sm:$0xff] }
  0x5c   :  { %5784 = vmatpush3.bf16.msra.mxu1 %v6917_v0  ;;  %v46_v26 = vld [vmem:[%s11434_s0 + $0xe0] sm:$0xff]  ;;  %v980_v32 = vpack.c.bf16 %v428_v24, %v404_v23  ;;  %v863_v0 = vpack.c.bf16 %v191_v60, %v167_v59  ;;  %v669_v23 = vld [vmem:[%s11434_s0 + $0x1458] sm:$0xff]  ;;  %v263_v24 = vld [vmem:[%s11434_s0 + $0x7a8] sm:$0xff] }
  0x5d   :  { %5785 = vmatprep.subr.bf16.mxu1 %v6918_v9  ;;  %v790_v33 = vpack.c.bf16 %v46_v26, %v22_v25  ;;  %v215_v9 = vld [vmem:[%s11434_s0 + $0x628] sm:$0xff]  ;;  %v740_v59 = vld [vmem:[%s11434_s0 + $0x1690] sm:$0xff] }
  0x5e   :  { %v887_v15 = vpack.c.bf16 %v239_v10, %v215_v9  ;;  %v287_v25 = vld [vmem:[%s11434_s0 + $0x868] sm:$0xff]  ;;  %v764_v60 = vld [vmem:[%s11434_s0 + $0x1750] sm:$0xff] }
  0x5f   :  { %v6939_v26 = vld [vmem:[%s11433_s1 + $0x228] sm:$0xff]   ;;  %v911_v30 = vpack.c.bf16 %v287_v25, %v263_v24  ;;  %v24_v9 = vld [vmem:[%s11434_s0 + $0x30] sm:$0xff] }
  0x60   :  { %5786 = vmatpush3.bf16.msra.mxu1 %v6919_v11  ;;  %v1052_v11 = vpack.c.bf16 %v572_v2, %v548_v1  ;;  %v25_v1 = vld [vmem:[%s11434_s0 + $0x38] sm:$0xff]  ;;  %v48_v10 = vld [vmem:[%s11434_s0 + $0xf0] sm:$0xff]  ;;  %v503_v25 = vld [vmem:[%s11434_s0 + $0xf28] sm:$0xff] }
  0x61   :  { %5995 = vmatprep.subr.bf16.mxu1 %v6922_v27  ;;  %v49_v2 = vld [vmem:[%s11434_s0 + $0xf8] sm:$0xff]  ;;  %v96_v24 = vld [vmem:[%s11434_s0 + $0x270] sm:$0xff] }
  0x62   :  { %2803 = vmatmul.mubr.bf16.gmra.mrb[32].mxu0 %v978_v40  ;;  %2932 = vmatmul.mubr.bf16.gmra.mrb[32].mxu1 %v884_v41  ;;  %v94_v40 = vld [vmem:[%s11434_s0 + $0x260] sm:$0xff]  ;;  %v6924_v41 = vld [vmem:[%s11433_s1 + $0x248] sm:$0xff]  }
  0x63   :  { %2810 = vmatprep.mubr.bf16.mxu0 %v1003_v42  ;;  %2939 = vmatprep.mubr.bf16.mxu1 %v909_v43  ;;  %v501_v42 = vld [vmem:[%s11434_s0 + $0xf18] sm:$0xff]  ;;  %v814_v48 = vpack.c.bf16 %v94_v40, %v70_v39  ;;  %v311_v40 = vld [vmem:[%s11434_s0 + $0x928] sm:$0xff] }
  0x64   :  { %v525_v43 = vld [vmem:[%s11434_s0 + $0xfd8] sm:$0xff] }
  0x65   :  { %v1029_v49 = vpack.c.bf16 %v525_v43, %v501_v42  ;;  %v717_v39 = vld [vmem:[%s11434_s0 + $0x15d8] sm:$0xff] }
  0x66   :  { %v6943_v42 = vld [vmem:[%s11433_s1 + $0x238] sm:$0xff]   ;;  %v1125_v45 = vpack.c.bf16 %v717_v39, %v693_v38  ;;  %v526_v38 = vld [vmem:[%s11434_s0 + $0xfe0] sm:$0xff]  ;;  %v120_v39 = vld [vmem:[%s11434_s0 + $0x330] sm:$0xff] }
  0x6a   :  { %2811 = vmatmul.mubr.bf16.gmra.mrb[36].mxu0 %v1002_v54  ;;  %2940 = vmatmul.mubr.bf16.gmra.mrb[36].mxu1 %v908_v55  ;;  %v118_v54 = vld [vmem:[%s11434_s0 + $0x320] sm:$0xff] }
  0x6b   :  { %2818 = vmatprep.mubr.bf16.mxu0 %v1027_v56  ;;  %2947 = vmatprep.mubr.bf16.mxu1 %v933_v57  ;;  %v142_v55 = vld [vmem:[%s11434_s0 + $0x3e0] sm:$0xff]  ;;  %v549_v56 = vld [vmem:[%s11434_s0 + $0x1098] sm:$0xff] }
  0x6c   :  { %v573_v57 = vld [vmem:[%s11434_s0 + $0x1158] sm:$0xff]  ;;  %v838_v62 = vpack.c.bf16 %v142_v55, %v118_v54  ;;  %v383_v54 = vld [vmem:[%s11434_s0 + $0xb68] sm:$0xff] }
  0x6d   :  { %v1053_v63 = vpack.c.bf16 %v573_v57, %v549_v56 }
  0x72   :  { %2819 = vmatmul.mubr.bf16.gmra.mrb[40].mxu0 %v1026_v4  ;;  %2948 = vmatmul.mubr.bf16.gmra.mrb[40].mxu1 %v932_v5  ;;  %v6932_v4 = vld [vmem:[%s11433_s1 + $0x258] sm:$0xff]   ;;  %v190_v5 = vld [vmem:[%s11434_s0 + $0x560] sm:$0xff] }
  0x73   :  { %2826 = vmatprep.mubr.bf16.mxu0 %v1051_v6  ;;  %2955 = vmatprep.mubr.bf16.mxu1 %v957_v7  ;;  %v597_v6 = vld [vmem:[%s11434_s0 + $0x1218] sm:$0xff]  ;;  %v862_v12 = vpack.c.bf16 %v190_v5, %v166_v3  ;;  %v1148_v3 = vpack.c.bf16 %v764_v60, %v740_v59  ;;  %v623_v59 = vld [vmem:[%s11434_s0 + $0x12e8] sm:$0xff] }
  0x74   :  { %v6933_v7 = vld [vmem:[%s11433_s1 + $0x218] sm:$0xff]   ;;  %v1077_v14 = vpack.c.bf16 %v621_v8, %v597_v6  ;;  %v793_v6 = vpack.c.bf16 %v49_v2, %v25_v1  ;;  %v430_v8 = vld [vmem:[%s11434_s0 + $0xce0] sm:$0xff] }
  0x75   :  { %v217_v60 = vld [vmem:[%s11434_s0 + $0x638] sm:$0xff] }
  0x7a   :  { %2827 = vmatmul.mubr.bf16.gmra.mrb[44].mxu0 %v1050_v18  ;;  %2956 = vmatmul.mubr.bf16.gmra.mrb[44].mxu1 %v956_v19  ;;  %v620_v18 = vld [vmem:[%s11434_s0 + $0x12d0] sm:$0xff]  ;;  %v214_v19 = vld [vmem:[%s11434_s0 + $0x620] sm:$0xff] }
  0x7b   :  { %2963 = vmatprep.mubr.bf16.mxu1 %v981_v21  ;;  %3060 = vmatprep.mubr.bf16.mxu0 %v791_v22  ;;  %v645_v21 = vld [vmem:[%s11434_s0 + $0x1398] sm:$0xff]  ;;  %v6938_v22 = vld [vmem:[%s11433_s1 + $0x268] sm:$0xff]   ;;  %v1076_v27 = vpack.c.bf16 %v620_v18, %v596_v17  ;;  %v886_v28 = vpack.c.bf16 %v238_v20, %v214_v19  ;;  %v6923_v17 = vld [vmem:[%s11433_s1 + $0x280] sm:$0xff]  }
  0x7c   :  { %v1101_v29 = vpack.c.bf16 %v669_v23, %v645_v21  ;;  %v6926_v20 = vld [vmem:[%s11433_s1 + $0x2c8] sm:$0xff]   ;;  %v454_v21 = vld [vmem:[%s11434_s0 + $0xda0] sm:$0xff]  ;;  %v72_v23 = vld [vmem:[%s11434_s0 + $0x1b0] sm:$0xff] }
  0x82   :  { %2964 = vmatmul.mubr.bf16.gmra.mrb[48].mxu1 %v980_v32  ;;  %3061 = vmatmul.mubr.bf16.vlgmr.msra.gmra.mrb[48].mxu0 %v790_v33  ;;  %v6941_v32 = vld [vmem:[%s11433_s1 + $0x230] sm:$0xff]  }
  0x83   :  { %2971 = vmatprep.mubr.bf16.mxu1 %v1005_v34  ;;  %3068 = vmatprep.mubr.bf16.mxu0 %v815_v35  ;;  %v644_v33 = vld [vmem:[%s11434_s0 + $0x1390] sm:$0xff]  ;;  %v6942_v34 = vld [vmem:[%s11433_s1 + $0x278] sm:$0xff]  }
  0x84   :  { %5884 = vmatpush3.bf16.msra.mxu0 %v6921_v36  ;;  %v668_v35 = vld [vmem:[%s11434_s0 + $0x1450] sm:$0xff]  ;;  %v262_v36 = vld [vmem:[%s11434_s0 + $0x7a0] sm:$0xff] }
  0x85   :  { %5885 = vmatprep.subr.bf16.mxu0 %v6924_v41  ;;  %v335_v41 = vld [vmem:[%s11434_s0 + $0x9e8] sm:$0xff]  ;;  %v1100_v43 = vpack.c.bf16 %v668_v35, %v644_v33  ;;  %v910_v44 = vpack.c.bf16 %v286_v37, %v262_v36  ;;  %v816_v33 = vpack.c.bf16 %v96_v24, %v72_v23  ;;  %v6931_v36 = vld [vmem:[%s11433_s1 + $0x290] sm:$0xff]   ;;  %v502_v37 = vld [vmem:[%s11434_s0 + $0xf20] sm:$0xff] }
  0x86   :  { %v288_v23 = vld [vmem:[%s11434_s0 + $0x870] sm:$0xff]  ;;  %v695_v24 = vld [vmem:[%s11434_s0 + $0x1528] sm:$0xff] }
  0x88   :  { %5886 = vmatpush3.bf16.msra.mxu0 %v6925_v46  ;;  %v935_v46 = vpack.c.bf16 %v335_v41, %v311_v40  ;;  %v144_v40 = vld [vmem:[%s11434_s0 + $0x3f0] sm:$0xff]  ;;  %v6935_v41 = vld [vmem:[%s11433_s1 + $0x2d8] sm:$0xff]  }
  0x89   :  { %5887 = vmatprep.subr.bf16.mxu0 %v6928_v51  ;;  %v741_v51 = vld [vmem:[%s11434_s0 + $0x1698] sm:$0xff] }
  0x8a   :  { %2972 = vmatmul.mubr.bf16.gmra.mrb[52].mxu1 %v1004_v47  ;;  %3069 = vmatmul.mubr.bf16.gmra.mrb[52].mxu0 %v814_v48  ;;  %v692_v47 = vld [vmem:[%s11434_s0 + $0x1510] sm:$0xff]  ;;  %v1149_v57 = vpack.c.bf16 %v765_v52, %v741_v51  ;;  %v6945_v52 = vld [vmem:[%s11433_s1 + $0x2a0] sm:$0xff]  }
  0x8b   :  { %2979 = vmatprep.mubr.bf16.mxu1 %v1029_v49  ;;  %3076 = vmatprep.mubr.bf16.mxu0 %v839_v50  ;;  %v716_v48 = vld [vmem:[%s11434_s0 + $0x15d0] sm:$0xff]  ;;  %v310_v49 = vld [vmem:[%s11434_s0 + $0x920] sm:$0xff] }
  0x8c   :  { %5888 = vmatpush3.bf16.msra.mxu0 %v6929_v58  ;;  %v334_v50 = vld [vmem:[%s11434_s0 + $0x9e0] sm:$0xff]  ;;  %v1124_v55 = vpack.c.bf16 %v716_v48, %v692_v47  ;;  %v959_v58 = vpack.c.bf16 %v383_v54, %v359_v53  ;;  %v1030_v48 = vpack.c.bf16 %v526_v38, %v502_v37  ;;  %v6946_v53 = vld [vmem:[%s11433_s1 + $0x2e8] sm:$0xff]   ;;  %v361_v38 = vld [vmem:[%s11434_s0 + $0xab8] sm:$0xff] }
  0x8d   :  { %5889 = vmatprep.subr.bf16.mxu0 %v6932_v4  ;;  %v934_v56 = vpack.c.bf16 %v334_v50, %v310_v49  ;;  %v6944_v47 = vld [vmem:[%s11433_s1 + $0x2e0] sm:$0xff]   ;;  %v840_v49 = vpack.c.bf16 %v144_v40, %v120_v39  ;;  %v767_v37 = vld [vmem:[%s11434_s0 + $0x1768] sm:$0xff]  ;;  %v385_v39 = vld [vmem:[%s11434_s0 + $0xb78] sm:$0xff] }
  0x8e   :  { %v550_v54 = vld [vmem:[%s11434_s0 + $0x10a0] sm:$0xff] }
  0x90   :  { %5890 = vmatpush3.bf16.msra.mxu0 %v6933_v7  ;;  %v406_v7 = vld [vmem:[%s11434_s0 + $0xc20] sm:$0xff] }
  0x91   :  { %5891 = vmatprep.subr.bf16.mxu0 %v6934_v13  ;;  %v73_v13 = vld [vmem:[%s11434_s0 + $0x1b8] sm:$0xff] }
  0x92   :  { %2980 = vmatmul.mubr.bf16.gmra.mrb[56].mxu1 %v1028_v61  ;;  %3077 = vmatmul.mubr.bf16.gmra.mrb[56].mxu0 %v838_v62  ;;  %v358_v61 = vld [vmem:[%s11434_s0 + $0xaa0] sm:$0xff] }
  0x93   :  { %2987 = vmatprep.mubr.bf16.mxu1 %v1053_v63  ;;  %3084 = vmatprep.mubr.bf16.mxu0 %v863_v0  ;;  %v382_v62 = vld [vmem:[%s11434_s0 + $0xb60] sm:$0xff]  ;;  %v407_v63 = vld [vmem:[%s11434_s0 + $0xc28] sm:$0xff] }
  0x94   :  { %5892 = vmatpush3.bf16.msra.mxu0 %v6936_v16  ;;  %v431_v0 = vld [vmem:[%s11434_s0 + $0xce8] sm:$0xff]  ;;  %v958_v4 = vpack.c.bf16 %v382_v62, %v358_v61  ;;  %v792_v16 = vpack.c.bf16 %v48_v10, %v24_v9  ;;  %v241_v61 = vld [vmem:[%s11434_s0 + $0x6f8] sm:$0xff]  ;;  %v240_v9 = vld [vmem:[%s11434_s0 + $0x6f0] sm:$0xff] }
  0x95   :  { %5893 = vmatprep.subr.bf16.mxu0 %v6938_v22  ;;  %v983_v5 = vpack.c.bf16 %v431_v0, %v407_v63  ;;  %v478_v22 = vld [vmem:[%s11434_s0 + $0xe60] sm:$0xff]  ;;  %v6947_v62 = vld [vmem:[%s11433_s1 + $0x2a8] sm:$0xff]   ;;  %v6948_v63 = vld [vmem:[%s11433_s1 + $0x2f0] sm:$0xff]  }
  0x96   :  { %v647_v10 = vld [vmem:[%s11434_s0 + $0x13a8] sm:$0xff] }
  0x98   :  { %5894 = vmatpush3.bf16.msra.mxu0 %v6939_v26  ;;  %v527_v26 = vld [vmem:[%s11434_s0 + $0xfe8] sm:$0xff] }
  0x99   :  { %5895 = vmatprep.subr.bf16.mxu0 %v6940_v31  ;;  %v6930_v31 = vld [vmem:[%s11433_s1 + $0x2d0] sm:$0xff]  }
  0x9a   :  { %2988 = vmatmul.mubr.bf16.gmra.mrb[60].mxu1 %v1052_v11  ;;  %3085 = vmatmul.mubr.bf16.gmra.mrb[60].mxu0 %v862_v12  ;;  %v455_v11 = vld [vmem:[%s11434_s0 + $0xda8] sm:$0xff] }
  0x9b   :  { %2995 = vmatprep.mubr.bf16.mxu1 %v1077_v14  ;;  %3092 = vmatprep.mubr.bf16.mxu0 %v887_v15  ;;  %v479_v12 = vld [vmem:[%s11434_s0 + $0xe68] sm:$0xff]  ;;  %v97_v14 = vld [vmem:[%s11434_s0 + $0x278] sm:$0xff]  ;;  %v982_v15 = vpack.c.bf16 %v430_v8, %v406_v7  ;;  %v622_v7 = vld [vmem:[%s11434_s0 + $0x12e0] sm:$0xff] }
  0x9c   :  { %5896 = vmatpush3.bf16.msra.mxu0 %v6941_v32  ;;  %v1007_v18 = vpack.c.bf16 %v479_v12, %v455_v11  ;;  %v817_v19 = vpack.c.bf16 %v97_v14, %v73_v13  ;;  %v1006_v32 = vpack.c.bf16 %v478_v22, %v454_v21  ;;  %v216_v8 = vld [vmem:[%s11434_s0 + $0x630] sm:$0xff]  ;;  %v671_v11 = vld [vmem:[%s11434_s0 + $0x1468] sm:$0xff]  ;;  %v265_v12 = vld [vmem:[%s11434_s0 + $0x7b8] sm:$0xff] }
  0x9d   :  { %5897 = vmatprep.subr.bf16.mxu0 %v6942_v34  ;;  %v1031_v34 = vpack.c.bf16 %v527_v26, %v503_v25  ;;  %v289_v13 = vld [vmem:[%s11434_s0 + $0x878] sm:$0xff]  ;;  %v670_v21 = vld [vmem:[%s11434_s0 + $0x1460] sm:$0xff]  ;;  %v264_v22 = vld [vmem:[%s11434_s0 + $0x7b0] sm:$0xff] }
  0x9e   :  { %v6951_v14 = vld [vmem:[%s11433_s1 + $0x2b8] sm:$0xff]   ;;  %v719_v25 = vld [vmem:[%s11434_s0 + $0x15e8] sm:$0xff] }
  0x9f   :  { %v313_v26 = vld [vmem:[%s11434_s0 + $0x938] sm:$0xff] }
  0xa0   :  { %5898 = vmatpush3.bf16.msra.mxu0 %v6943_v42  ;;  %v551_v42 = vld [vmem:[%s11434_s0 + $0x10a8] sm:$0xff] }
  0xa2   :  { %2996 = vmatmul.mubr.bf16.gmra.mrb[64].mxu1 %v1076_v27  ;;  %3093 = vmatmul.mubr.bf16.gmra.mrb[64].mxu0 %v886_v28  ;;  %v121_v27 = vld [vmem:[%s11434_s0 + $0x338] sm:$0xff]  ;;  %v6927_v28 = vld [vmem:[%s11433_s1 + $0x288] sm:$0xff]  }
  0xa3   :  { %3003 = vmatprep.mubr.bf16.mxu1 %v1101_v29  ;;  %3100 = vmatprep.mubr.bf16.mxu0 %v911_v30  ;;  %v6952_v29 = vld [vmem:[%s11433_s1 + $0x340] sm:$0xff]   ;;  %v145_v30 = vld [vmem:[%s11434_s0 + $0x3f8] sm:$0xff] }
  0xa4   :  { %6107 = vmatprep.subr.bf16.mxu0 %v6952_v29  ;;  %v841_v35 = vpack.c.bf16 %v145_v30, %v121_v27  ;;  %v337_v27 = vld [vmem:[%s11434_s0 + $0x9f8] sm:$0xff]  ;;  %v912_v29 = vpack.c.bf16 %v288_v23, %v264_v22  ;;  %v1127_v30 = vpack.c.bf16 %v719_v25, %v695_v24 }
  0xaa   :  { %3004 = vmatmul.mubr.bf16.gmra.mrb[68].mxu1 %v1100_v43  ;;  %3101 = vmatmul.mubr.bf16.gmra.mrb[68].mxu0 %v910_v44  ;;  %v575_v43 = vld [vmem:[%s11434_s0 + $0x1168] sm:$0xff]  ;;  %v169_v44 = vld [vmem:[%s11434_s0 + $0x4b8] sm:$0xff] }
  0xab   :  { %3011 = vmatprep.mubr.bf16.mxu1 %v1125_v45  ;;  %3108 = vmatprep.mubr.bf16.mxu0 %v935_v46  ;;  %v193_v45 = vld [vmem:[%s11434_s0 + $0x578] sm:$0xff]  ;;  %v1055_v50 = vpack.c.bf16 %v575_v43, %v551_v42  ;;  %v961_v43 = vpack.c.bf16 %v385_v39, %v361_v38  ;;  %v6957_v38 = vld [vmem:[%s11433_s1 + $0x308] sm:$0xff]   ;;  %v6960_v39 = vld [vmem:[%s11433_s1 + $0x350] sm:$0xff]  }
  0xac   :  { %v6937_v46 = vld [vmem:[%s11433_s1 + $0x298] sm:$0xff]   ;;  %v865_v51 = vpack.c.bf16 %v193_v45, %v169_v44  ;;  %v742_v44 = vld [vmem:[%s11434_s0 + $0x16a0] sm:$0xff] }
  0xad   :  { %v766_v45 = vld [vmem:[%s11434_s0 + $0x1760] sm:$0xff] }
  0xb2   :  { %3012 = vmatmul.mubr.bf16.gmra.mrb[72].mxu1 %v1124_v55  ;;  %3109 = vmatmul.mubr.bf16.gmra.mrb[72].mxu0 %v934_v56  ;;  %v574_v55 = vld [vmem:[%s11434_s0 + $0x1160] sm:$0xff]  ;;  %v168_v56 = vld [vmem:[%s11434_s0 + $0x4b0] sm:$0xff] }
  0xb3   :  { %3019 = vmatprep.mubr.bf16.mxu1 %v1149_v57  ;;  %3116 = vmatprep.mubr.bf16.mxu0 %v959_v58  ;;  %v192_v57 = vld [vmem:[%s11434_s0 + $0x570] sm:$0xff]  ;;  %v599_v58 = vld [vmem:[%s11434_s0 + $0x1228] sm:$0xff]  ;;  %v1054_v0 = vpack.c.bf16 %v574_v55, %v550_v54  ;;  %v1150_v55 = vpack.c.bf16 %v766_v45, %v742_v44 }
  0xb4   :  { %v864_v1 = vpack.c.bf16 %v192_v57, %v168_v56  ;;  %v1079_v2 = vpack.c.bf16 %v623_v59, %v599_v58 }
  0xba   :  { %3020 = vmatmul.mubr.bf16.gmra.mrb[76].mxu1 %v1148_v3  ;;  %3117 = vmatmul.mubr.bf16.gmra.mrb[76].mxu0 %v958_v4  ;;  %v889_v3 = vpack.c.bf16 %v241_v61, %v217_v60  ;;  %v6949_v4 = vld [vmem:[%s11433_s1 + $0x2b0] sm:$0xff]  }
  0xbb   :  { %3124 = vmatprep.mubr.bf16.mxu0 %v983_v5  ;;  %3221 = vmatprep.mubr.bf16.mxu1 %v793_v6  ;;  %v6950_v5 = vld [vmem:[%s11433_s1 + $0x2f8] sm:$0xff]   ;;  %v598_v6 = vld [vmem:[%s11434_s0 + $0x1220] sm:$0xff] }
  0xc2   :  { %3125 = vmatmul.mubr.bf16.gmra.mrb[80].mxu0 %v982_v15  ;;  %3222 = vmatmul.mubr.bf16.vlgmr.msra.gmra.mrb[80].mxu1 %v792_v16  ;;  %v6954_v15 = vld [vmem:[%s11433_s1 + $0x3c0] sm:$0xff]   ;;  %v1078_v16 = vpack.c.bf16 %v622_v7, %v598_v6 }
  0xc3   :  { %5996 = vmatpush3.bf16.msra.mxu1 %v6923_v17  ;;  %3132 = vmatprep.mubr.bf16.mxu0 %v1007_v18  ;;  %v888_v17 = vpack.c.bf16 %v240_v9, %v216_v8  ;;  %v1103_v18 = vpack.c.bf16 %v671_v11, %v647_v10  ;;  %v50_v6 = vld [vmem:[%s11434_s0 + $0x100] sm:$0xff]  ;;  %v457_v8 = vld [vmem:[%s11434_s0 + $0xdb8] sm:$0xff]  ;;  %v75_v10 = vld [vmem:[%s11434_s0 + $0x1c8] sm:$0xff] }
  0xc4   :  { %3229 = vmatprep.mubr.bf16.mxu1 %v817_v19  ;;  %5997 = vmatprep.subr.bf16.mxu1 %v6926_v20  ;;  %v913_v19 = vpack.c.bf16 %v289_v13, %v265_v12  ;;  %v646_v20 = vld [vmem:[%s11434_s0 + $0x13a0] sm:$0xff]  ;;  %v481_v9 = vld [vmem:[%s11434_s0 + $0xe78] sm:$0xff]  ;;  %v99_v11 = vld [vmem:[%s11434_s0 + $0x288] sm:$0xff] }
  0xc7   :  { %5998 = vmatpush3.bf16.msra.mxu1 %v6927_v28  ;;  %v1102_v28 = vpack.c.bf16 %v670_v21, %v646_v20  ;;  %v1009_v20 = vpack.c.bf16 %v481_v9, %v457_v8  ;;  %v819_v21 = vpack.c.bf16 %v99_v11, %v75_v10 }
  0xc8   :  { %5999 = vmatprep.subr.bf16.mxu1 %v6930_v31  ;;  %v937_v31 = vpack.c.bf16 %v337_v27, %v313_v26  ;;  %v6953_v26 = vld [vmem:[%s11433_s1 + $0x300] sm:$0xff]   ;;  %v6956_v27 = vld [vmem:[%s11433_s1 + $0x348] sm:$0xff]  }
  0xca   :  { %3133 = vmatmul.mubr.bf16.gmra.mrb[84].mxu0 %v1006_v32  ;;  %3230 = vmatmul.mubr.bf16.gmra.mrb[84].mxu1 %v816_v33  ;;  %v694_v32 = vld [vmem:[%s11434_s0 + $0x1520] sm:$0xff] }
  0xcb   :  { %3140 = vmatprep.mubr.bf16.mxu0 %v1031_v34  ;;  %3237 = vmatprep.mubr.bf16.mxu1 %v841_v35  ;;  %v718_v33 = vld [vmem:[%s11434_s0 + $0x15e0] sm:$0xff]  ;;  %v312_v34 = vld [vmem:[%s11434_s0 + $0x930] sm:$0xff] }
  0xcc   :  { %6000 = vmatpush3.bf16.msra.mxu1 %v6931_v36  ;;  %v336_v35 = vld [vmem:[%s11434_s0 + $0x9f0] sm:$0xff]  ;;  %v743_v36 = vld [vmem:[%s11434_s0 + $0x16a8] sm:$0xff]  ;;  %v1126_v40 = vpack.c.bf16 %v718_v33, %v694_v32  ;;  %v98_v32 = vld [vmem:[%s11434_s0 + $0x280] sm:$0xff] }
  0xcd   :  { %6001 = vmatprep.subr.bf16.mxu1 %v6935_v41  ;;  %v936_v41 = vpack.c.bf16 %v336_v35, %v312_v34  ;;  %v1151_v42 = vpack.c.bf16 %v767_v37, %v743_v36  ;;  %v505_v34 = vld [vmem:[%s11434_s0 + $0xf38] sm:$0xff]  ;;  %v123_v36 = vld [vmem:[%s11434_s0 + $0x348] sm:$0xff] }
  0xce   :  { %v529_v35 = vld [vmem:[%s11434_s0 + $0xff8] sm:$0xff]  ;;  %v147_v37 = vld [vmem:[%s11434_s0 + $0x408] sm:$0xff] }
  0xd0   :  { %6002 = vmatpush3.bf16.msra.mxu1 %v6937_v46  ;;  %v360_v46 = vld [vmem:[%s11434_s0 + $0xab0] sm:$0xff] }
  0xd1   :  { %6003 = vmatprep.subr.bf16.mxu1 %v6944_v47  ;;  %v384_v47 = vld [vmem:[%s11434_s0 + $0xb70] sm:$0xff] }
  0xd2   :  { %3141 = vmatmul.mubr.bf16.gmra.mrb[88].mxu0 %v1030_v48  ;;  %3238 = vmatmul.mubr.bf16.gmra.mrb[88].mxu1 %v840_v49  ;;  %v409_v48 = vld [vmem:[%s11434_s0 + $0xc38] sm:$0xff]  ;;  %v960_v56 = vpack.c.bf16 %v384_v47, %v360_v46 }
  0xd3   :  { %3148 = vmatprep.mubr.bf16.mxu0 %v1055_v50  ;;  %3245 = vmatprep.mubr.bf16.mxu1 %v865_v51  ;;  %v433_v49 = vld [vmem:[%s11434_s0 + $0xcf8] sm:$0xff]  ;;  %v27_v50 = vld [vmem:[%s11434_s0 + $0x48] sm:$0xff] }
  0xd4   :  { %6004 = vmatpush3.bf16.msra.mxu1 %v6945_v52  ;;  %v51_v51 = vld [vmem:[%s11434_s0 + $0x108] sm:$0xff]  ;;  %v985_v60 = vpack.c.bf16 %v433_v49, %v409_v48  ;;  %v1033_v48 = vpack.c.bf16 %v529_v35, %v505_v34  ;;  %v843_v49 = vpack.c.bf16 %v147_v37, %v123_v36  ;;  %v601_v34 = vld [vmem:[%s11434_s0 + $0x1238] sm:$0xff] }
  0xd5   :  { %6005 = vmatprep.subr.bf16.mxu1 %v6946_v53  ;;  %v795_v61 = vpack.c.bf16 %v51_v51, %v27_v50  ;;  %v625_v35 = vld [vmem:[%s11434_s0 + $0x12f8] sm:$0xff]  ;;  %v219_v36 = vld [vmem:[%s11434_s0 + $0x648] sm:$0xff] }
  0xd6   :  { %v243_v37 = vld [vmem:[%s11434_s0 + $0x708] sm:$0xff] }
  0xd8   :  { %6006 = vmatpush3.bf16.msra.mxu1 %v6947_v62 }
  0xd9   :  { %6007 = vmatprep.subr.bf16.mxu1 %v6948_v63 }
  0xda   :  { %3149 = vmatmul.mubr.bf16.gmra.mrb[92].mxu0 %v1054_v0  ;;  %3246 = vmatmul.mubr.bf16.gmra.mrb[92].mxu1 %v864_v1 }
  0xdb   :  { %3156 = vmatprep.mubr.bf16.mxu0 %v1079_v2  ;;  %3253 = vmatprep.mubr.bf16.mxu1 %v889_v3  ;;  %v408_v3 = vld [vmem:[%s11434_s0 + $0xc30] sm:$0xff] }
  0xdc   :  { %6008 = vmatpush3.bf16.msra.mxu1 %v6949_v4  ;;  %v432_v4 = vld [vmem:[%s11434_s0 + $0xcf0] sm:$0xff] }
  0xdd   :  { %6009 = vmatprep.subr.bf16.mxu1 %v6950_v5  ;;  %v26_v5 = vld [vmem:[%s11434_s0 + $0x40] sm:$0xff] }
  0xe0   :  { %6010 = vmatpush3.bf16.msra.mxu1 %v6951_v14 }
  0xe1   :  { %6219 = vmatprep.subr.bf16.mxu1 %v6954_v15  ;;  %v984_v15 = vpack.c.bf16 %v432_v4, %v408_v3  ;;  %v171_v3 = vld [vmem:[%s11434_s0 + $0x4c8] sm:$0xff] }
  0xe2   :  { %3157 = vmatmul.mubr.bf16.gmra.mrb[96].mxu0 %v1078_v16  ;;  %3254 = vmatmul.mubr.bf16.gmra.mrb[96].mxu1 %v888_v17  ;;  %v794_v16 = vpack.c.bf16 %v50_v6, %v26_v5  ;;  %v195_v4 = vld [vmem:[%s11434_s0 + $0x588] sm:$0xff]  ;;  %v6965_v5 = vld [vmem:[%s11433_s1 + $0x318] sm:$0xff]   ;;  %v6966_v6 = vld [vmem:[%s11433_s1 + $0x360] sm:$0xff]  }
  0xe3   :  { %3164 = vmatprep.mubr.bf16.mxu0 %v1103_v18  ;;  %3261 = vmatprep.mubr.bf16.mxu1 %v913_v19 }
  0xea   :  { %3165 = vmatmul.mubr.bf16.gmra.mrb[100].mxu0 %v1102_v28  ;;  %3262 = vmatmul.mubr.bf16.gmra.mrb[100].mxu1 %v912_v29  ;;  %v456_v29 = vld [vmem:[%s11434_s0 + $0xdb0] sm:$0xff] }
  0xeb   :  { %3172 = vmatprep.mubr.bf16.mxu0 %v1127_v30  ;;  %3269 = vmatprep.mubr.bf16.mxu1 %v937_v31  ;;  %v480_v30 = vld [vmem:[%s11434_s0 + $0xe70] sm:$0xff]  ;;  %v74_v31 = vld [vmem:[%s11434_s0 + $0x1c0] sm:$0xff] }
  0xec   :  { %v818_v44 = vpack.c.bf16 %v98_v32, %v74_v31  ;;  %v194_v31 = vld [vmem:[%s11434_s0 + $0x580] sm:$0xff] }
  0xf2   :  { %3173 = vmatmul.mubr.bf16.gmra.mrb[104].mxu0 %v1126_v40  ;;  %3270 = vmatmul.mubr.bf16.gmra.mrb[104].mxu1 %v936_v41 }
  0xf3   :  { %3180 = vmatprep.mubr.bf16.mxu0 %v1151_v42  ;;  %3277 = vmatprep.mubr.bf16.mxu1 %v961_v43  ;;  %v1008_v43 = vpack.c.bf16 %v480_v30, %v456_v29  ;;  %v576_v29 = vld [vmem:[%s11434_s0 + $0x1170] sm:$0xff]  ;;  %v170_v30 = vld [vmem:[%s11434_s0 + $0x4c0] sm:$0xff] }
  0xf5   :  { %v5523_v52 = vpop.f32.mrb[0].mxu1  ;;  %v5451_v53 = vpop.f32.mrb[0].mxu0 }
  0xf6   :  { %v5524_v54 = vpop.f32.mrb[1].mxu1  ;;  %v5452_v57 = vpop.f32.mrb[1].mxu0 }
  0xf7   :  { %v8057_v58 = vadd.f32 %v5524_v54, %v5523_v52  ;;  %v5526_v59 = vpop.f32.mrb[2].mxu1  ;;  %v8059_v62 = vadd.f32 %v5452_v57, %v5451_v53  ;;  %v5454_v63 = vpop.f32.mrb[2].mxu0  ;;  %v6961_v54 = vld [vmem:[%s11433_s1 + $0x310] sm:$0xff]  }
  0xf8   :  { %v5527_v0 = vpop.f32.mrb[3].mxu1  ;;  %v5455_v1 = vpop.f32.mrb[3].mxu0  ;;  %v504_v57 = vld [vmem:[%s11434_s0 + $0xf30] sm:$0xff] }
  0xf9   :  { %v8061_v2 = vadd.f32 %v5527_v0, %v5526_v59  ;;  %v8075_v7 = vadd.f32 %v5455_v1, %v5454_v63  ;;  %v528_v59 = vld [vmem:[%s11434_s0 + $0xff0] sm:$0xff]  ;;  %v553_v0 = vld [vmem:[%s11434_s0 + $0x10b8] sm:$0xff] }
  0xfa   :  { %3181 = vmatmul.mubr.bf16.gmra.mrb[108].mxu0 %v1150_v55  ;;  %3278 = vmatmul.mubr.bf16.gmra.mrb[108].mxu1 %v960_v56  ;;  %v6964_v55 = vld [vmem:[%s11433_s1 + $0x358] sm:$0xff]   ;;  %v1032_v11 = vpack.c.bf16 %v528_v59, %v504_v57  ;;  %v6973_v57 = vld [vmem:[%s11433_s1 + $0x330] sm:$0xff]  }
  0xfb   :  { %3285 = vmatprep.mubr.bf16.mxu1 %v985_v60  ;;  %3382 = vmatprep.mubr.bf16.mxu0 %v795_v61  ;;  %v122_v60 = vld [vmem:[%s11434_s0 + $0x340] sm:$0xff]  ;;  %v577_v1 = vld [vmem:[%s11434_s0 + $0x1178] sm:$0xff] }
  0xfc   :  { %v146_v61 = vld [vmem:[%s11434_s0 + $0x400] sm:$0xff]  ;;  %v6974_v59 = vld [vmem:[%s11433_s1 + $0x378] sm:$0xff]  }
  0xfd   :  { %v5529_v12 = vpop.f32.mrb[4].mxu1  ;;  %v5457_v13 = vpop.f32.mrb[4].mxu0 }
  0xfe   :  { %v5530_v14 = vpop.f32.mrb[5].mxu1  ;;  %v5458_v17 = vpop.f32.mrb[5].mxu0 }
  0xff   :  { %v8089_v18 = vadd.f32 %v5530_v14, %v5529_v12  ;;  %v5532_v19 = vpop.f32.mrb[6].mxu1  ;;  %v8091_v22 = vadd.f32 %v5458_v17, %v5457_v13  ;;  %v5460_v23 = vpop.f32.mrb[6].mxu0  ;;  %v842_v12 = vpack.c.bf16 %v146_v61, %v122_v60  ;;  %v867_v17 = vpack.c.bf16 %v195_v4, %v171_v3  ;;  %v218_v3 = vld [vmem:[%s11434_s0 + $0x640] sm:$0xff] }
 0x100   :  { %v5533_v24 = vpop.f32.mrb[7].mxu1  ;;  %v5461_v25 = vpop.f32.mrb[7].mxu0  ;;  %v242_v4 = vld [vmem:[%s11434_s0 + $0x700] sm:$0xff] }
 0x101   :  { %v8099_v28 = vadd.f32 %v5533_v24, %v5532_v19  ;;  %v8113_v33 = vadd.f32 %v5461_v25, %v5460_v23  ;;  %v6968_v24 = vld [vmem:[%s11433_s1 + $0x320] sm:$0xff]   ;;  %v6970_v25 = vld [vmem:[%s11433_s1 + $0x368] sm:$0xff]  }
 0x102   :  { %3286 = vmatmul.mubr.bf16.gmra.mrb[112].mxu1 %v984_v15  ;;  %3383 = vmatmul.mubr.bf16.vlgmr.msra.gmra.mrb[112].mxu0 %v794_v16  ;;  %v1057_v16 = vpack.c.bf16 %v577_v1, %v553_v0  ;;  %v600_v0 = vld [vmem:[%s11434_s0 + $0x1230] sm:$0xff] }
 0x103   :  { %3293 = vmatprep.mubr.bf16.mxu1 %v1009_v20  ;;  %3390 = vmatprep.mubr.bf16.mxu0 %v819_v21  ;;  %v624_v1 = vld [vmem:[%s11434_s0 + $0x12f0] sm:$0xff] }
 0x104   :  { %6108 = vmatpush3.bf16.msra.mxu0 %v6953_v26 }
 0x105   :  { %v5535_v40 = vpop.f32.mrb[8].mxu1  ;;  %v5463_v41 = vpop.f32.mrb[8].mxu0  ;;  %6109 = vmatprep.subr.bf16.mxu0 %v6956_v27  ;;  %v552_v27 = vld [vmem:[%s11434_s0 + $0x10b0] sm:$0xff] }
 0x106   :  { %v5536_v42 = vpop.f32.mrb[9].mxu1  ;;  %v5464_v45 = vpop.f32.mrb[9].mxu0 }
 0x107   :  { %v8133_v46 = vadd.f32 %v5536_v42, %v5535_v40  ;;  %v5538_v47 = vpop.f32.mrb[10].mxu1  ;;  %v8135_v50 = vadd.f32 %v5464_v45, %v5463_v41  ;;  %v5466_v51 = vpop.f32.mrb[10].mxu0 }
 0x108   :  { %v5539_v52 = vpop.f32.mrb[11].mxu1  ;;  %v5467_v53 = vpop.f32.mrb[11].mxu0  ;;  %6110 = vmatpush3.bf16.msra.mxu0 %v6957_v38  ;;  %v6971_v38 = vld [vmem:[%s11433_s1 + $0x328] sm:$0xff]  }
 0x109   :  { %v8143_v56 = vadd.f32 %v5539_v52, %v5538_v47  ;;  %v8157_v63 = vadd.f32 %v5467_v53, %v5466_v51  ;;  %6111 = vmatprep.subr.bf16.mxu0 %v6960_v39  ;;  %v6972_v39 = vld [vmem:[%s11433_s1 + $0x370] sm:$0xff]   ;;  %v891_v51 = vpack.c.bf16 %v243_v37, %v219_v36  ;;  %v266_v37 = vld [vmem:[%s11434_s0 + $0x7c0] sm:$0xff] }
 0x10a   :  { %3294 = vmatmul.mubr.bf16.gmra.mrb[116].mxu1 %v1008_v43  ;;  %3391 = vmatmul.mubr.bf16.gmra.mrb[116].mxu0 %v818_v44  ;;  %v1056_v43 = vpack.c.bf16 %v576_v29, %v552_v27  ;;  %v866_v44 = vpack.c.bf16 %v194_v31, %v170_v30  ;;  %v672_v36 = vld [vmem:[%s11434_s0 + $0x1470] sm:$0xff] }
 0x10b   :  { %3301 = vmatprep.mubr.bf16.mxu1 %v1033_v48  ;;  %3398 = vmatprep.mubr.bf16.mxu0 %v843_v49  ;;  %v1081_v49 = vpack.c.bf16 %v625_v35, %v601_v34  ;;  %v648_v35 = vld [vmem:[%s11434_s0 + $0x13b0] sm:$0xff] }
 0x10c   :  { %6112 = vmatpush3.bf16.msra.mxu0 %v6961_v54 }
 0x10d   :  { %v5541_v8 = vpop.f32.mrb[12].mxu1  ;;  %v5469_v9 = vpop.f32.mrb[12].mxu0  ;;  %6113 = vmatprep.subr.bf16.mxu0 %v6964_v55 }
 0x10e   :  { %v5542_v10 = vpop.f32.mrb[13].mxu1  ;;  %v5470_v13 = vpop.f32.mrb[13].mxu0 }
 0x10f   :  { %v8177_v14 = vadd.f32 %v5542_v10, %v5541_v8  ;;  %v5544_v15 = vpop.f32.mrb[14].mxu1  ;;  %v8179_v19 = vadd.f32 %v5470_v13, %v5469_v9  ;;  %v5472_v20 = vpop.f32.mrb[14].mxu0  ;;  %v267_v8 = vld [vmem:[%s11434_s0 + $0x7c8] sm:$0xff]  ;;  %v6975_v10 = vld [vmem:[%s11433_s1 + $0x338] sm:$0xff]  }
 0x110   :  { %v5545_v21 = vpop.f32.mrb[15].mxu1  ;;  %v5473_v23 = vpop.f32.mrb[15].mxu0  ;;  %6114 = vmatpush3.bf16.msra.mxu0 %v6965_v5  ;;  %v291_v9 = vld [vmem:[%s11434_s0 + $0x888] sm:$0xff] }
 0x111   :  { %v8187_v26 = vadd.f32 %v5545_v21, %v5544_v15  ;;  %v8201_v32 = vadd.f32 %v5473_v23, %v5472_v20  ;;  %6115 = vmatprep.subr.bf16.mxu0 %v6966_v6  ;;  %v673_v6 = vld [vmem:[%s11434_s0 + $0x1478] sm:$0xff] }
 0x112   :  { %3302 = vmatmul.mubr.bf16.gmra.mrb[120].mxu1 %v1032_v11  ;;  %3399 = vmatmul.mubr.bf16.gmra.mrb[120].mxu0 %v842_v12 }
 0x113   :  { %3309 = vmatprep.mubr.bf16.mxu1 %v1057_v16  ;;  %3406 = vmatprep.mubr.bf16.mxu0 %v867_v17  ;;  %v1080_v16 = vpack.c.bf16 %v624_v1, %v600_v0  ;;  %v890_v17 = vpack.c.bf16 %v242_v4, %v218_v3  ;;  %v696_v4 = vld [vmem:[%s11434_s0 + $0x1530] sm:$0xff] }
 0x114   :  { %6116 = vmatpush3.bf16.msra.mxu0 %v6968_v24 }
 0x115   :  { %v5563_v40 = vpop.f32.mrb[16].mxu1  ;;  %v5475_v41 = vpop.f32.mrb[16].mxu0  ;;  %6117 = vmatprep.subr.bf16.mxu0 %v6970_v25  ;;  %v915_v25 = vpack.c.bf16 %v291_v9, %v267_v8  ;;  %v338_v8 = vld [vmem:[%s11434_s0 + $0xa00] sm:$0xff] }
 0x116   :  { %v5564_v42 = vpop.f32.mrb[17].mxu1  ;;  %v5476_v45 = vpop.f32.mrb[17].mxu0 }
 0x117   :  { %v5565_v47 = vadd.f32 %v5564_v42, %v5563_v40  ;;  %v5566_v48 = vpop.f32.mrb[18].mxu1  ;;  %v8221_v52 = vadd.f32 %v5476_v45, %v5475_v41  ;;  %v5478_v53 = vpop.f32.mrb[18].mxu0  ;;  %v721_v40 = vld [vmem:[%s11434_s0 + $0x15f8] sm:$0xff]  ;;  %v315_v42 = vld [vmem:[%s11434_s0 + $0x948] sm:$0xff] }
 0x118   :  { %v5567_v54 = vpop.f32.mrb[19].mxu1  ;;  %v5479_v55 = vpop.f32.mrb[19].mxu0  ;;  %6118 = vmatpush3.bf16.msra.mxu0 %v6971_v38  ;;  %v290_v38 = vld [vmem:[%s11434_s0 + $0x880] sm:$0xff] }
 0x119   :  { %v8230_v60 = vadd.f32 %v5565_v47, %v8059_v62  ;;  %v5568_v61 = vadd.f32 %v5567_v54, %v5566_v48  ;;  %v8244_v5 = vadd.f32 %v5479_v55, %v5478_v53  ;;  %6119 = vmatprep.subr.bf16.mxu0 %v6972_v39  ;;  %v649_v62 = vld [vmem:[%s11434_s0 + $0x13b8] sm:$0xff]  ;;  %v1104_v48 = vpack.c.bf16 %v672_v36, %v648_v35 }
 0x11a   :  { %3310 = vmatmul.mubr.bf16.gmra.mrb[124].mxu1 %v1056_v43  ;;  %3407 = vmatmul.mubr.bf16.gmra.mrb[124].mxu0 %v866_v44  ;;  %v1105_v24 = vpack.c.bf16 %v673_v6, %v649_v62  ;;  %v339_v43 = vld [vmem:[%s11434_s0 + $0xa08] sm:$0xff]  ;;  %v720_v62 = vld [vmem:[%s11434_s0 + $0x15f0] sm:$0xff]  ;;  %v314_v6 = vld [vmem:[%s11434_s0 + $0x940] sm:$0xff] }
 0x11b   :  { %v8262_v11 = vadd.f32 %v5568_v61, %v8075_v7  ;;  %3317 = vmatprep.mubr.bf16.mxu1 %v1081_v49  ;;  %3414 = vmatprep.mubr.bf16.mxu0 %v891_v51  ;;  %v914_v49 = vpack.c.bf16 %v290_v38, %v266_v37  ;;  %v939_v55 = vpack.c.bf16 %v339_v43, %v315_v42  ;;  %v362_v42 = vld [vmem:[%s11434_s0 + $0xac0] sm:$0xff] }
 0x11c   :  { %6120 = vmatpush3.bf16.msra.mxu0 %v6973_v57  ;;  %v386_v43 = vld [vmem:[%s11434_s0 + $0xb80] sm:$0xff] }
 0x11d   :  { %v5569_v12 = vpop.f32.mrb[20].mxu1  ;;  %v5481_v13 = vpop.f32.mrb[20].mxu0  ;;  %6121 = vmatprep.subr.bf16.mxu0 %v6974_v59 }
 0x11e   :  { %v5570_v15 = vpop.f32.mrb[21].mxu1  ;;  %v5482_v20 = vpop.f32.mrb[21].mxu0 }
 0x11f   :  { %v5571_v21 = vadd.f32 %v5570_v15, %v5569_v12  ;;  %v5572_v23 = vpop.f32.mrb[22].mxu1  ;;  %v8264_v27 = vadd.f32 %v5482_v20, %v5481_v13  ;;  %v5484_v29 = vpop.f32.mrb[22].mxu0  ;;  %v363_v12 = vld [vmem:[%s11434_s0 + $0xac8] sm:$0xff] }
 0x120   :  { %v5573_v30 = vpop.f32.mrb[23].mxu1  ;;  %v5485_v7 = vpop.f32.mrb[23].mxu0  ;;  %6122 = vmatpush3.bf16.msra.mxu0 %v6975_v10  ;;  %v769_v10 = vld [vmem:[%s11434_s0 + $0x1778] sm:$0xff]  ;;  %v387_v13 = vld [vmem:[%s11434_s0 + $0xb88] sm:$0xff] }
 0x121   :  { %v8267_v31 = vadd.f32 %v5571_v21, %v8091_v22  ;;  %v5574_v34 = vadd.f32 %v5573_v30, %v5572_v23  ;;  %v8281_v39 = vadd.f32 %v5485_v7, %v5484_v29  ;;  %v697_v22 = vld [vmem:[%s11434_s0 + $0x1538] sm:$0xff]  ;;  %v1128_v21 = vpack.c.bf16 %v720_v62, %v696_v4 }
 0x122   :  { %3318 = vmatmul.mubr.bf16.gmra.mrb[128].mxu1 %v1080_v16  ;;  %3415 = vmatmul.mubr.bf16.gmra.mrb[128].mxu0 %v890_v17  ;;  %v938_v23 = vpack.c.bf16 %v338_v8, %v314_v6  ;;  %v963_v7 = vpack.c.bf16 %v387_v13, %v363_v12  ;;  %v410_v13 = vld [vmem:[%s11434_s0 + $0xc40] sm:$0xff] }
 0x123   :  { %v8290_v41 = vadd.f32 %v5574_v34, %v8113_v33  ;;  %3325 = vmatprep.mubr.bf16.mxu1 %v1105_v24  ;;  %3422 = vmatprep.mubr.bf16.mxu0 %v915_v25  ;;  %v1129_v33 = vpack.c.bf16 %v721_v40, %v697_v22  ;;  %v744_v22 = vld [vmem:[%s11434_s0 + $0x16b0] sm:$0xff] }
 0x124   :  { %v768_v40 = vld [vmem:[%s11434_s0 + $0x1770] sm:$0xff] }
 0x125   :  { %v5575_v44 = vpop.f32.mrb[24].mxu1  ;;  %v5487_v45 = vpop.f32.mrb[24].mxu0 }
 0x126   :  { %v5576_v47 = vpop.f32.mrb[25].mxu1  ;;  %v5488_v51 = vpop.f32.mrb[25].mxu0 }
 0x127   :  { %v5577_v53 = vadd.f32 %v5576_v47, %v5575_v44  ;;  %v5578_v54 = vpop.f32.mrb[26].mxu1  ;;  %v8298_v57 = vadd.f32 %v5488_v51, %v5487_v45  ;;  %v5490_v59 = vpop.f32.mrb[26].mxu0  ;;  %v435_v45 = vld [vmem:[%s11434_s0 + $0xd08] sm:$0xff] }
 0x128   :  { %v5579_v61 = vpop.f32.mrb[27].mxu1  ;;  %v5491_v0 = vpop.f32.mrb[27].mxu0 }
 0x129   :  { %v8301_v1 = vadd.f32 %v5577_v53, %v8135_v50  ;;  %v5580_v3 = vadd.f32 %v5579_v61, %v5578_v54  ;;  %v8315_v9 = vadd.f32 %v5491_v0, %v5490_v59  ;;  %v745_v50 = vld [vmem:[%s11434_s0 + $0x16b8] sm:$0xff] }
 0x12a   :  { %3326 = vmatmul.mubr.bf16.gmra.mrb[132].mxu1 %v1104_v48  ;;  %3423 = vmatmul.mubr.bf16.gmra.mrb[132].mxu0 %v914_v49  ;;  %v1153_v30 = vpack.c.bf16 %v769_v10, %v745_v50  ;;  %v29_v48 = vld [vmem:[%s11434_s0 + $0x58] sm:$0xff] }
 0x12b   :  { %v8330_v15 = vadd.f32 %v5580_v3, %v8157_v63  ;;  %3333 = vmatprep.mubr.bf16.mxu1 %v1129_v33  ;;  %3430 = vmatprep.mubr.bf16.mxu0 %v939_v55  ;;  %v53_v49 = vld [vmem:[%s11434_s0 + $0x118] sm:$0xff]  ;;  %v1152_v33 = vpack.c.bf16 %v768_v40, %v744_v22  ;;  %v962_v55 = vpack.c.bf16 %v386_v43, %v362_v42  ;;  %v6955_v22 = vld [vmem:[%s11433_s1 + $0x380] sm:$0xff]  }
 0x12c   :  { %v797_v3 = vpack.c.bf16 %v53_v49, %v29_v48  ;;  %v6958_v49 = vld [vmem:[%s11433_s1 + $0x3c8] sm:$0xff]  }
 0x12d   :  { %v5581_v16 = vpop.f32.mrb[28].mxu1  ;;  %v5493_v17 = vpop.f32.mrb[28].mxu0 }
 0x12e   :  { %v5582_v20 = vpop.f32.mrb[29].mxu1  ;;  %v5494_v24 = vpop.f32.mrb[29].mxu0 }
 0x12f   :  { %v5583_v25 = vadd.f32 %v5582_v20, %v5581_v16  ;;  %v5584_v29 = vpop.f32.mrb[30].mxu1  ;;  %v8332_v34 = vadd.f32 %v5494_v24, %v5493_v17  ;;  %v5496_v35 = vpop.f32.mrb[30].mxu0  ;;  %v434_v17 = vld [vmem:[%s11434_s0 + $0xd00] sm:$0xff]  ;;  %v52_v20 = vld [vmem:[%s11434_s0 + $0x110] sm:$0xff] }
 0x130   :  { %v5585_v36 = vpop.f32.mrb[31].mxu1  ;;  %v5497_v37 = vpop.f32.mrb[31].mxu0 }
 0x131   :  { %v8335_v63 = vadd.f32 %v5583_v25, %v8179_v19  ;;  %v5586_v38 = vadd.f32 %v5585_v36, %v5584_v29  ;;  %v8349_v44 = vadd.f32 %v5497_v37, %v5496_v35  ;;  %v411_v19 = vld [vmem:[%s11434_s0 + $0xc48] sm:$0xff]  ;;  %v77_v25 = vld [vmem:[%s11434_s0 + $0x1d8] sm:$0xff] }
 0x132   :  { %3334 = vmatmul.mubr.bf16.gmra.mrb[136].mxu1 %v1128_v21  ;;  %3431 = vmatmul.mubr.bf16.gmra.mrb[136].mxu0 %v938_v23  ;;  %v459_v21 = vld [vmem:[%s11434_s0 + $0xdc8] sm:$0xff]  ;;  %v101_v29 = vld [vmem:[%s11434_s0 + $0x298] sm:$0xff] }
 0x133   :  { %v8358_v47 = vadd.f32 %v5586_v38, %v8201_v32  ;;  %3341 = vmatprep.mubr.bf16.mxu1 %v1153_v30  ;;  %3438 = vmatprep.mubr.bf16.mxu0 %v963_v7  ;;  %v987_v32 = vpack.c.bf16 %v435_v45, %v411_v19  ;;  %v986_v7 = vpack.c.bf16 %v434_v17, %v410_v13 }
 0x134   :  { %v821_v45 = vpack.c.bf16 %v101_v29, %v77_v25 }
 0x135   :  { %v5587_v51 = vpop.f32.mrb[32].mxu1  ;;  %v5499_v53 = vpop.f32.mrb[32].mxu0 }
 0x136   :  { %v5588_v54 = vpop.f32.mrb[33].mxu1  ;;  %v5500_v59 = vpop.f32.mrb[33].mxu0 }
 0x137   :  { %v5589_v61 = vadd.f32 %v5588_v54, %v5587_v51  ;;  %v5590_v0 = vpop.f32.mrb[34].mxu1  ;;  %v8366_v4 = vadd.f32 %v5500_v59, %v5499_v53  ;;  %v5502_v62 = vpop.f32.mrb[34].mxu0  ;;  %v458_v54 = vld [vmem:[%s11434_s0 + $0xdc0] sm:$0xff]  ;;  %v76_v59 = vld [vmem:[%s11434_s0 + $0x1d0] sm:$0xff] }
 0x138   :  { %v5591_v6 = vpop.f32.mrb[35].mxu1  ;;  %v5503_v8 = vpop.f32.mrb[35].mxu0 }
 0x139   :  { %v8369_v50 = vadd.f32 %v5589_v61, %v8221_v52  ;;  %v5592_v10 = vadd.f32 %v5591_v6, %v5590_v0  ;;  %v8371_v12 = vadd.f32 %v5503_v8, %v5502_v62  ;;  %v28_v52 = vld [vmem:[%s11434_s0 + $0x50] sm:$0xff]  ;;  %v507_v61 = vld [vmem:[%s11434_s0 + $0xf48] sm:$0xff]  ;;  %v6984_v62 = vld [vmem:[%s11433_s1 + $0x440] sm:$0xff]  }
 0x13a   :  { %3342 = vmatmul.mubr.bf16.gmra.mrb[140].mxu1 %v1152_v33  ;;  %3439 = vmatmul.mubr.bf16.gmra.mrb[140].mxu0 %v962_v55  ;;  %v796_v35 = vpack.c.bf16 %v52_v20, %v28_v52  ;;  %v482_v33 = vld [vmem:[%s11434_s0 + $0xe80] sm:$0xff]  ;;  %v149_v6 = vld [vmem:[%s11434_s0 + $0x418] sm:$0xff]  ;;  %v6962_v8 = vld [vmem:[%s11433_s1 + $0x3d0] sm:$0xff]  }
 0x13b   :  { %v8377_v16 = vadd.f32 %v5592_v10, %v8244_v5  ;;  %3446 = vmatprep.mubr.bf16.mxu0 %v987_v32  ;;  %3543 = vmatprep.mubr.bf16.mxu1 %v797_v3  ;;  %v483_v5 = vld [vmem:[%s11434_s0 + $0xe88] sm:$0xff]  ;;  %v1010_v52 = vpack.c.bf16 %v482_v33, %v458_v54  ;;  %v173_v54 = vld [vmem:[%s11434_s0 + $0x4d8] sm:$0xff] }
 0x13c   :  { %v1011_v40 = vpack.c.bf16 %v483_v5, %v459_v21  ;;  %v531_v32 = vld [vmem:[%s11434_s0 + $0x1008] sm:$0xff]  ;;  %6331 = vmatprep.subr.bf16.mxu0 %v6984_v62  ;;  %v6969_v33 = vld [vmem:[%s11433_s1 + $0x398] sm:$0xff]  }
 0x13d   :  { %v5593_v23 = vpop.f32.mrb[36].mxu1  ;;  %v5505_v24 = vpop.f32.mrb[36].mxu0  ;;  %v6959_v3 = vld [vmem:[%s11433_s1 + $0x388] sm:$0xff]   ;;  %v1035_v29 = vpack.c.bf16 %v531_v32, %v507_v61  ;;  %v6976_v61 = vld [vmem:[%s11433_s1 + $0x3e0] sm:$0xff]  }
 0x13e   :  { %v5594_v30 = vpop.f32.mrb[37].mxu1  ;;  %v5506_v36 = vpop.f32.mrb[37].mxu0 }
 0x13f   :  { %v5595_v37 = vadd.f32 %v5594_v30, %v5593_v23  ;;  %v5596_v38 = vpop.f32.mrb[38].mxu1  ;;  %v8403_v42 = vadd.f32 %v5506_v36, %v5505_v24  ;;  %v5508_v43 = vpop.f32.mrb[38].mxu0  ;;  %v6963_v36 = vld [vmem:[%s11433_s1 + $0x390] sm:$0xff]  }
 0x140   :  { %v5597_v19 = vpop.f32.mrb[39].mxu1  ;;  %v5509_v48 = vpop.f32.mrb[39].mxu0 }
 0x141   :  { %v8409_v51 = vadd.f32 %v5595_v37, %v8264_v27  ;;  %v5598_v53 = vadd.f32 %v5597_v19, %v5596_v38  ;;  %v8417_v55 = vadd.f32 %v5509_v48, %v5508_v43  ;;  %v100_v27 = vld [vmem:[%s11434_s0 + $0x290] sm:$0xff]  ;;  %v506_v43 = vld [vmem:[%s11434_s0 + $0xf40] sm:$0xff] }
 0x142   :  { %3447 = vmatmul.mubr.bf16.gmra.mrb[144].mxu0 %v986_v7  ;;  %3544 = vmatmul.mubr.bf16.vlgmr.msra.gmra.mrb[144].mxu1 %v796_v35  ;;  %v820_v20 = vpack.c.bf16 %v100_v27, %v76_v59  ;;  %v530_v19 = vld [vmem:[%s11434_s0 + $0x1000] sm:$0xff]  ;;  %v148_v48 = vld [vmem:[%s11434_s0 + $0x410] sm:$0xff] }
 0x143   :  { %v8429_v0 = vadd.f32 %v5598_v53, %v8281_v39  ;;  %6220 = vmatpush3.bf16.msra.mxu1 %v6955_v22  ;;  %3454 = vmatprep.mubr.bf16.mxu0 %v1011_v40  ;;  %v125_v39 = vld [vmem:[%s11434_s0 + $0x358] sm:$0xff]  ;;  %v579_v53 = vld [vmem:[%s11434_s0 + $0x1188] sm:$0xff]  ;;  %v1034_v62 = vpack.c.bf16 %v530_v19, %v506_v43 }
 0x144   :  { %3551 = vmatprep.mubr.bf16.mxu1 %v821_v45  ;;  %6221 = vmatprep.subr.bf16.mxu1 %v6958_v49  ;;  %v845_v30 = vpack.c.bf16 %v149_v6, %v125_v39  ;;  %v6967_v40 = vld [vmem:[%s11433_s1 + $0x3d8] sm:$0xff]   ;;  %v555_v49 = vld [vmem:[%s11434_s0 + $0x10c8] sm:$0xff] }
 0x145   :  { %v5599_v10 = vpop.f32.mrb[40].mxu1  ;;  %v5511_v13 = vpop.f32.mrb[40].mxu0  ;;  %v627_v43 = vld [vmem:[%s11434_s0 + $0x1308] sm:$0xff]  ;;  %v221_v19 = vld [vmem:[%s11434_s0 + $0x658] sm:$0xff] }
 0x146   :  { %v5600_v17 = vpop.f32.mrb[41].mxu1  ;;  %v5512_v21 = vpop.f32.mrb[41].mxu0 }
 0x147   :  { %v5601_v5 = vadd.f32 %v5600_v17, %v5599_v10  ;;  %v5602_v23 = vpop.f32.mrb[42].mxu1  ;;  %v8449_v24 = vadd.f32 %v5512_v21, %v5511_v13  ;;  %v5514_v25 = vpop.f32.mrb[42].mxu0  ;;  %6222 = vmatpush3.bf16.msra.mxu1 %v6959_v3  ;;  %v1059_v17 = vpack.c.bf16 %v579_v53, %v555_v49  ;;  %v6980_v53 = vld [vmem:[%s11433_s1 + $0x3f0] sm:$0xff]  }
 0x148   :  { %v5603_v7 = vpop.f32.mrb[43].mxu1  ;;  %v5515_v35 = vpop.f32.mrb[43].mxu0  ;;  %6223 = vmatprep.subr.bf16.mxu1 %v6962_v8 }
 0x149   :  { %v8455_v37 = vadd.f32 %v5601_v5, %v8298_v57  ;;  %v5604_v38 = vadd.f32 %v5603_v7, %v5602_v23  ;;  %v8457_v22 = vadd.f32 %v5515_v35, %v5514_v25  ;;  %v124_v57 = vld [vmem:[%s11434_s0 + $0x350] sm:$0xff]  ;;  %v6977_v5 = vld [vmem:[%s11433_s1 + $0x3a0] sm:$0xff]  }
 0x14a   :  { %3455 = vmatmul.mubr.bf16.gmra.mrb[148].mxu0 %v1010_v52  ;;  %3552 = vmatmul.mubr.bf16.gmra.mrb[148].mxu1 %v820_v20  ;;  %v844_v39 = vpack.c.bf16 %v148_v48, %v124_v57  ;;  %v554_v7 = vld [vmem:[%s11434_s0 + $0x10c0] sm:$0xff]  ;;  %v6979_v57 = vld [vmem:[%s11433_s1 + $0x3a8] sm:$0xff]  }
 0x14b   :  { %v8472_v45 = vadd.f32 %v5604_v38, %v8315_v9  ;;  %3462 = vmatprep.mubr.bf16.mxu0 %v1035_v29  ;;  %3559 = vmatprep.mubr.bf16.mxu1 %v845_v30  ;;  %v197_v9 = vld [vmem:[%s11434_s0 + $0x598] sm:$0xff]  ;;  %v6978_v30 = vld [vmem:[%s11433_s1 + $0x3e8] sm:$0xff]   ;;  %v578_v35 = vld [vmem:[%s11434_s0 + $0x1180] sm:$0xff] }
 0x14c   :  { %6224 = vmatpush3.bf16.msra.mxu1 %v6963_v36  ;;  %v869_v52 = vpack.c.bf16 %v197_v9, %v173_v54  ;;  %v196_v38 = vld [vmem:[%s11434_s0 + $0x590] sm:$0xff] }
 0x14d   :  { %v5605_v59 = vpop.f32.mrb[44].mxu1  ;;  %v5517_v27 = vpop.f32.mrb[44].mxu0  ;;  %6225 = vmatprep.subr.bf16.mxu1 %v6967_v40  ;;  %v603_v40 = vld [vmem:[%s11434_s0 + $0x1248] sm:$0xff] }
 0x14e   :  { %v5606_v32 = vpop.f32.mrb[45].mxu1  ;;  %v5518_v3 = vpop.f32.mrb[45].mxu0 }
 0x14f   :  { %v5607_v6 = vadd.f32 %v5606_v32, %v5605_v59  ;;  %v5608_v8 = vpop.f32.mrb[46].mxu1  ;;  %v8495_v10 = vadd.f32 %v5518_v3, %v5517_v27  ;;  %v5520_v13 = vpop.f32.mrb[46].mxu0 }
 0x150   :  { %v5609_v20 = vpop.f32.mrb[47].mxu1  ;;  %v5521_v21 = vpop.f32.mrb[47].mxu0  ;;  %6226 = vmatpush3.bf16.msra.mxu1 %v6969_v33  ;;  %v1058_v33 = vpack.c.bf16 %v578_v35, %v554_v7  ;;  %v244_v35 = vld [vmem:[%s11434_s0 + $0x710] sm:$0xff] }
 0x151   :  { %v8501_v23 = vadd.f32 %v5607_v6, %v8332_v34  ;;  %v5610_v25 = vadd.f32 %v5609_v20, %v5608_v8  ;;  %v8503_v29 = vadd.f32 %v5521_v21, %v5520_v13  ;;  %6227 = vmatprep.subr.bf16.mxu1 %v6976_v61  ;;  %v172_v34 = vld [vmem:[%s11434_s0 + $0x4d0] sm:$0xff] }
 0x152   :  { %3463 = vmatmul.mubr.bf16.gmra.mrb[152].mxu0 %v1034_v62  ;;  %3560 = vmatmul.mubr.bf16.gmra.mrb[152].mxu1 %v844_v39  ;;  %v868_v59 = vpack.c.bf16 %v196_v38, %v172_v34  ;;  %v1083_v62 = vpack.c.bf16 %v627_v43, %v603_v40  ;;  %v6981_v13 = vld [vmem:[%s11433_s1 + $0x3b0] sm:$0xff]   ;;  %v651_v34 = vld [vmem:[%s11434_s0 + $0x13c8] sm:$0xff]  ;;  %v6983_v40 = vld [vmem:[%s11433_s1 + $0x3b8] sm:$0xff]  }
 0x153   :  { %v8518_v36 = vadd.f32 %v5610_v25, %v8349_v44  ;;  %3470 = vmatprep.mubr.bf16.mxu0 %v1059_v17  ;;  %3567 = vmatprep.mubr.bf16.mxu1 %v869_v52  ;;  %v245_v44 = vld [vmem:[%s11434_s0 + $0x718] sm:$0xff]  ;;  %v602_v25 = vld [vmem:[%s11434_s0 + $0x1240] sm:$0xff]  ;;  %v675_v38 = vld [vmem:[%s11434_s0 + $0x1488] sm:$0xff] }
 0x154   :  { %6228 = vmatpush3.bf16.msra.mxu1 %v6977_v5  ;;  %v893_v39 = vpack.c.bf16 %v245_v44, %v221_v19  ;;  %v6982_v5 = vld [vmem:[%s11433_s1 + $0x3f8] sm:$0xff]   ;;  %v6986_v44 = vld [vmem:[%s11433_s1 + $0x4c0] sm:$0xff]  }
 0x155   :  { %v5611_v48 = vpop.f32.mrb[48].mxu1  ;;  %v5675_v49 = vpop.f32.mrb[48].mxu0  ;;  %6229 = vmatprep.subr.bf16.mxu1 %v6978_v30 }
 0x156   :  { %v5612_v54 = vpop.f32.mrb[49].mxu1  ;;  %v5676_v9 = vpop.f32.mrb[49].mxu0 }
 0x157   :  { %v5613_v27 = vadd.f32 %v5612_v54, %v5611_v48  ;;  %v5677_v61 = vadd.f32 %v5676_v9, %v5675_v49  ;;  %v5614_v32 = vpop.f32.mrb[50].mxu1  ;;  %v5678_v3 = vpop.f32.mrb[50].mxu0 }
 0x158   :  { %v5615_v6 = vpop.f32.mrb[51].mxu1  ;;  %v5679_v8 = vpop.f32.mrb[51].mxu0  ;;  %6230 = vmatpush3.bf16.msra.mxu1 %v6979_v57 }
 0x159   :  { %v8545_v17 = vadd.f32 %v5613_v27, %v8366_v4  ;;  %v8548_v52 = vadd.f32 %v5677_v61, %v8230_v60  ;;  %v5616_v20 = vadd.f32 %v5615_v6, %v5614_v32  ;;  %v5680_v21 = vadd.f32 %v5679_v8, %v5678_v3  ;;  %6231 = vmatprep.subr.bf16.mxu1 %v6980_v53  ;;  %v626_v4 = vld [vmem:[%s11434_s0 + $0x1300] sm:$0xff]  ;;  %v220_v60 = vld [vmem:[%s11434_s0 + $0x650] sm:$0xff] }
 0x15a   :  { %3471 = vmatmul.mubr.bf16.gmra.mrb[156].mxu0 %v1058_v33  ;;  %3568 = vmatmul.mubr.bf16.gmra.mrb[156].mxu1 %v868_v59  ;;  %v1082_v49 = vpack.c.bf16 %v626_v4, %v602_v25  ;;  %v892_v53 = vpack.c.bf16 %v244_v35, %v220_v60  ;;  %v1107_v27 = vpack.c.bf16 %v675_v38, %v651_v34  ;;  %v699_v25 = vld [vmem:[%s11434_s0 + $0x1548] sm:$0xff]  ;;  %v341_v4 = vld [vmem:[%s11434_s0 + $0xa18] sm:$0xff] }
 0x15b   :  { %v8563_v30 = vadd.f32 %v5616_v20, %v8371_v12  ;;  %v8566_v7 = vadd.f32 %v5680_v21, %v8262_v11  ;;  %3478 = vmatprep.mubr.bf16.mxu0 %v1083_v62  ;;  %3575 = vmatprep.mubr.bf16.mxu1 %v893_v39  ;;  %v269_v12 = vld [vmem:[%s11434_s0 + $0x7d8] sm:$0xff]  ;;  %v674_v20 = vld [vmem:[%s11434_s0 + $0x1480] sm:$0xff] }
 0x15c   :  { %v293_v11 = vld [vmem:[%s11434_s0 + $0x898] sm:$0xff]  ;;  %6232 = vmatpush3.bf16.msra.mxu1 %v6981_v13  ;;  %v650_v13 = vld [vmem:[%s11434_s0 + $0x13c0] sm:$0xff] }
 0x15d   :  { %v5617_v43 = vpop.f32.mrb[52].mxu1  ;;  %v5681_v19 = vpop.f32.mrb[52].mxu0  ;;  %6233 = vmatprep.subr.bf16.mxu1 %v6982_v5  ;;  %v917_v61 = vpack.c.bf16 %v293_v11, %v269_v12  ;;  %v292_v5 = vld [vmem:[%s11434_s0 + $0x890] sm:$0xff]  ;;  %v1106_v12 = vpack.c.bf16 %v674_v20, %v650_v13 }
 0x15e   :  { %v5618_v57 = vpop.f32.mrb[53].mxu1  ;;  %v5682_v48 = vpop.f32.mrb[53].mxu0 }
 0x15f   :  { %v5619_v54 = vadd.f32 %v5618_v57, %v5617_v43  ;;  %v5683_v9 = vadd.f32 %v5682_v48, %v5681_v19  ;;  %v5620_v33 = vpop.f32.mrb[54].mxu1  ;;  %v5684_v59 = vpop.f32.mrb[54].mxu0 }
 0x160   :  { %v5621_v32 = vpop.f32.mrb[55].mxu1  ;;  %v5685_v3 = vpop.f32.mrb[55].mxu0  ;;  %6234 = vmatpush3.bf16.msra.mxu1 %v6983_v40 }
 0x161   :  { %v8590_v62 = vadd.f32 %v5619_v54, %v8403_v42  ;;  %v8593_v39 = vadd.f32 %v5683_v9, %v8267_v31  ;;  %v5622_v6 = vadd.f32 %v5621_v32, %v5620_v33  ;;  %v5686_v8 = vadd.f32 %v5685_v3, %v5684_v59  ;;  %6443 = vmatprep.subr.bf16.mxu1 %v6986_v44  ;;  %v268_v31 = vld [vmem:[%s11434_s0 + $0x7d0] sm:$0xff] }
 0x162   :  { %3479 = vmatmul.mubr.bf16.gmra.mrb[160].mxu0 %v1082_v49  ;;  %3576 = vmatmul.mubr.bf16.gmra.mrb[160].mxu1 %v892_v53  ;;  %v916_v11 = vpack.c.bf16 %v292_v5, %v268_v31  ;;  %v340_v3 = vld [vmem:[%s11434_s0 + $0xa10] sm:$0xff] }
 0x163   :  { %v8602_v21 = vadd.f32 %v5622_v6, %v8417_v55  ;;  %v8605_v42 = vadd.f32 %v5686_v8, %v8290_v41  ;;  %3486 = vmatprep.mubr.bf16.mxu0 %v1107_v27  ;;  %3583 = vmatprep.mubr.bf16.mxu1 %v917_v61  ;;  %v723_v55 = vld [vmem:[%s11434_s0 + $0x1608] sm:$0xff]  ;;  %v317_v41 = vld [vmem:[%s11434_s0 + $0x958] sm:$0xff]  ;;  %v698_v27 = vld [vmem:[%s11434_s0 + $0x1540] sm:$0xff] }
 0x164   :  { %v1131_v57 = vpack.c.bf16 %v723_v55, %v699_v25  ;;  %v941_v48 = vpack.c.bf16 %v341_v4, %v317_v41  ;;  %v722_v61 = vld [vmem:[%s11434_s0 + $0x1600] sm:$0xff]  ;;  %v747_v6 = vld [vmem:[%s11434_s0 + $0x16c8] sm:$0xff]  ;;  %v389_v8 = vld [vmem:[%s11434_s0 + $0xb98] sm:$0xff] }
 0x165   :  { %v5623_v60 = vpop.f32.mrb[56].mxu1  ;;  %v5687_v35 = vpop.f32.mrb[56].mxu0  ;;  %v1130_v25 = vpack.c.bf16 %v722_v61, %v698_v27 }
 0x166   :  { %v5624_v34 = vpop.f32.mrb[57].mxu1  ;;  %v5688_v38 = vpop.f32.mrb[57].mxu0 }
 0x167   :  { %v5625_v40 = vadd.f32 %v5624_v34, %v5623_v60  ;;  %v5689_v43 = vadd.f32 %v5688_v38, %v5687_v35  ;;  %v5626_v19 = vpop.f32.mrb[58].mxu1  ;;  %v5690_v44 = vpop.f32.mrb[58].mxu0 }
 0x168   :  { %v5627_v49 = vpop.f32.mrb[59].mxu1  ;;  %v5691_v53 = vpop.f32.mrb[59].mxu0 }
 0x169   :  { %v8626_v54 = vadd.f32 %v5625_v40, %v8449_v24  ;;  %v8629_v9 = vadd.f32 %v5689_v43, %v8301_v1  ;;  %v5628_v33 = vadd.f32 %v5627_v49, %v5626_v19  ;;  %v5692_v59 = vadd.f32 %v5691_v53, %v5690_v44  ;;  %v316_v1 = vld [vmem:[%s11434_s0 + $0x950] sm:$0xff] }
 0x16a   :  { %3487 = vmatmul.mubr.bf16.gmra.mrb[164].mxu0 %v1106_v12  ;;  %3584 = vmatmul.mubr.bf16.gmra.mrb[164].mxu1 %v916_v11  ;;  %v940_v55 = vpack.c.bf16 %v340_v3, %v316_v1  ;;  %v388_v53 = vld [vmem:[%s11434_s0 + $0xb90] sm:$0xff] }
 0x16b   :  { %v8638_v32 = vadd.f32 %v5628_v33, %v8457_v22  ;;  %v8641_v24 = vadd.f32 %v5692_v59, %v8330_v15  ;;  %3494 = vmatprep.mubr.bf16.mxu0 %v1131_v57  ;;  %3591 = vmatprep.mubr.bf16.mxu1 %v941_v48  ;;  %v771_v22 = vld [vmem:[%s11434_s0 + $0x1788] sm:$0xff]  ;;  %v365_v15 = vld [vmem:[%s11434_s0 + $0xad8] sm:$0xff]  ;;  %v746_v57 = vld [vmem:[%s11434_s0 + $0x16c0] sm:$0xff] }
 0x16c   :  { %v1155_v34 = vpack.c.bf16 %v771_v22, %v747_v6  ;;  %v965_v38 = vpack.c.bf16 %v389_v8, %v365_v15  ;;  %v770_v48 = vld [vmem:[%s11434_s0 + $0x1780] sm:$0xff]  ;;  %v413_v33 = vld [vmem:[%s11434_s0 + $0xc58] sm:$0xff]  ;;  %v55_v59 = vld [vmem:[%s11434_s0 + $0x128] sm:$0xff] }
 0x16d   :  { %v5629_v13 = vpop.f32.mrb[60].mxu1  ;;  %v5693_v20 = vpop.f32.mrb[60].mxu0  ;;  %v1154_v6 = vpack.c.bf16 %v770_v48, %v746_v57 }
 0x16e   :  { %v5630_v31 = vpop.f32.mrb[61].mxu1  ;;  %v5694_v5 = vpop.f32.mrb[61].mxu0 }
 0x16f   :  { %v5631_v41 = vadd.f32 %v5630_v31, %v5629_v13  ;;  %v5695_v4 = vadd.f32 %v5694_v5, %v5693_v20  ;;  %v5632_v60 = vpop.f32.mrb[62].mxu1  ;;  %v5696_v35 = vpop.f32.mrb[62].mxu0 }
 0x170   :  { %v5633_v12 = vpop.f32.mrb[63].mxu1  ;;  %v5697_v11 = vpop.f32.mrb[63].mxu0 }
 0x171   :  { %v8662_v40 = vadd.f32 %v5631_v41, %v8495_v10  ;;  %v8665_v43 = vadd.f32 %v5695_v4, %v8335_v63  ;;  %v5634_v19 = vadd.f32 %v5633_v12, %v5632_v60  ;;  %v5698_v44 = vadd.f32 %v5697_v11, %v5696_v35  ;;  %v364_v63 = vld [vmem:[%s11434_s0 + $0xad0] sm:$0xff]  ;;  %v54_v11 = vld [vmem:[%s11434_s0 + $0x120] sm:$0xff] }
 0x172   :  { %3495 = vmatmul.mubr.bf16.gmra.mrb[168].mxu0 %v1130_v25  ;;  %3592 = vmatmul.mubr.bf16.gmra.mrb[168].mxu1 %v940_v55  ;;  %v964_v22 = vpack.c.bf16 %v388_v53, %v364_v63 }
 0x173   :  { %v8674_v49 = vadd.f32 %v5634_v19, %v8503_v29  ;;  %v8677_v10 = vadd.f32 %v5698_v44, %v8358_v47  ;;  %3502 = vmatprep.mubr.bf16.mxu0 %v1155_v34  ;;  %3599 = vmatprep.mubr.bf16.mxu1 %v965_v38  ;;  %v437_v29 = vld [vmem:[%s11434_s0 + $0xd18] sm:$0xff]  ;;  %v31_v47 = vld [vmem:[%s11434_s0 + $0x68] sm:$0xff]  ;;  %v412_v34 = vld [vmem:[%s11434_s0 + $0xc50] sm:$0xff] }
 0x174   :  { %v989_v31 = vpack.c.bf16 %v437_v29, %v413_v33  ;;  %v799_v5 = vpack.c.bf16 %v55_v59, %v31_v47  ;;  %v436_v38 = vld [vmem:[%s11434_s0 + $0xd10] sm:$0xff]  ;;  %v461_v19 = vld [vmem:[%s11434_s0 + $0xdd8] sm:$0xff]  ;;  %v103_v44 = vld [vmem:[%s11434_s0 + $0x2a8] sm:$0xff] }
 0x175   :  { %v5635_v27 = vpop.f32.mrb[64].mxu1  ;;  %v5699_v61 = vpop.f32.mrb[64].mxu0  ;;  %v988_v33 = vpack.c.bf16 %v436_v38, %v412_v34  ;;  %v509_v34 = vld [vmem:[%s11434_s0 + $0xf58] sm:$0xff] }
 0x176   :  { %v5636_v1 = vpop.f32.mrb[65].mxu1  ;;  %v5700_v3 = vpop.f32.mrb[65].mxu0  ;;  %v533_v38 = vld [vmem:[%s11434_s0 + $0x1018] sm:$0xff] }
 0x177   :  { %v5637_v15 = vadd.f32 %v5636_v1, %v5635_v27  ;;  %v5701_v8 = vadd.f32 %v5700_v3, %v5699_v61  ;;  %v5638_v13 = vpop.f32.mrb[66].mxu1  ;;  %v5702_v20 = vpop.f32.mrb[66].mxu0 }
 0x178   :  { %v5639_v25 = vpop.f32.mrb[67].mxu1  ;;  %v5703_v55 = vpop.f32.mrb[67].mxu0 }
 0x179   :  { %v8698_v41 = vadd.f32 %v5637_v15, %v8057_v58  ;;  %v8701_v4 = vadd.f32 %v5701_v8, %v8369_v50  ;;  %v5640_v60 = vadd.f32 %v5639_v25, %v5638_v13  ;;  %v5704_v35 = vadd.f32 %v5703_v55, %v5702_v20  ;;  %v30_v50 = vld [vmem:[%s11434_s0 + $0x60] sm:$0xff]  ;;  %v460_v25 = vld [vmem:[%s11434_s0 + $0xdd0] sm:$0xff] }
 0x17a   :  { %3503 = vmatmul.mubr.bf16.gmra.mrb[172].mxu0 %v1154_v6  ;;  %3600 = vmatmul.mubr.bf16.gmra.mrb[172].mxu1 %v964_v22  ;;  %v798_v29 = vpack.c.bf16 %v54_v11, %v30_v50  ;;  %v6985_v15 = vld [vmem:[%s11433_s1 + $0x400] sm:$0xff]   ;;  %v6989_v50 = vld [vmem:[%s11433_s1 + $0x408] sm:$0xff]  }
 0x17b   :  { %v8710_v12 = vadd.f32 %v5640_v60, %v8061_v2  ;;  %v8713_v58 = vadd.f32 %v5704_v35, %v8377_v16  ;;  %3607 = vmatprep.mubr.bf16.mxu1 %v989_v31  ;;  %3704 = vmatprep.mubr.bf16.mxu0 %v799_v5  ;;  %v485_v2 = vld [vmem:[%s11434_s0 + $0xe98] sm:$0xff]  ;;  %v79_v16 = vld [vmem:[%s11434_s0 + $0x1e8] sm:$0xff]  ;;  %v102_v35 = vld [vmem:[%s11434_s0 + $0x2a0] sm:$0xff] }
 0x17c   :  { %v1013_v1 = vpack.c.bf16 %v485_v2, %v461_v19  ;;  %v823_v3 = vpack.c.bf16 %v103_v44, %v79_v16  ;;  %v6988_v5 = vld [vmem:[%s11433_s1 + $0x448] sm:$0xff]   ;;  %v6992_v2 = vld [vmem:[%s11433_s1 + $0x450] sm:$0xff]  }
 0x17d   :  { %v5641_v57 = vpop.f32.mrb[68].mxu1  ;;  %v5705_v48 = vpop.f32.mrb[68].mxu0 }
 0x17e   :  { %v5642_v63 = vpop.f32.mrb[69].mxu1  ;;  %v5706_v53 = vpop.f32.mrb[69].mxu0 }
 0x17f   :  { %v5643_v47 = vadd.f32 %v5642_v63, %v5641_v57  ;;  %v5707_v59 = vadd.f32 %v5706_v53, %v5705_v48  ;;  %v5644_v27 = vpop.f32.mrb[70].mxu1  ;;  %v5708_v61 = vpop.f32.mrb[70].mxu0 }
 0x180   :  { %v5645_v6 = vpop.f32.mrb[71].mxu1  ;;  %v5709_v22 = vpop.f32.mrb[71].mxu0 }
 0x181   :  { %v8737_v8 = vadd.f32 %v5643_v47, %v8089_v18  ;;  %v8740_v13 = vadd.f32 %v5707_v59, %v8409_v51  ;;  %v5646_v20 = vadd.f32 %v5645_v6, %v5644_v27  ;;  %v5710_v31 = vadd.f32 %v5709_v22, %v5708_v61  ;;  %v484_v18 = vld [vmem:[%s11434_s0 + $0xe90] sm:$0xff]  ;;  %v78_v51 = vld [vmem:[%s11434_s0 + $0x1e0] sm:$0xff] }
 0x182   :  { %3608 = vmatmul.mubr.bf16.gmra.mrb[176].mxu1 %v988_v33  ;;  %3705 = vmatmul.mubr.bf16.vlgmr.msra.gmra.mrb[176].mxu0 %v798_v29  ;;  %v1012_v57 = vpack.c.bf16 %v484_v18, %v460_v25  ;;  %v822_v48 = vpack.c.bf16 %v102_v35, %v78_v51  ;;  %v1037_v47 = vpack.c.bf16 %v533_v38, %v509_v34  ;;  %v150_v18 = vld [vmem:[%s11434_s0 + $0x420] sm:$0xff]  ;;  %v557_v51 = vld [vmem:[%s11434_s0 + $0x10d8] sm:$0xff] }
 0x183   :  { %v8755_v55 = vadd.f32 %v5646_v20, %v8099_v28  ;;  %v8758_v60 = vadd.f32 %v5710_v31, %v8429_v0  ;;  %3615 = vmatprep.mubr.bf16.mxu1 %v1013_v1  ;;  %3712 = vmatprep.mubr.bf16.mxu0 %v823_v3  ;;  %v127_v28 = vld [vmem:[%s11434_s0 + $0x368] sm:$0xff]  ;;  %v6993_v1 = vld [vmem:[%s11433_s1 + $0x410] sm:$0xff]   ;;  %v6996_v20 = vld [vmem:[%s11433_s1 + $0x458] sm:$0xff]  }
 0x184   :  { %v151_v0 = vld [vmem:[%s11434_s0 + $0x428] sm:$0xff]  ;;  %6332 = vmatpush3.bf16.msra.mxu0 %v6985_v15  ;;  %v508_v31 = vld [vmem:[%s11434_s0 + $0xf50] sm:$0xff]  ;;  %v581_v35 = vld [vmem:[%s11434_s0 + $0x1198] sm:$0xff] }
 0x185   :  { %v5647_v11 = vpop.f32.mrb[72].mxu1  ;;  %v5711_v19 = vpop.f32.mrb[72].mxu0  ;;  %6333 = vmatprep.subr.bf16.mxu0 %v6988_v5  ;;  %v847_v59 = vpack.c.bf16 %v151_v0, %v127_v28  ;;  %v6997_v34 = vld [vmem:[%s11433_s1 + $0x418] sm:$0xff]   ;;  %v6998_v0 = vld [vmem:[%s11433_s1 + $0x460] sm:$0xff]  }
 0x186   :  { %v5648_v16 = vpop.f32.mrb[73].mxu1  ;;  %v5712_v44 = vpop.f32.mrb[73].mxu0 }
 0x187   :  { %v5649_v63 = vadd.f32 %v5648_v16, %v5647_v11  ;;  %v5713_v53 = vadd.f32 %v5712_v44, %v5711_v19  ;;  %v5650_v33 = vpop.f32.mrb[74].mxu1  ;;  %v5714_v29 = vpop.f32.mrb[74].mxu0 }
 0x188   :  { %v5651_v27 = vpop.f32.mrb[75].mxu1  ;;  %v5715_v61 = vpop.f32.mrb[75].mxu0  ;;  %6334 = vmatpush3.bf16.msra.mxu0 %v6989_v50 }
 0x189   :  { %v8785_v3 = vadd.f32 %v5649_v63, %v8133_v46  ;;  %v8788_v6 = vadd.f32 %v5713_v53, %v8455_v37  ;;  %v5652_v22 = vadd.f32 %v5651_v27, %v5650_v33  ;;  %v5716_v15 = vadd.f32 %v5715_v61, %v5714_v29  ;;  %6335 = vmatprep.subr.bf16.mxu0 %v6992_v2  ;;  %v532_v46 = vld [vmem:[%s11434_s0 + $0x1010] sm:$0xff]  ;;  %v126_v37 = vld [vmem:[%s11434_s0 + $0x360] sm:$0xff] }
 0x18a   :  { %3616 = vmatmul.mubr.bf16.gmra.mrb[180].mxu1 %v1012_v57  ;;  %3713 = vmatmul.mubr.bf16.gmra.mrb[180].mxu0 %v822_v48  ;;  %v1036_v19 = vpack.c.bf16 %v532_v46, %v508_v31  ;;  %v846_v2 = vpack.c.bf16 %v150_v18, %v126_v37  ;;  %v1061_v63 = vpack.c.bf16 %v581_v35, %v557_v51  ;;  %v198_v46 = vld [vmem:[%s11434_s0 + $0x5a0] sm:$0xff]  ;;  %v605_v37 = vld [vmem:[%s11434_s0 + $0x1258] sm:$0xff]  ;;  %v7003_v51 = vld [vmem:[%s11433_s1 + $0x428] sm:$0xff]  }
 0x18b   :  { %v8803_v5 = vadd.f32 %v5652_v22, %v8143_v56  ;;  %v8806_v25 = vadd.f32 %v5716_v15, %v8472_v45  ;;  %3623 = vmatprep.mubr.bf16.mxu1 %v1037_v47  ;;  %3720 = vmatprep.mubr.bf16.mxu0 %v847_v59  ;;  %v175_v56 = vld [vmem:[%s11434_s0 + $0x4e8] sm:$0xff]  ;;  %v7000_v47 = vld [vmem:[%s11433_s1 + $0x420] sm:$0xff]   ;;  %v556_v15 = vld [vmem:[%s11434_s0 + $0x10d0] sm:$0xff] }
 0x18c   :  { %v199_v45 = vld [vmem:[%s11434_s0 + $0x5a8] sm:$0xff]  ;;  %6336 = vmatpush3.bf16.msra.mxu0 %v6993_v1  ;;  %v629_v18 = vld [vmem:[%s11434_s0 + $0x1318] sm:$0xff] }
 0x18d   :  { %v5653_v38 = vpop.f32.mrb[76].mxu1  ;;  %v5717_v28 = vpop.f32.mrb[76].mxu0  ;;  %6337 = vmatprep.subr.bf16.mxu0 %v6996_v20  ;;  %v871_v53 = vpack.c.bf16 %v199_v45, %v175_v56  ;;  %v7002_v22 = vld [vmem:[%s11433_s1 + $0x468] sm:$0xff]   ;;  %v7004_v45 = vld [vmem:[%s11433_s1 + $0x470] sm:$0xff]  }
 0x18e   :  { %v5654_v50 = vpop.f32.mrb[77].mxu1  ;;  %v5718_v11 = vpop.f32.mrb[77].mxu0 }
 0x18f   :  { %v5655_v16 = vadd.f32 %v5654_v50, %v5653_v38  ;;  %v5719_v44 = vadd.f32 %v5718_v11, %v5717_v28  ;;  %v5656_v57 = vpop.f32.mrb[78].mxu1  ;;  %v5720_v48 = vpop.f32.mrb[78].mxu0 }
 0x190   :  { %v5657_v33 = vpop.f32.mrb[79].mxu1  ;;  %v5721_v29 = vpop.f32.mrb[79].mxu0  ;;  %6338 = vmatpush3.bf16.msra.mxu0 %v6997_v34 }
 0x191   :  { %v8833_v59 = vadd.f32 %v5655_v16, %v8177_v14  ;;  %v8836_v27 = vadd.f32 %v5719_v44, %v8501_v23  ;;  %v5658_v61 = vadd.f32 %v5657_v33, %v5656_v57  ;;  %v5722_v1 = vadd.f32 %v5721_v29, %v5720_v48  ;;  %6339 = vmatprep.subr.bf16.mxu0 %v6998_v0  ;;  %v580_v14 = vld [vmem:[%s11434_s0 + $0x1190] sm:$0xff]  ;;  %v174_v23 = vld [vmem:[%s11434_s0 + $0x4e0] sm:$0xff] }
 0x192   :  { %3624 = vmatmul.mubr.bf16.gmra.mrb[184].mxu1 %v1036_v19  ;;  %3721 = vmatmul.mubr.bf16.gmra.mrb[184].mxu0 %v846_v2  ;;  %v1060_v28 = vpack.c.bf16 %v580_v14, %v556_v15  ;;  %v870_v0 = vpack.c.bf16 %v198_v46, %v174_v23  ;;  %v1085_v16 = vpack.c.bf16 %v629_v18, %v605_v37  ;;  %v246_v14 = vld [vmem:[%s11434_s0 + $0x720] sm:$0xff]  ;;  %v653_v23 = vld [vmem:[%s11434_s0 + $0x13d8] sm:$0xff] }
 0x193   :  { %v8851_v20 = vadd.f32 %v5658_v61, %v8187_v26  ;;  %v8854_v31 = vadd.f32 %v5722_v1, %v8518_v36  ;;  %3631 = vmatprep.mubr.bf16.mxu1 %v1061_v63  ;;  %3728 = vmatprep.mubr.bf16.mxu0 %v871_v53  ;;  %v223_v26 = vld [vmem:[%s11434_s0 + $0x668] sm:$0xff]  ;;  %v7005_v63 = vld [vmem:[%s11433_s1 + $0x430] sm:$0xff]   ;;  %v7006_v61 = vld [vmem:[%s11433_s1 + $0x478] sm:$0xff]  }
 0x194   :  { %v247_v36 = vld [vmem:[%s11434_s0 + $0x728] sm:$0xff]  ;;  %6340 = vmatpush3.bf16.msra.mxu0 %v7000_v47  ;;  %v604_v1 = vld [vmem:[%s11434_s0 + $0x1250] sm:$0xff]  ;;  %v677_v46 = vld [vmem:[%s11434_s0 + $0x1498] sm:$0xff] }
 0x195   :  { %v5723_v35 = vpop.f32.mrb[80].mxu0  ;;  %v5787_v56 = vpop.f32.mrb[80].mxu1  ;;  %6341 = vmatprep.subr.bf16.mxu0 %v7002_v22  ;;  %v895_v44 = vpack.c.bf16 %v247_v36, %v223_v26  ;;  %v7007_v37 = vld [vmem:[%s11433_s1 + $0x438] sm:$0xff]  }
 0x196   :  { %v5724_v34 = vpop.f32.mrb[81].mxu0  ;;  %v5788_v38 = vpop.f32.mrb[81].mxu1 }
 0x197   :  { %v5725_v50 = vadd.f32 %v5724_v34, %v5723_v35  ;;  %v5789_v11 = vadd.f32 %v5788_v38, %v5787_v56  ;;  %v5726_v19 = vpop.f32.mrb[82].mxu0  ;;  %v5790_v2 = vpop.f32.mrb[82].mxu1 }
 0x198   :  { %v5727_v57 = vpop.f32.mrb[83].mxu0  ;;  %v5791_v48 = vpop.f32.mrb[83].mxu1  ;;  %6342 = vmatpush3.bf16.msra.mxu0 %v7003_v51 }
 0x199   :  { %v8881_v53 = vadd.f32 %v5725_v50, %v8545_v17  ;;  %v8884_v33 = vadd.f32 %v5789_v11, %v8548_v52  ;;  %v5728_v29 = vadd.f32 %v5727_v57, %v5726_v19  ;;  %v5792_v47 = vadd.f32 %v5791_v48, %v5790_v2  ;;  %6343 = vmatprep.subr.bf16.mxu0 %v7004_v45  ;;  %v628_v17 = vld [vmem:[%s11434_s0 + $0x1310] sm:$0xff]  ;;  %v222_v52 = vld [vmem:[%s11434_s0 + $0x660] sm:$0xff] }
 0x19a   :  { %3632 = vmatmul.mubr.bf16.gmra.mrb[188].mxu1 %v1060_v28  ;;  %3729 = vmatmul.mubr.bf16.gmra.mrb[188].mxu0 %v870_v0  ;;  %v1084_v35 = vpack.c.bf16 %v628_v17, %v604_v1  ;;  %v894_v56 = vpack.c.bf16 %v246_v14, %v222_v52  ;;  %v1109_v0 = vpack.c.bf16 %v677_v46, %v653_v23  ;;  %v652_v48 = vld [vmem:[%s11434_s0 + $0x13d0] sm:$0xff]  ;;  %v343_v1 = vld [vmem:[%s11434_s0 + $0xa28] sm:$0xff] }
 0x19b   :  { %v8899_v22 = vadd.f32 %v5728_v29, %v8563_v30  ;;  %v8902_v15 = vadd.f32 %v5792_v47, %v8566_v7  ;;  %3639 = vmatprep.mubr.bf16.mxu1 %v1085_v16  ;;  %3736 = vmatprep.mubr.bf16.mxu0 %v895_v44  ;;  %v271_v30 = vld [vmem:[%s11434_s0 + $0x7e8] sm:$0xff]  ;;  %v294_v47 = vld [vmem:[%s11434_s0 + $0x8a0] sm:$0xff] }
 0x19c   :  { %v295_v7 = vld [vmem:[%s11434_s0 + $0x8a8] sm:$0xff]  ;;  %6344 = vmatpush3.bf16.msra.mxu0 %v7005_v63  ;;  %v676_v63 = vld [vmem:[%s11434_s0 + $0x1490] sm:$0xff] }
 0x19d   :  { %v5729_v18 = vpop.f32.mrb[84].mxu0  ;;  %v5793_v26 = vpop.f32.mrb[84].mxu1  ;;  %6345 = vmatprep.subr.bf16.mxu0 %v7006_v61  ;;  %v919_v50 = vpack.c.bf16 %v295_v7, %v271_v30  ;;  %v701_v61 = vld [vmem:[%s11434_s0 + $0x1558] sm:$0xff]  ;;  %v1108_v46 = vpack.c.bf16 %v676_v63, %v652_v48 }
 0x19e   :  { %v5730_v36 = vpop.f32.mrb[85].mxu0  ;;  %v5794_v51 = vpop.f32.mrb[85].mxu1 }
 0x19f   :  { %v5731_v45 = vadd.f32 %v5730_v36, %v5729_v18  ;;  %v5795_v34 = vadd.f32 %v5794_v51, %v5793_v26  ;;  %v5732_v38 = vpop.f32.mrb[86].mxu0  ;;  %v5796_v28 = vpop.f32.mrb[86].mxu1 }
 0x1a0   :  { %v5733_v11 = vpop.f32.mrb[87].mxu0  ;;  %v5797_v19 = vpop.f32.mrb[87].mxu1  ;;  %6346 = vmatpush3.bf16.msra.mxu0 %v7007_v37 }
 0x1a1   :  { %v8923_v2 = vadd.f32 %v5731_v45, %v8590_v62  ;;  %v8926_v16 = vadd.f32 %v5795_v34, %v8593_v39  ;;  %v5734_v44 = vadd.f32 %v5733_v11, %v5732_v38  ;;  %v5798_v57 = vadd.f32 %v5797_v19, %v5796_v28  ;;  %v270_v39 = vld [vmem:[%s11434_s0 + $0x7e0] sm:$0xff] }
 0x1a2   :  { %3640 = vmatmul.mubr.bf16.gmra.mrb[192].mxu1 %v1084_v35  ;;  %3737 = vmatmul.mubr.bf16.gmra.mrb[192].mxu0 %v894_v56  ;;  %v918_v30 = vpack.c.bf16 %v294_v47, %v270_v39  ;;  %v342_v19 = vld [vmem:[%s11434_s0 + $0xa20] sm:$0xff] }
 0x1a3   :  { %v8935_v29 = vadd.f32 %v5734_v44, %v8602_v21  ;;  %v8938_v62 = vadd.f32 %v5798_v57, %v8605_v42  ;;  %3647 = vmatprep.mubr.bf16.mxu1 %v1109_v0  ;;  %3744 = vmatprep.mubr.bf16.mxu0 %v919_v50  ;;  %v725_v21 = vld [vmem:[%s11434_s0 + $0x1618] sm:$0xff]  ;;  %v319_v42 = vld [vmem:[%s11434_s0 + $0x968] sm:$0xff]  ;;  %v700_v0 = vld [vmem:[%s11434_s0 + $0x1550] sm:$0xff] }
 0x1a4   :  { %v1133_v36 = vpack.c.bf16 %v725_v21, %v701_v61  ;;  %v943_v51 = vpack.c.bf16 %v343_v1, %v319_v42  ;;  %v724_v50 = vld [vmem:[%s11434_s0 + $0x1610] sm:$0xff]  ;;  %v749_v44 = vld [vmem:[%s11434_s0 + $0x16d8] sm:$0xff]  ;;  %v391_v57 = vld [vmem:[%s11434_s0 + $0xba8] sm:$0xff] }
 0x1a5   :  { %v5735_v17 = vpop.f32.mrb[88].mxu0  ;;  %v5799_v52 = vpop.f32.mrb[88].mxu1  ;;  %v1132_v61 = vpack.c.bf16 %v724_v50, %v700_v0 }
 0x1a6   :  { %v5736_v14 = vpop.f32.mrb[89].mxu0  ;;  %v5800_v23 = vpop.f32.mrb[89].mxu1 }
 0x1a7   :  { %v5737_v7 = vadd.f32 %v5736_v14, %v5735_v17  ;;  %v5801_v37 = vadd.f32 %v5800_v23, %v5799_v52  ;;  %v5738_v18 = vpop.f32.mrb[90].mxu0  ;;  %v5802_v26 = vpop.f32.mrb[90].mxu1 }
 0x1a8   :  { %v5739_v35 = vpop.f32.mrb[91].mxu0  ;;  %v5803_v56 = vpop.f32.mrb[91].mxu1 }
 0x1a9   :  { %v8959_v45 = vadd.f32 %v5737_v7, %v8626_v54  ;;  %v8962_v34 = vadd.f32 %v5801_v37, %v8629_v9  ;;  %v5740_v38 = vadd.f32 %v5739_v35, %v5738_v18  ;;  %v5804_v28 = vadd.f32 %v5803_v56, %v5802_v26  ;;  %v318_v9 = vld [vmem:[%s11434_s0 + $0x960] sm:$0xff] }
 0x1aa   :  { %3648 = vmatmul.mubr.bf16.gmra.mrb[196].mxu1 %v1108_v46  ;;  %3745 = vmatmul.mubr.bf16.gmra.mrb[196].mxu0 %v918_v30  ;;  %v942_v21 = vpack.c.bf16 %v342_v19, %v318_v9  ;;  %v390_v56 = vld [vmem:[%s11434_s0 + $0xba0] sm:$0xff] }
 0x1ab   :  { %v8971_v11 = vadd.f32 %v5740_v38, %v8638_v32  ;;  %v8974_v54 = vadd.f32 %v5804_v28, %v8641_v24  ;;  %3655 = vmatprep.mubr.bf16.mxu1 %v1133_v36  ;;  %3752 = vmatprep.mubr.bf16.mxu0 %v943_v51  ;;  %v773_v32 = vld [vmem:[%s11434_s0 + $0x1798] sm:$0xff]  ;;  %v367_v24 = vld [vmem:[%s11434_s0 + $0xae8] sm:$0xff]  ;;  %v748_v36 = vld [vmem:[%s11434_s0 + $0x16d0] sm:$0xff] }
 0x1ac   :  { %v1157_v14 = vpack.c.bf16 %v773_v32, %v749_v44  ;;  %v967_v23 = vpack.c.bf16 %v391_v57, %v367_v24  ;;  %v772_v51 = vld [vmem:[%s11434_s0 + $0x1790] sm:$0xff]  ;;  %v415_v38 = vld [vmem:[%s11434_s0 + $0xc68] sm:$0xff]  ;;  %v57_v28 = vld [vmem:[%s11434_s0 + $0x138] sm:$0xff] }
 0x1ad   :  { %v5741_v48 = vpop.f32.mrb[92].mxu0  ;;  %v5805_v63 = vpop.f32.mrb[92].mxu1  ;;  %v1156_v44 = vpack.c.bf16 %v772_v51, %v748_v36  ;;  %v81_v36 = vld [vmem:[%s11434_s0 + $0x1f8] sm:$0xff] }
 0x1ae   :  { %v5742_v39 = vpop.f32.mrb[93].mxu0  ;;  %v5806_v47 = vpop.f32.mrb[93].mxu1  ;;  %v105_v51 = vld [vmem:[%s11434_s0 + $0x2b8] sm:$0xff] }
 0x1af   :  { %v5743_v42 = vadd.f32 %v5742_v39, %v5741_v48  ;;  %v5807_v1 = vadd.f32 %v5806_v47, %v5805_v63  ;;  %v5744_v17 = vpop.f32.mrb[94].mxu0  ;;  %v5808_v52 = vpop.f32.mrb[94].mxu1 }
 0x1b0   :  { %v5745_v46 = vpop.f32.mrb[95].mxu0  ;;  %v5809_v30 = vpop.f32.mrb[95].mxu1 }
 0x1b1   :  { %v8995_v7 = vadd.f32 %v5743_v42, %v8662_v40  ;;  %v8998_v37 = vadd.f32 %v5807_v1, %v8665_v43  ;;  %v5746_v18 = vadd.f32 %v5745_v46, %v5744_v17  ;;  %v5810_v26 = vadd.f32 %v5809_v30, %v5808_v52  ;;  %v366_v43 = vld [vmem:[%s11434_s0 + $0xae0] sm:$0xff]  ;;  %v56_v30 = vld [vmem:[%s11434_s0 + $0x130] sm:$0xff] }
 0x1b2   :  { %3656 = vmatmul.mubr.bf16.gmra.mrb[200].mxu1 %v1132_v61  ;;  %3753 = vmatmul.mubr.bf16.gmra.mrb[200].mxu0 %v942_v21  ;;  %v966_v32 = vpack.c.bf16 %v390_v56, %v366_v43 }
 0x1b3   :  { %v9007_v35 = vadd.f32 %v5746_v18, %v8674_v49  ;;  %v9010_v40 = vadd.f32 %v5810_v26, %v8677_v10  ;;  %3663 = vmatprep.mubr.bf16.mxu1 %v1157_v14  ;;  %3760 = vmatprep.mubr.bf16.mxu0 %v967_v23  ;;  %v439_v49 = vld [vmem:[%s11434_s0 + $0xd28] sm:$0xff]  ;;  %v33_v10 = vld [vmem:[%s11434_s0 + $0x78] sm:$0xff]  ;;  %v414_v14 = vld [vmem:[%s11434_s0 + $0xc60] sm:$0xff] }
 0x1b4   :  { %v991_v39 = vpack.c.bf16 %v439_v49, %v415_v38  ;;  %v801_v47 = vpack.c.bf16 %v57_v28, %v33_v10 }
 0x1b5   :  { %v5747_v0 = vpop.f32.mrb[96].mxu0  ;;  %v5811_v50 = vpop.f32.mrb[96].mxu1 }
 0x1b6   :  { %v5748_v9 = vpop.f32.mrb[97].mxu0  ;;  %v5812_v19 = vpop.f32.mrb[97].mxu1 }
 0x1b7   :  { %v5749_v24 = vadd.f32 %v5748_v9, %v5747_v0  ;;  %v5813_v57 = vadd.f32 %v5812_v19, %v5811_v50  ;;  %v5750_v48 = vpop.f32.mrb[98].mxu0  ;;  %v5814_v63 = vpop.f32.mrb[98].mxu1  ;;  %v6987_v9 = vld [vmem:[%s11433_s1 + $0x480] sm:$0xff]  }
 0x1b8   :  { %v5751_v61 = vpop.f32.mrb[99].mxu0  ;;  %v5815_v21 = vpop.f32.mrb[99].mxu1 }
 0x1b9   :  { %v9031_v42 = vadd.f32 %v5749_v24, %v8698_v41  ;;  %v9034_v1 = vadd.f32 %v5813_v57, %v8701_v4  ;;  %v5752_v17 = vadd.f32 %v5751_v61, %v5750_v48  ;;  %v5816_v52 = vadd.f32 %v5815_v21, %v5814_v63  ;;  %v438_v41 = vld [vmem:[%s11434_s0 + $0xd20] sm:$0xff]  ;;  %v32_v4 = vld [vmem:[%s11434_s0 + $0x70] sm:$0xff]  ;;  %v6990_v57 = vld [vmem:[%s11433_s1 + $0x4c8] sm:$0xff]  }
 0x1ba   :  { %3664 = vmatmul.mubr.bf16.gmra.mrb[204].mxu1 %v1156_v44  ;;  %3761 = vmatmul.mubr.bf16.gmra.mrb[204].mxu0 %v966_v32  ;;  %v990_v38 = vpack.c.bf16 %v438_v41, %v414_v14  ;;  %v800_v49 = vpack.c.bf16 %v56_v30, %v32_v4  ;;  %v825_v24 = vpack.c.bf16 %v105_v51, %v81_v36  ;;  %v462_v61 = vld [vmem:[%s11434_s0 + $0xde0] sm:$0xff]  ;;  %v535_v41 = vld [vmem:[%s11434_s0 + $0x1028] sm:$0xff] }
 0x1bb   :  { %v9040_v23 = vadd.f32 %v5752_v17, %v8710_v12  ;;  %v9043_v46 = vadd.f32 %v5816_v52, %v8713_v58  ;;  %3768 = vmatprep.mubr.bf16.mxu0 %v991_v39  ;;  %3865 = vmatprep.mubr.bf16.mxu1 %v801_v47  ;;  %v463_v12 = vld [vmem:[%s11434_s0 + $0xde8] sm:$0xff]  ;;  %v486_v21 = vld [vmem:[%s11434_s0 + $0xea0] sm:$0xff] }
 0x1bc   :  { %v487_v58 = vld [vmem:[%s11434_s0 + $0xea8] sm:$0xff]  ;;  %v7016_v30 = vld [vmem:[%s11433_s1 + $0x540] sm:$0xff]   ;;  %v1014_v51 = vpack.c.bf16 %v486_v21, %v462_v61 }
 0x1bd   :  { %v5753_v18 = vpop.f32.mrb[100].mxu0  ;;  %v5817_v26 = vpop.f32.mrb[100].mxu1  ;;  %v1015_v19 = vpack.c.bf16 %v487_v58, %v463_v12  ;;  %v511_v17 = vld [vmem:[%s11434_s0 + $0xf68] sm:$0xff]  ;;  %v6994_v12 = vld [vmem:[%s11433_s1 + $0x4d0] sm:$0xff]   ;;  %6555 = vmatprep.subr.bf16.mxu0 %v7016_v30 }
 0x1be   :  { %v5754_v43 = vpop.f32.mrb[101].mxu0  ;;  %v5818_v56 = vpop.f32.mrb[101].mxu1  ;;  %v6991_v4 = vld [vmem:[%s11433_s1 + $0x488] sm:$0xff]  }
 0x1bf   :  { %v5755_v10 = vadd.f32 %v5754_v43, %v5753_v18  ;;  %v5819_v28 = vadd.f32 %v5818_v56, %v5817_v26  ;;  %v5756_v0 = vpop.f32.mrb[102].mxu0  ;;  %v5820_v50 = vpop.f32.mrb[102].mxu1 }
 0x1c0   :  { %v5757_v44 = vpop.f32.mrb[103].mxu0  ;;  %v5821_v32 = vpop.f32.mrb[103].mxu1 }
 0x1c1   :  { %v9073_v48 = vadd.f32 %v5755_v10, %v8737_v8  ;;  %v9076_v63 = vadd.f32 %v5819_v28, %v8740_v13  ;;  %v5758_v39 = vadd.f32 %v5757_v44, %v5756_v0  ;;  %v5822_v47 = vadd.f32 %v5821_v32, %v5820_v50  ;;  %v80_v8 = vld [vmem:[%s11434_s0 + $0x1f0] sm:$0xff] }
 0x1c2   :  { %3769 = vmatmul.mubr.bf16.gmra.mrb[208].mxu0 %v990_v38  ;;  %3866 = vmatmul.mubr.bf16.vlgmr.msra.gmra.mrb[208].mxu1 %v800_v49  ;;  %v104_v13 = vld [vmem:[%s11434_s0 + $0x2b0] sm:$0xff]  ;;  %v1039_v28 = vpack.c.bf16 %v535_v41, %v511_v17  ;;  %v583_v17 = vld [vmem:[%s11434_s0 + $0x11a8] sm:$0xff]  ;;  %v7001_v41 = vld [vmem:[%s11433_s1 + $0x498] sm:$0xff]  }
 0x1c3   :  { %v9094_v52 = vadd.f32 %v5758_v39, %v8755_v55  ;;  %v9097_v14 = vadd.f32 %v5822_v47, %v8758_v60  ;;  %6444 = vmatpush3.bf16.msra.mxu1 %v6987_v9  ;;  %3776 = vmatprep.mubr.bf16.mxu0 %v1015_v19  ;;  %v129_v55 = vld [vmem:[%s11434_s0 + $0x378] sm:$0xff]  ;;  %v824_v43 = vpack.c.bf16 %v104_v13, %v80_v8  ;;  %v6995_v19 = vld [vmem:[%s11433_s1 + $0x490] sm:$0xff]   ;;  %v510_v47 = vld [vmem:[%s11434_s0 + $0xf60] sm:$0xff] }
 0x1c4   :  { %3873 = vmatprep.mubr.bf16.mxu1 %v825_v24  ;;  %v153_v60 = vld [vmem:[%s11434_s0 + $0x438] sm:$0xff]  ;;  %6445 = vmatprep.subr.bf16.mxu1 %v6990_v57  ;;  %v152_v8 = vld [vmem:[%s11434_s0 + $0x430] sm:$0xff]  ;;  %v559_v13 = vld [vmem:[%s11434_s0 + $0x10e8] sm:$0xff] }
 0x1c5   :  { %v5759_v58 = vpop.f32.mrb[104].mxu0  ;;  %v5823_v18 = vpop.f32.mrb[104].mxu1  ;;  %v849_v0 = vpack.c.bf16 %v153_v60, %v129_v55  ;;  %v6999_v39 = vld [vmem:[%s11433_s1 + $0x4d8] sm:$0xff]   ;;  %v7008_v55 = vld [vmem:[%s11433_s1 + $0x4e0] sm:$0xff]  }
 0x1c6   :  { %v5760_v26 = vpop.f32.mrb[105].mxu0  ;;  %v5824_v36 = vpop.f32.mrb[105].mxu1 }
 0x1c7   :  { %v5761_v56 = vadd.f32 %v5760_v26, %v5759_v58  ;;  %v5825_v38 = vadd.f32 %v5824_v36, %v5823_v18  ;;  %v5762_v49 = vpop.f32.mrb[106].mxu0  ;;  %v5826_v10 = vpop.f32.mrb[106].mxu1  ;;  %6446 = vmatpush3.bf16.msra.mxu1 %v6991_v4 }
 0x1c8   :  { %v5763_v50 = vpop.f32.mrb[107].mxu0  ;;  %v5827_v9 = vpop.f32.mrb[107].mxu1  ;;  %6447 = vmatprep.subr.bf16.mxu1 %v6994_v12 }
 0x1c9   :  { %v9121_v44 = vadd.f32 %v5761_v56, %v8785_v3  ;;  %v9124_v32 = vadd.f32 %v5825_v38, %v8788_v6  ;;  %v5764_v24 = vadd.f32 %v5763_v50, %v5762_v49  ;;  %v5828_v57 = vadd.f32 %v5827_v9, %v5826_v10  ;;  %v534_v3 = vld [vmem:[%s11434_s0 + $0x1020] sm:$0xff]  ;;  %v128_v6 = vld [vmem:[%s11434_s0 + $0x370] sm:$0xff] }
 0x1ca   :  { %3777 = vmatmul.mubr.bf16.gmra.mrb[212].mxu0 %v1014_v51  ;;  %3874 = vmatmul.mubr.bf16.gmra.mrb[212].mxu1 %v824_v43  ;;  %v1038_v58 = vpack.c.bf16 %v534_v3, %v510_v47  ;;  %v848_v18 = vpack.c.bf16 %v152_v8, %v128_v6  ;;  %v1063_v56 = vpack.c.bf16 %v583_v17, %v559_v13  ;;  %v200_v3 = vld [vmem:[%s11434_s0 + $0x5b0] sm:$0xff]  ;;  %v607_v6 = vld [vmem:[%s11434_s0 + $0x1268] sm:$0xff] }
 0x1cb   :  { %v9139_v61 = vadd.f32 %v5764_v24, %v8803_v5  ;;  %v9142_v21 = vadd.f32 %v5828_v57, %v8806_v25  ;;  %3784 = vmatprep.mubr.bf16.mxu0 %v1039_v28  ;;  %3881 = vmatprep.mubr.bf16.mxu1 %v849_v0  ;;  %v177_v5 = vld [vmem:[%s11434_s0 + $0x4f8] sm:$0xff]  ;;  %v7009_v28 = vld [vmem:[%s11433_s1 + $0x4a0] sm:$0xff]   ;;  %v7010_v24 = vld [vmem:[%s11433_s1 + $0x4e8] sm:$0xff]  }
 0x1cc   :  { %v201_v25 = vld [vmem:[%s11434_s0 + $0x5b8] sm:$0xff]  ;;  %6448 = vmatpush3.bf16.msra.mxu1 %v6995_v19  ;;  %v558_v57 = vld [vmem:[%s11434_s0 + $0x10e0] sm:$0xff]  ;;  %v631_v8 = vld [vmem:[%s11434_s0 + $0x1328] sm:$0xff] }
 0x1cd   :  { %v5765_v4 = vpop.f32.mrb[108].mxu0  ;;  %v5829_v30 = vpop.f32.mrb[108].mxu1  ;;  %6449 = vmatprep.subr.bf16.mxu1 %v6999_v39  ;;  %v873_v38 = vpack.c.bf16 %v201_v25, %v177_v5  ;;  %v7011_v13 = vld [vmem:[%s11433_s1 + $0x4a8] sm:$0xff]   ;;  %v7012_v25 = vld [vmem:[%s11433_s1 + $0x4f0] sm:$0xff]  }
 0x1ce   :  { %v5766_v60 = vpop.f32.mrb[109].mxu0  ;;  %v5830_v12 = vpop.f32.mrb[109].mxu1 }
 0x1cf   :  { %v5767_v26 = vadd.f32 %v5766_v60, %v5765_v4  ;;  %v5831_v36 = vadd.f32 %v5830_v12, %v5829_v30  ;;  %v5768_v51 = vpop.f32.mrb[110].mxu0  ;;  %v5832_v43 = vpop.f32.mrb[110].mxu1 }
 0x1d0   :  { %v5769_v49 = vpop.f32.mrb[111].mxu0  ;;  %v5833_v10 = vpop.f32.mrb[111].mxu1  ;;  %6450 = vmatpush3.bf16.msra.mxu1 %v7001_v41 }
 0x1d1   :  { %v9169_v0 = vadd.f32 %v5767_v26, %v8833_v59  ;;  %v9172_v50 = vadd.f32 %v5831_v36, %v8836_v27  ;;  %v5770_v9 = vadd.f32 %v5769_v49, %v5768_v51  ;;  %v5834_v19 = vadd.f32 %v5833_v10, %v5832_v43  ;;  %6451 = vmatprep.subr.bf16.mxu1 %v7008_v55  ;;  %v582_v59 = vld [vmem:[%s11434_s0 + $0x11a0] sm:$0xff]  ;;  %v176_v27 = vld [vmem:[%s11434_s0 + $0x4f0] sm:$0xff] }
 0x1d2   :  { %3785 = vmatmul.mubr.bf16.gmra.mrb[216].mxu0 %v1038_v58  ;;  %3882 = vmatmul.mubr.bf16.gmra.mrb[216].mxu1 %v848_v18  ;;  %v1062_v30 = vpack.c.bf16 %v582_v59, %v558_v57  ;;  %v872_v55 = vpack.c.bf16 %v200_v3, %v176_v27  ;;  %v1087_v26 = vpack.c.bf16 %v631_v8, %v607_v6  ;;  %v655_v57 = vld [vmem:[%s11434_s0 + $0x13e8] sm:$0xff]  ;;  %v273_v6 = vld [vmem:[%s11434_s0 + $0x7f8] sm:$0xff] }
 0x1d3   :  { %v9187_v39 = vadd.f32 %v5770_v9, %v8851_v20  ;;  %v9190_v47 = vadd.f32 %v5834_v19, %v8854_v31  ;;  %3792 = vmatprep.mubr.bf16.mxu0 %v1063_v56  ;;  %3889 = vmatprep.mubr.bf16.mxu1 %v873_v38  ;;  %v225_v20 = vld [vmem:[%s11434_s0 + $0x678] sm:$0xff]  ;;  %v7013_v56 = vld [vmem:[%s11433_s1 + $0x4b0] sm:$0xff]   ;;  %v606_v19 = vld [vmem:[%s11434_s0 + $0x1260] sm:$0xff] }
 0x1d4   :  { %v249_v31 = vld [vmem:[%s11434_s0 + $0x738] sm:$0xff]  ;;  %6452 = vmatpush3.bf16.msra.mxu1 %v7009_v28  ;;  %v679_v59 = vld [vmem:[%s11434_s0 + $0x14a8] sm:$0xff] }
 0x1d5   :  { %v5835_v17 = vpop.f32.mrb[112].mxu1  ;;  %v5899_v5 = vpop.f32.mrb[112].mxu0  ;;  %6453 = vmatprep.subr.bf16.mxu1 %v7010_v24  ;;  %v897_v36 = vpack.c.bf16 %v249_v31, %v225_v20  ;;  %v7014_v9 = vld [vmem:[%s11433_s1 + $0x4f8] sm:$0xff]   ;;  %v630_v24 = vld [vmem:[%s11434_s0 + $0x1320] sm:$0xff] }
 0x1d6   :  { %v5836_v41 = vpop.f32.mrb[113].mxu1  ;;  %v5900_v4 = vpop.f32.mrb[113].mxu0  ;;  %v297_v8 = vld [vmem:[%s11434_s0 + $0x8b8] sm:$0xff] }
 0x1d7   :  { %v5837_v60 = vadd.f32 %v5836_v41, %v5835_v17  ;;  %v5901_v12 = vadd.f32 %v5900_v4, %v5899_v5  ;;  %v5838_v58 = vpop.f32.mrb[114].mxu1  ;;  %v5902_v18 = vpop.f32.mrb[114].mxu0  ;;  %v7015_v20 = vld [vmem:[%s11433_s1 + $0x4b8] sm:$0xff]   ;;  %v1086_v5 = vpack.c.bf16 %v630_v24, %v606_v19  ;;  %v727_v24 = vld [vmem:[%s11434_s0 + $0x1628] sm:$0xff] }
 0x1d8   :  { %v5839_v51 = vpop.f32.mrb[115].mxu1  ;;  %v5903_v43 = vpop.f32.mrb[115].mxu0  ;;  %6454 = vmatpush3.bf16.msra.mxu1 %v7011_v13 }
 0x1d9   :  { %v5840_v38 = vadd.f32 %v5839_v51, %v5838_v58  ;;  %v5904_v49 = vadd.f32 %v5903_v43, %v5902_v18  ;;  %v9217_v10 = vadd.f32 %v5837_v60, %v8881_v53  ;;  %v9220_v28 = vadd.f32 %v5901_v12, %v8884_v33  ;;  %6455 = vmatprep.subr.bf16.mxu1 %v7012_v25  ;;  %v224_v53 = vld [vmem:[%s11434_s0 + $0x670] sm:$0xff] }
 0x1da   :  { %3793 = vmatmul.mubr.bf16.gmra.mrb[220].mxu0 %v1062_v30  ;;  %3890 = vmatmul.mubr.bf16.gmra.mrb[220].mxu1 %v872_v55  ;;  %v248_v33 = vld [vmem:[%s11434_s0 + $0x730] sm:$0xff]  ;;  %v1111_v60 = vpack.c.bf16 %v679_v59, %v655_v57  ;;  %v921_v12 = vpack.c.bf16 %v297_v8, %v273_v6 }
 0x1db   :  { %3800 = vmatprep.mubr.bf16.mxu0 %v1087_v26  ;;  %3897 = vmatprep.mubr.bf16.mxu1 %v897_v36  ;;  %v9244_v27 = vadd.f32 %v5840_v38, %v8899_v22  ;;  %v9247_v3 = vadd.f32 %v5904_v49, %v8902_v15  ;;  %v7018_v22 = vld [vmem:[%s11433_s1 + $0x5c0] sm:$0xff]   ;;  %v896_v25 = vpack.c.bf16 %v248_v33, %v224_v53  ;;  %v703_v49 = vld [vmem:[%s11434_s0 + $0x1568] sm:$0xff]  ;;  %v321_v53 = vld [vmem:[%s11434_s0 + $0x978] sm:$0xff] }
 0x1dc   :  { %6456 = vmatpush3.bf16.msra.mxu1 %v7013_v56  ;;  %v654_v56 = vld [vmem:[%s11434_s0 + $0x13e0] sm:$0xff]  ;;  %v345_v33 = vld [vmem:[%s11434_s0 + $0xa38] sm:$0xff] }
 0x1dd   :  { %v5841_v31 = vpop.f32.mrb[116].mxu1  ;;  %v5905_v13 = vpop.f32.mrb[116].mxu0  ;;  %6457 = vmatprep.subr.bf16.mxu1 %v7014_v9  ;;  %v678_v38 = vld [vmem:[%s11434_s0 + $0x14a0] sm:$0xff] }
 0x1de   :  { %v5842_v15 = vpop.f32.mrb[117].mxu1  ;;  %v5906_v17 = vpop.f32.mrb[117].mxu0  ;;  %v1110_v8 = vpack.c.bf16 %v678_v38, %v654_v56  ;;  %v369_v56 = vld [vmem:[%s11434_s0 + $0xaf8] sm:$0xff] }
 0x1df   :  { %v5843_v41 = vadd.f32 %v5842_v15, %v5841_v31  ;;  %v5907_v4 = vadd.f32 %v5906_v17, %v5905_v13  ;;  %v5844_v30 = vpop.f32.mrb[118].mxu1  ;;  %v5908_v55 = vpop.f32.mrb[118].mxu0  ;;  %v1135_v15 = vpack.c.bf16 %v727_v24, %v703_v49  ;;  %v945_v17 = vpack.c.bf16 %v345_v33, %v321_v53  ;;  %v393_v38 = vld [vmem:[%s11434_s0 + $0xbb8] sm:$0xff] }
 0x1e0   :  { %v5845_v58 = vpop.f32.mrb[119].mxu1  ;;  %v5909_v18 = vpop.f32.mrb[119].mxu0  ;;  %6458 = vmatpush3.bf16.msra.mxu1 %v7015_v20 }
 0x1e1   :  { %v5846_v26 = vadd.f32 %v5845_v58, %v5844_v30  ;;  %v5910_v36 = vadd.f32 %v5909_v18, %v5908_v55  ;;  %v9262_v51 = vadd.f32 %v5843_v41, %v8923_v2  ;;  %v9265_v43 = vadd.f32 %v5907_v4, %v8926_v16  ;;  %6667 = vmatprep.subr.bf16.mxu1 %v7018_v22  ;;  %v272_v2 = vld [vmem:[%s11434_s0 + $0x7f0] sm:$0xff]  ;;  %v751_v58 = vld [vmem:[%s11434_s0 + $0x16e8] sm:$0xff] }
 0x1e2   :  { %3801 = vmatmul.mubr.bf16.gmra.mrb[224].mxu0 %v1086_v5  ;;  %3898 = vmatmul.mubr.bf16.gmra.mrb[224].mxu1 %v896_v25  ;;  %v296_v16 = vld [vmem:[%s11434_s0 + $0x8b0] sm:$0xff] }
 0x1e3   :  { %3808 = vmatprep.mubr.bf16.mxu0 %v1111_v60  ;;  %3905 = vmatprep.mubr.bf16.mxu1 %v921_v12  ;;  %v9283_v9 = vadd.f32 %v5846_v26, %v8935_v29  ;;  %v9286_v19 = vadd.f32 %v5910_v36, %v8938_v62  ;;  %v920_v20 = vpack.c.bf16 %v296_v16, %v272_v2  ;;  %v702_v60 = vld [vmem:[%s11434_s0 + $0x1560] sm:$0xff]  ;;  %v775_v36 = vld [vmem:[%s11434_s0 + $0x17a8] sm:$0xff] }
 0x1e4   :  { %v726_v12 = vld [vmem:[%s11434_s0 + $0x1620] sm:$0xff] }
 0x1e5   :  { %v5847_v57 = vpop.f32.mrb[120].mxu1  ;;  %v5911_v59 = vpop.f32.mrb[120].mxu0  ;;  %v1134_v24 = vpack.c.bf16 %v726_v12, %v702_v60  ;;  %v35_v60 = vld [vmem:[%s11434_s0 + $0x88] sm:$0xff] }
 0x1e6   :  { %v5848_v6 = vpop.f32.mrb[121].mxu1  ;;  %v5912_v29 = vpop.f32.mrb[121].mxu0  ;;  %v59_v12 = vld [vmem:[%s11434_s0 + $0x148] sm:$0xff] }
 0x1e7   :  { %v5849_v62 = vadd.f32 %v5848_v6, %v5847_v57  ;;  %v5913_v31 = vadd.f32 %v5912_v29, %v5911_v59  ;;  %v5850_v13 = vpop.f32.mrb[122].mxu1  ;;  %v5914_v22 = vpop.f32.mrb[122].mxu0  ;;  %v1159_v6 = vpack.c.bf16 %v775_v36, %v751_v58  ;;  %v969_v29 = vpack.c.bf16 %v393_v38, %v369_v56 }
 0x1e8   :  { %v5851_v5 = vpop.f32.mrb[123].mxu1  ;;  %v5915_v25 = vpop.f32.mrb[123].mxu0 }
 0x1e9   :  { %v5852_v41 = vadd.f32 %v5851_v5, %v5850_v13  ;;  %v5916_v4 = vadd.f32 %v5915_v25, %v5914_v22  ;;  %v9298_v30 = vadd.f32 %v5849_v62, %v8959_v45  ;;  %v9301_v55 = vadd.f32 %v5913_v31, %v8962_v34  ;;  %v320_v45 = vld [vmem:[%s11434_s0 + $0x970] sm:$0xff]  ;;  %v417_v5 = vld [vmem:[%s11434_s0 + $0xc78] sm:$0xff] }
 0x1ea   :  { %3809 = vmatmul.mubr.bf16.gmra.mrb[228].mxu0 %v1110_v8  ;;  %3906 = vmatmul.mubr.bf16.gmra.mrb[228].mxu1 %v920_v20  ;;  %v344_v34 = vld [vmem:[%s11434_s0 + $0xa30] sm:$0xff] }
 0x1eb   :  { %3816 = vmatprep.mubr.bf16.mxu0 %v1135_v15  ;;  %3913 = vmatprep.mubr.bf16.mxu1 %v945_v17  ;;  %v9319_v18 = vadd.f32 %v5852_v41, %v8971_v11  ;;  %v9322_v26 = vadd.f32 %v5916_v4, %v8974_v54  ;;  %v944_v53 = vpack.c.bf16 %v344_v34, %v320_v45  ;;  %v750_v15 = vld [vmem:[%s11434_s0 + $0x16e0] sm:$0xff]  ;;  %v441_v4 = vld [vmem:[%s11434_s0 + $0xd38] sm:$0xff] }
 0x1ec   :  { %v774_v17 = vld [vmem:[%s11434_s0 + $0x17a0] sm:$0xff] }
 0x1ed   :  { %v5853_v2 = vpop.f32.mrb[124].mxu1  ;;  %v5917_v16 = vpop.f32.mrb[124].mxu0  ;;  %v1158_v36 = vpack.c.bf16 %v774_v17, %v750_v15  ;;  %v83_v15 = vld [vmem:[%s11434_s0 + $0x208] sm:$0xff] }
 0x1ee   :  { %v5854_v49 = vpop.f32.mrb[125].mxu1  ;;  %v5918_v11 = vpop.f32.mrb[125].mxu0  ;;  %v107_v17 = vld [vmem:[%s11434_s0 + $0x2c8] sm:$0xff] }
 0x1ef   :  { %v5855_v54 = vadd.f32 %v5854_v49, %v5853_v2  ;;  %v5919_v33 = vadd.f32 %v5918_v11, %v5917_v16  ;;  %v5856_v57 = vpop.f32.mrb[126].mxu1  ;;  %v5920_v59 = vpop.f32.mrb[126].mxu0  ;;  %v993_v49 = vpack.c.bf16 %v441_v4, %v417_v5  ;;  %v803_v11 = vpack.c.bf16 %v59_v12, %v35_v60 }
 0x1f0   :  { %v5857_v8 = vpop.f32.mrb[127].mxu1  ;;  %v5921_v20 = vpop.f32.mrb[127].mxu0 }
 0x1f1   :  { %v5858_v62 = vadd.f32 %v5857_v8, %v5856_v57  ;;  %v5922_v31 = vadd.f32 %v5921_v20, %v5920_v59  ;;  %v9334_v13 = vadd.f32 %v5855_v54, %v8995_v7  ;;  %v9337_v22 = vadd.f32 %v5919_v33, %v8998_v37  ;;  %v368_v7 = vld [vmem:[%s11434_s0 + $0xaf0] sm:$0xff]  ;;  %v465_v8 = vld [vmem:[%s11434_s0 + $0xdf8] sm:$0xff] }
 0x1f2   :  { %3817 = vmatmul.mubr.bf16.gmra.mrb[232].mxu0 %v1134_v24  ;;  %3914 = vmatmul.mubr.bf16.gmra.mrb[232].mxu1 %v944_v53  ;;  %v392_v37 = vld [vmem:[%s11434_s0 + $0xbb0] sm:$0xff] }
 0x1f3   :  { %3824 = vmatprep.mubr.bf16.mxu0 %v1159_v6  ;;  %3921 = vmatprep.mubr.bf16.mxu1 %v969_v29  ;;  %v9355_v25 = vadd.f32 %v5858_v62, %v9007_v35  ;;  %v9358_v41 = vadd.f32 %v5922_v31, %v9010_v40  ;;  %v968_v56 = vpack.c.bf16 %v392_v37, %v368_v7  ;;  %v416_v6 = vld [vmem:[%s11434_s0 + $0xc70] sm:$0xff]  ;;  %v489_v31 = vld [vmem:[%s11434_s0 + $0xeb8] sm:$0xff] }
 0x1f4   :  { %v440_v29 = vld [vmem:[%s11434_s0 + $0xd30] sm:$0xff] }
 0x1f5   :  { %v5859_v45 = vpop.f32.mrb[128].mxu1  ;;  %v5923_v34 = vpop.f32.mrb[128].mxu0  ;;  %v992_v4 = vpack.c.bf16 %v440_v29, %v416_v6 }
 0x1f6   :  { %v5860_v58 = vpop.f32.mrb[129].mxu1  ;;  %v5924_v35 = vpop.f32.mrb[129].mxu0 }
 0x1f7   :  { %v5861_v40 = vadd.f32 %v5860_v58, %v5859_v45  ;;  %v5925_v38 = vadd.f32 %v5924_v35, %v5923_v34  ;;  %v5862_v2 = vpop.f32.mrb[130].mxu1  ;;  %v5926_v16 = vpop.f32.mrb[130].mxu0  ;;  %v1017_v58 = vpack.c.bf16 %v489_v31, %v465_v8  ;;  %v827_v35 = vpack.c.bf16 %v107_v17, %v83_v15  ;;  %v7021_v8 = vld [vmem:[%s11433_s1 + $0x508] sm:$0xff]  }
 0x1f8   :  { %v5863_v24 = vpop.f32.mrb[131].mxu1  ;;  %v5927_v53 = vpop.f32.mrb[131].mxu0 }
 0x1f9   :  { %v5864_v54 = vadd.f32 %v5863_v24, %v5862_v2  ;;  %v5928_v33 = vadd.f32 %v5927_v53, %v5926_v16  ;;  %v9370_v57 = vadd.f32 %v5861_v40, %v9031_v42  ;;  %v9373_v59 = vadd.f32 %v5925_v38, %v9034_v1  ;;  %v34_v42 = vld [vmem:[%s11434_s0 + $0x80] sm:$0xff]  ;;  %v464_v24 = vld [vmem:[%s11434_s0 + $0xdf0] sm:$0xff] }
 0x1fa   :  { %3825 = vmatmul.mubr.bf16.gmra.mrb[236].mxu0 %v1158_v36  ;;  %3922 = vmatmul.mubr.bf16.gmra.mrb[236].mxu1 %v968_v56  ;;  %v58_v1 = vld [vmem:[%s11434_s0 + $0x140] sm:$0xff]  ;;  %v488_v53 = vld [vmem:[%s11434_s0 + $0xeb0] sm:$0xff] }
 0x1fb   :  { %3929 = vmatprep.mubr.bf16.mxu1 %v993_v49  ;;  %4026 = vmatprep.mubr.bf16.mxu0 %v803_v11  ;;  %v9391_v20 = vadd.f32 %v5864_v54, %v9040_v23  ;;  %v9394_v62 = vadd.f32 %v5928_v33, %v9043_v46  ;;  %v802_v60 = vpack.c.bf16 %v58_v1, %v34_v42  ;;  %v7017_v40 = vld [vmem:[%s11433_s1 + $0x500] sm:$0xff]   ;;  %v7020_v11 = vld [vmem:[%s11433_s1 + $0x548] sm:$0xff]   ;;  %v513_v54 = vld [vmem:[%s11434_s0 + $0xf78] sm:$0xff] }
 0x1fc   :  { %v537_v33 = vld [vmem:[%s11434_s0 + $0x1038] sm:$0xff]  ;;  %v131_v42 = vld [vmem:[%s11434_s0 + $0x388] sm:$0xff] }
 0x1fd   :  { %v5865_v7 = vpop.f32.mrb[132].mxu1  ;;  %v5929_v37 = vpop.f32.mrb[132].mxu0  ;;  %v155_v1 = vld [vmem:[%s11434_s0 + $0x448] sm:$0xff] }
 0x1fe   :  { %v5866_v5 = vpop.f32.mrb[133].mxu1  ;;  %v5930_v23 = vpop.f32.mrb[133].mxu0 }
 0x1ff   :  { %v5867_v46 = vadd.f32 %v5866_v5, %v5865_v7  ;;  %v5931_v12 = vadd.f32 %v5930_v23, %v5929_v37  ;;  %v5868_v45 = vpop.f32.mrb[134].mxu1  ;;  %v5932_v34 = vpop.f32.mrb[134].mxu0  ;;  %v1016_v7 = vpack.c.bf16 %v488_v53, %v464_v24  ;;  %v561_v24 = vld [vmem:[%s11434_s0 + $0x10f8] sm:$0xff] }
 0x200   :  { %v5869_v36 = vpop.f32.mrb[135].mxu1  ;;  %v5933_v56 = vpop.f32.mrb[135].mxu0  ;;  %v585_v53 = vld [vmem:[%s11434_s0 + $0x11b8] sm:$0xff] }
 0x201   :  { %v5870_v38 = vadd.f32 %v5869_v36, %v5868_v45  ;;  %v5934_v2 = vadd.f32 %v5933_v56, %v5932_v34  ;;  %v9409_v16 = vadd.f32 %v5867_v46, %v9073_v48  ;;  %v9412_v49 = vadd.f32 %v5931_v12, %v9076_v63  ;;  %v82_v48 = vld [vmem:[%s11434_s0 + $0x200] sm:$0xff] }
 0x202   :  { %3930 = vmatmul.mubr.bf16.gmra.mrb[240].mxu1 %v992_v4  ;;  %4027 = vmatmul.mubr.bf16.vlgmr.msra.gmra.mrb[240].mxu0 %v802_v60  ;;  %v106_v63 = vld [vmem:[%s11434_s0 + $0x2c0] sm:$0xff]  ;;  %v1041_v46 = vpack.c.bf16 %v537_v33, %v513_v54  ;;  %v851_v12 = vpack.c.bf16 %v155_v1, %v131_v42  ;;  %v179_v54 = vld [vmem:[%s11434_s0 + $0x508] sm:$0xff]  ;;  %v7029_v42 = vld [vmem:[%s11433_s1 + $0x518] sm:$0xff]  }
 0x203   :  { %3937 = vmatprep.mubr.bf16.mxu1 %v1017_v58  ;;  %4034 = vmatprep.mubr.bf16.mxu0 %v827_v35  ;;  %v9436_v6 = vadd.f32 %v5870_v38, %v9094_v52  ;;  %v9439_v29 = vadd.f32 %v5934_v2, %v9097_v14  ;;  %v7024_v52 = vld [vmem:[%s11433_s1 + $0x550] sm:$0xff]   ;;  %v826_v37 = vpack.c.bf16 %v106_v63, %v82_v48  ;;  %v7028_v38 = vld [vmem:[%s11433_s1 + $0x558] sm:$0xff]   ;;  %v203_v33 = vld [vmem:[%s11434_s0 + $0x5c8] sm:$0xff] }
 0x204   :  { %6556 = vmatpush3.bf16.msra.mxu0 %v7017_v40  ;;  %v7025_v58 = vld [vmem:[%s11433_s1 + $0x510] sm:$0xff]  }
 0x205   :  { %v5871_v31 = vpop.f32.mrb[136].mxu1  ;;  %v5935_v15 = vpop.f32.mrb[136].mxu0  ;;  %6557 = vmatprep.subr.bf16.mxu0 %v7020_v11  ;;  %v512_v2 = vld [vmem:[%s11434_s0 + $0xf70] sm:$0xff] }
 0x206   :  { %v5872_v14 = vpop.f32.mrb[137].mxu1  ;;  %v5936_v17 = vpop.f32.mrb[137].mxu0  ;;  %v536_v11 = vld [vmem:[%s11434_s0 + $0x1030] sm:$0xff] }
 0x207   :  { %v5873_v5 = vadd.f32 %v5872_v14, %v5871_v31  ;;  %v5937_v23 = vadd.f32 %v5936_v17, %v5935_v15  ;;  %v5874_v4 = vpop.f32.mrb[138].mxu1  ;;  %v5938_v60 = vpop.f32.mrb[138].mxu0  ;;  %v1040_v15 = vpack.c.bf16 %v536_v11, %v512_v2  ;;  %v609_v2 = vld [vmem:[%s11434_s0 + $0x1278] sm:$0xff] }
 0x208   :  { %v5875_v45 = vpop.f32.mrb[139].mxu1  ;;  %v5939_v34 = vpop.f32.mrb[139].mxu0  ;;  %6558 = vmatpush3.bf16.msra.mxu0 %v7021_v8  ;;  %v633_v11 = vld [vmem:[%s11434_s0 + $0x1338] sm:$0xff] }
 0x209   :  { %v5876_v35 = vadd.f32 %v5875_v45, %v5874_v4  ;;  %v5940_v36 = vadd.f32 %v5939_v34, %v5938_v60  ;;  %v9457_v56 = vadd.f32 %v5873_v5, %v9121_v44  ;;  %v9460_v40 = vadd.f32 %v5937_v23, %v9124_v32  ;;  %6559 = vmatprep.subr.bf16.mxu0 %v7024_v52  ;;  %v130_v44 = vld [vmem:[%s11434_s0 + $0x380] sm:$0xff] }
 0x20a   :  { %3938 = vmatmul.mubr.bf16.gmra.mrb[244].mxu1 %v1016_v7  ;;  %4035 = vmatmul.mubr.bf16.gmra.mrb[244].mxu0 %v826_v37  ;;  %v154_v32 = vld [vmem:[%s11434_s0 + $0x440] sm:$0xff]  ;;  %v1065_v5 = vpack.c.bf16 %v585_v53, %v561_v24  ;;  %v875_v23 = vpack.c.bf16 %v203_v33, %v179_v54  ;;  %v227_v24 = vld [vmem:[%s11434_s0 + $0x688] sm:$0xff] }
 0x20b   :  { %3945 = vmatprep.mubr.bf16.mxu1 %v1041_v46  ;;  %4042 = vmatprep.mubr.bf16.mxu0 %v851_v12  ;;  %v9484_v48 = vadd.f32 %v5876_v35, %v9139_v61  ;;  %v9487_v63 = vadd.f32 %v5940_v36, %v9142_v21  ;;  %v7030_v61 = vld [vmem:[%s11433_s1 + $0x560] sm:$0xff]   ;;  %v850_v52 = vpack.c.bf16 %v154_v32, %v130_v44  ;;  %v7034_v35 = vld [vmem:[%s11433_s1 + $0x568] sm:$0xff]   ;;  %v560_v36 = vld [vmem:[%s11434_s0 + $0x10f0] sm:$0xff] }
 0x20c   :  { %6560 = vmatpush3.bf16.msra.mxu0 %v7025_v58  ;;  %v7032_v46 = vld [vmem:[%s11433_s1 + $0x520] sm:$0xff]   ;;  %v251_v53 = vld [vmem:[%s11434_s0 + $0x748] sm:$0xff] }
 0x20d   :  { %v5877_v1 = vpop.f32.mrb[140].mxu1  ;;  %v5941_v8 = vpop.f32.mrb[140].mxu0  ;;  %6561 = vmatprep.subr.bf16.mxu0 %v7028_v38  ;;  %v584_v38 = vld [vmem:[%s11434_s0 + $0x11b0] sm:$0xff]  ;;  %v7035_v54 = vld [vmem:[%s11433_s1 + $0x528] sm:$0xff]  }
 0x20e   :  { %v5878_v21 = vpop.f32.mrb[141].mxu1  ;;  %v5942_v31 = vpop.f32.mrb[141].mxu0 }
 0x20f   :  { %v5879_v14 = vadd.f32 %v5878_v21, %v5877_v1  ;;  %v5943_v17 = vadd.f32 %v5942_v31, %v5941_v8  ;;  %v5880_v7 = vpop.f32.mrb[142].mxu1  ;;  %v5944_v37 = vpop.f32.mrb[142].mxu0  ;;  %v1064_v8 = vpack.c.bf16 %v584_v38, %v560_v36  ;;  %v250_v38 = vld [vmem:[%s11434_s0 + $0x740] sm:$0xff] }
 0x210   :  { %v5881_v4 = vpop.f32.mrb[143].mxu1  ;;  %v5945_v60 = vpop.f32.mrb[143].mxu0  ;;  %6562 = vmatpush3.bf16.msra.mxu0 %v7029_v42 }
 0x211   :  { %v5882_v12 = vadd.f32 %v5881_v4, %v5880_v7  ;;  %v5946_v45 = vadd.f32 %v5945_v60, %v5944_v37  ;;  %v9505_v34 = vadd.f32 %v5879_v14, %v9169_v0  ;;  %v9508_v58 = vadd.f32 %v5943_v17, %v9172_v50  ;;  %6563 = vmatprep.subr.bf16.mxu0 %v7030_v61  ;;  %v178_v0 = vld [vmem:[%s11434_s0 + $0x500] sm:$0xff] }
 0x212   :  { %3946 = vmatmul.mubr.bf16.gmra.mrb[248].mxu1 %v1040_v15  ;;  %4043 = vmatmul.mubr.bf16.gmra.mrb[248].mxu0 %v850_v52  ;;  %v202_v50 = vld [vmem:[%s11434_s0 + $0x5c0] sm:$0xff]  ;;  %v1089_v14 = vpack.c.bf16 %v633_v11, %v609_v2  ;;  %v899_v17 = vpack.c.bf16 %v251_v53, %v227_v24  ;;  %v7039_v2 = vld [vmem:[%s11433_s1 + $0x538] sm:$0xff]  }
 0x213   :  { %3953 = vmatprep.mubr.bf16.mxu1 %v1065_v5  ;;  %4050 = vmatprep.mubr.bf16.mxu0 %v875_v23  ;;  %v9532_v44 = vadd.f32 %v5882_v12, %v9187_v39  ;;  %v9535_v32 = vadd.f32 %v5946_v45, %v9190_v47  ;;  %v7036_v39 = vld [vmem:[%s11433_s1 + $0x570] sm:$0xff]   ;;  %v874_v61 = vpack.c.bf16 %v202_v50, %v178_v0  ;;  %v7038_v12 = vld [vmem:[%s11433_s1 + $0x578] sm:$0xff]  }
 0x214   :  { %6564 = vmatpush3.bf16.msra.mxu0 %v7032_v46  ;;  %v7037_v5 = vld [vmem:[%s11433_s1 + $0x530] sm:$0xff]   ;;  %v657_v0 = vld [vmem:[%s11434_s0 + $0x13f8] sm:$0xff] }
 0x215   :  { %v5947_v33 = vpop.f32.mrb[144].mxu0  ;;  %v6011_v42 = vpop.f32.mrb[144].mxu1  ;;  %6565 = vmatprep.subr.bf16.mxu0 %v7034_v35  ;;  %v608_v45 = vld [vmem:[%s11434_s0 + $0x1270] sm:$0xff]  ;;  %v681_v50 = vld [vmem:[%s11434_s0 + $0x14b8] sm:$0xff] }
 0x216   :  { %v5948_v47 = vpop.f32.mrb[145].mxu0  ;;  %v6012_v1 = vpop.f32.mrb[145].mxu1 }
 0x217   :  { %v5949_v21 = vadd.f32 %v5948_v47, %v5947_v33  ;;  %v6013_v31 = vadd.f32 %v6012_v1, %v6011_v42  ;;  %v5950_v15 = vpop.f32.mrb[146].mxu0  ;;  %v6014_v52 = vpop.f32.mrb[146].mxu1 }
 0x218   :  { %v5951_v7 = vpop.f32.mrb[147].mxu0  ;;  %v6015_v37 = vpop.f32.mrb[147].mxu1  ;;  %6566 = vmatpush3.bf16.msra.mxu0 %v7035_v54 }
 0x219   :  { %v9553_v23 = vadd.f32 %v5949_v21, %v9217_v10  ;;  %v9556_v4 = vadd.f32 %v6013_v31, %v9220_v28  ;;  %v5952_v60 = vadd.f32 %v5951_v7, %v5950_v15  ;;  %v6016_v46 = vadd.f32 %v6015_v37, %v6014_v52  ;;  %6567 = vmatprep.subr.bf16.mxu0 %v7036_v39  ;;  %v632_v10 = vld [vmem:[%s11434_s0 + $0x1330] sm:$0xff]  ;;  %v226_v28 = vld [vmem:[%s11434_s0 + $0x680] sm:$0xff] }
 0x21a   :  { %3954 = vmatmul.mubr.bf16.gmra.mrb[252].mxu1 %v1064_v8  ;;  %4051 = vmatmul.mubr.bf16.gmra.mrb[252].mxu0 %v874_v61  ;;  %v1088_v33 = vpack.c.bf16 %v632_v10, %v608_v45  ;;  %v898_v42 = vpack.c.bf16 %v250_v38, %v226_v28  ;;  %v1113_v61 = vpack.c.bf16 %v681_v50, %v657_v0  ;;  %v656_v37 = vld [vmem:[%s11434_s0 + $0x13f0] sm:$0xff]  ;;  %v347_v45 = vld [vmem:[%s11434_s0 + $0xa48] sm:$0xff] }
 0x21b   :  { %v9571_v35 = vadd.f32 %v5952_v60, %v9244_v27  ;;  %v9574_v36 = vadd.f32 %v6016_v46, %v9247_v3  ;;  %3961 = vmatprep.mubr.bf16.mxu1 %v1089_v14  ;;  %4058 = vmatprep.mubr.bf16.mxu0 %v899_v17  ;;  %v275_v27 = vld [vmem:[%s11434_s0 + $0x808] sm:$0xff]  ;;  %v298_v46 = vld [vmem:[%s11434_s0 + $0x8c0] sm:$0xff] }
 0x21c   :  { %v299_v3 = vld [vmem:[%s11434_s0 + $0x8c8] sm:$0xff]  ;;  %6568 = vmatpush3.bf16.msra.mxu0 %v7037_v5  ;;  %v680_v5 = vld [vmem:[%s11434_s0 + $0x14b0] sm:$0xff] }
 0x21d   :  { %v5953_v11 = vpop.f32.mrb[148].mxu0  ;;  %v6017_v24 = vpop.f32.mrb[148].mxu1  ;;  %6569 = vmatprep.subr.bf16.mxu0 %v7038_v12  ;;  %v923_v21 = vpack.c.bf16 %v299_v3, %v275_v27  ;;  %v705_v12 = vld [vmem:[%s11434_s0 + $0x1578] sm:$0xff]  ;;  %v1112_v50 = vpack.c.bf16 %v680_v5, %v656_v37 }
 0x21e   :  { %v5954_v53 = vpop.f32.mrb[149].mxu0  ;;  %v6018_v54 = vpop.f32.mrb[149].mxu1 }
 0x21f   :  { %v5955_v39 = vadd.f32 %v5954_v53, %v5953_v11  ;;  %v6019_v47 = vadd.f32 %v6018_v54, %v6017_v24  ;;  %v5956_v1 = vpop.f32.mrb[150].mxu0  ;;  %v6020_v8 = vpop.f32.mrb[150].mxu1 }
 0x220   :  { %v5957_v31 = vpop.f32.mrb[151].mxu0  ;;  %v6021_v15 = vpop.f32.mrb[151].mxu1  ;;  %6570 = vmatpush3.bf16.msra.mxu0 %v7039_v2 }
 0x221   :  { %v9595_v52 = vadd.f32 %v5955_v39, %v9262_v51  ;;  %v9598_v14 = vadd.f32 %v6019_v47, %v9265_v43  ;;  %v5958_v17 = vadd.f32 %v5957_v31, %v5956_v1  ;;  %v6022_v7 = vadd.f32 %v6021_v15, %v6020_v8  ;;  %v274_v43 = vld [vmem:[%s11434_s0 + $0x800] sm:$0xff] }
 0x222   :  { %3962 = vmatmul.mubr.bf16.gmra.mrb[0].mxu1 %v1088_v33  ;;  %4059 = vmatmul.mubr.bf16.gmra.mrb[0].mxu0 %v898_v42  ;;  %v922_v27 = vpack.c.bf16 %v298_v46, %v274_v43  ;;  %v346_v15 = vld [vmem:[%s11434_s0 + $0xa40] sm:$0xff] }
 0x223   :  { %v9607_v60 = vadd.f32 %v5958_v17, %v9283_v9  ;;  %v9610_v51 = vadd.f32 %v6022_v7, %v9286_v19  ;;  %3969 = vmatprep.mubr.bf16.mxu1 %v1113_v61  ;;  %4066 = vmatprep.mubr.bf16.mxu0 %v923_v21  ;;  %v729_v9 = vld [vmem:[%s11434_s0 + $0x1638] sm:$0xff]  ;;  %v323_v19 = vld [vmem:[%s11434_s0 + $0x988] sm:$0xff]  ;;  %v704_v61 = vld [vmem:[%s11434_s0 + $0x1570] sm:$0xff] }
 0x224   :  { %v1137_v53 = vpack.c.bf16 %v729_v9, %v705_v12  ;;  %v947_v54 = vpack.c.bf16 %v347_v45, %v323_v19  ;;  %v728_v21 = vld [vmem:[%s11434_s0 + $0x1630] sm:$0xff]  ;;  %v753_v17 = vld [vmem:[%s11434_s0 + $0x16f8] sm:$0xff]  ;;  %v395_v7 = vld [vmem:[%s11434_s0 + $0xbc8] sm:$0xff] }
 0x225   :  { %v5959_v10 = vpop.f32.mrb[152].mxu0  ;;  %v6023_v28 = vpop.f32.mrb[152].mxu1  ;;  %v1136_v12 = vpack.c.bf16 %v728_v21, %v704_v61 }
 0x226   :  { %v5960_v38 = vpop.f32.mrb[153].mxu0  ;;  %v6024_v0 = vpop.f32.mrb[153].mxu1 }
 0x227   :  { %v5961_v3 = vadd.f32 %v5960_v38, %v5959_v10  ;;  %v6025_v2 = vadd.f32 %v6024_v0, %v6023_v28  ;;  %v5962_v11 = vpop.f32.mrb[154].mxu0  ;;  %v6026_v24 = vpop.f32.mrb[154].mxu1 }
 0x228   :  { %v5963_v33 = vpop.f32.mrb[155].mxu0  ;;  %v6027_v42 = vpop.f32.mrb[155].mxu1 }
 0x229   :  { %v9631_v39 = vadd.f32 %v5961_v3, %v9298_v30  ;;  %v9634_v47 = vadd.f32 %v6025_v2, %v9301_v55  ;;  %v5964_v1 = vadd.f32 %v5963_v33, %v5962_v11  ;;  %v6028_v8 = vadd.f32 %v6027_v42, %v6026_v24  ;;  %v322_v55 = vld [vmem:[%s11434_s0 + $0x980] sm:$0xff] }
 0x22a   :  { %3970 = vmatmul.mubr.bf16.gmra.mrb[4].mxu1 %v1112_v50  ;;  %4067 = vmatmul.mubr.bf16.gmra.mrb[4].mxu0 %v922_v27  ;;  %v946_v9 = vpack.c.bf16 %v346_v15, %v322_v55  ;;  %v394_v42 = vld [vmem:[%s11434_s0 + $0xbc0] sm:$0xff] }
 0x22b   :  { %v9643_v31 = vadd.f32 %v5964_v1, %v9319_v18  ;;  %v9646_v30 = vadd.f32 %v6028_v8, %v9322_v26  ;;  %3977 = vmatprep.mubr.bf16.mxu1 %v1137_v53  ;;  %4074 = vmatprep.mubr.bf16.mxu0 %v947_v54  ;;  %v777_v18 = vld [vmem:[%s11434_s0 + $0x17b8] sm:$0xff]  ;;  %v371_v26 = vld [vmem:[%s11434_s0 + $0xb08] sm:$0xff]  ;;  %v752_v53 = vld [vmem:[%s11434_s0 + $0x16f0] sm:$0xff] }
 0x22c   :  { %v1161_v38 = vpack.c.bf16 %v777_v18, %v753_v17  ;;  %v971_v0 = vpack.c.bf16 %v395_v7, %v371_v26  ;;  %v776_v54 = vld [vmem:[%s11434_s0 + $0x17b0] sm:$0xff]  ;;  %v419_v1 = vld [vmem:[%s11434_s0 + $0xc88] sm:$0xff]  ;;  %v61_v8 = vld [vmem:[%s11434_s0 + $0x158] sm:$0xff] }
 0x22d   :  { %v5965_v37 = vpop.f32.mrb[156].mxu0  ;;  %v6029_v5 = vpop.f32.mrb[156].mxu1  ;;  %v1160_v17 = vpack.c.bf16 %v776_v54, %v752_v53  ;;  %v85_v53 = vld [vmem:[%s11434_s0 + $0x218] sm:$0xff] }
 0x22e   :  { %v5966_v43 = vpop.f32.mrb[157].mxu0  ;;  %v6030_v46 = vpop.f32.mrb[157].mxu1  ;;  %v109_v54 = vld [vmem:[%s11434_s0 + $0x2d8] sm:$0xff] }
 0x22f   :  { %v5967_v19 = vadd.f32 %v5966_v43, %v5965_v37  ;;  %v6031_v45 = vadd.f32 %v6030_v46, %v6029_v5  ;;  %v5968_v10 = vpop.f32.mrb[158].mxu0  ;;  %v6032_v28 = vpop.f32.mrb[158].mxu1 }
 0x230   :  { %v5969_v50 = vpop.f32.mrb[159].mxu0  ;;  %v6033_v27 = vpop.f32.mrb[159].mxu1 }
 0x231   :  { %v9667_v3 = vadd.f32 %v5967_v19, %v9334_v13  ;;  %v9670_v2 = vadd.f32 %v6031_v45, %v9337_v22  ;;  %v5970_v11 = vadd.f32 %v5969_v50, %v5968_v10  ;;  %v6034_v24 = vadd.f32 %v6033_v27, %v6032_v28  ;;  %v370_v22 = vld [vmem:[%s11434_s0 + $0xb00] sm:$0xff]  ;;  %v60_v27 = vld [vmem:[%s11434_s0 + $0x150] sm:$0xff] }
 0x232   :  { %3978 = vmatmul.mubr.bf16.gmra.mrb[8].mxu1 %v1136_v12  ;;  %4075 = vmatmul.mubr.bf16.gmra.mrb[8].mxu0 %v946_v9  ;;  %v970_v18 = vpack.c.bf16 %v394_v42, %v370_v22 }
 0x233   :  { %v9679_v33 = vadd.f32 %v5970_v11, %v9355_v25  ;;  %v9682_v13 = vadd.f32 %v6034_v24, %v9358_v41  ;;  %3985 = vmatprep.mubr.bf16.mxu1 %v1161_v38  ;;  %4082 = vmatprep.mubr.bf16.mxu0 %v971_v0  ;;  %v443_v25 = vld [vmem:[%s11434_s0 + $0xd48] sm:$0xff]  ;;  %v37_v41 = vld [vmem:[%s11434_s0 + $0x98] sm:$0xff]  ;;  %v418_v38 = vld [vmem:[%s11434_s0 + $0xc80] sm:$0xff] }
 0x234   :  { %v995_v43 = vpack.c.bf16 %v443_v25, %v419_v1  ;;  %v805_v46 = vpack.c.bf16 %v61_v8, %v37_v41 }
 0x235   :  { %v5971_v61 = vpop.f32.mrb[160].mxu0  ;;  %v6035_v21 = vpop.f32.mrb[160].mxu1 }
 0x236   :  { %v5972_v55 = vpop.f32.mrb[161].mxu0  ;;  %v6036_v15 = vpop.f32.mrb[161].mxu1 }
 0x237   :  { %v5973_v26 = vadd.f32 %v5972_v55, %v5971_v61  ;;  %v6037_v7 = vadd.f32 %v6036_v15, %v6035_v21  ;;  %v5974_v37 = vpop.f32.mrb[162].mxu0  ;;  %v6038_v5 = vpop.f32.mrb[162].mxu1  ;;  %v7019_v55 = vld [vmem:[%s11433_s1 + $0x580] sm:$0xff]  }
 0x238   :  { %v5975_v12 = vpop.f32.mrb[163].mxu0  ;;  %v6039_v9 = vpop.f32.mrb[163].mxu1 }
 0x239   :  { %v9703_v19 = vadd.f32 %v5973_v26, %v9370_v57  ;;  %v9706_v45 = vadd.f32 %v6037_v7, %v9373_v59  ;;  %v5976_v10 = vadd.f32 %v5975_v12, %v5974_v37  ;;  %v6040_v28 = vadd.f32 %v6039_v9, %v6038_v5  ;;  %v442_v57 = vld [vmem:[%s11434_s0 + $0xd40] sm:$0xff]  ;;  %v36_v59 = vld [vmem:[%s11434_s0 + $0x90] sm:$0xff]  ;;  %v7022_v7 = vld [vmem:[%s11433_s1 + $0x5c8] sm:$0xff]  }
 0x23a   :  { %3986 = vmatmul.mubr.bf16.gmra.mrb[12].mxu1 %v1160_v17  ;;  %4083 = vmatmul.mubr.bf16.gmra.mrb[12].mxu0 %v970_v18  ;;  %v994_v1 = vpack.c.bf16 %v442_v57, %v418_v38  ;;  %v804_v25 = vpack.c.bf16 %v60_v27, %v36_v59  ;;  %v829_v26 = vpack.c.bf16 %v109_v54, %v85_v53  ;;  %v466_v12 = vld [vmem:[%s11434_s0 + $0xe00] sm:$0xff]  ;;  %v515_v38 = vld [vmem:[%s11434_s0 + $0xf88] sm:$0xff]  ;;  %v7026_v27 = vld [vmem:[%s11433_s1 + $0x5d0] sm:$0xff]  }
 0x23b   :  { %v9712_v0 = vadd.f32 %v5976_v10, %v9391_v20  ;;  %v9715_v50 = vadd.f32 %v6040_v28, %v9394_v62  ;;  %4090 = vmatprep.mubr.bf16.mxu0 %v995_v43  ;;  %4187 = vmatprep.mubr.bf16.mxu1 %v805_v46  ;;  %v467_v20 = vld [vmem:[%s11434_s0 + $0xe08] sm:$0xff]  ;;  %v490_v9 = vld [vmem:[%s11434_s0 + $0xec0] sm:$0xff] }
 0x23c   :  { %v491_v62 = vld [vmem:[%s11434_s0 + $0xec8] sm:$0xff]  ;;  %v1018_v53 = vpack.c.bf16 %v490_v9, %v466_v12  ;;  %v156_v9 = vld [vmem:[%s11434_s0 + $0x450] sm:$0xff] }
 0x23d   :  { %v5977_v11 = vpop.f32.mrb[164].mxu0  ;;  %v6041_v24 = vpop.f32.mrb[164].mxu1  ;;  %v1019_v15 = vpack.c.bf16 %v491_v62, %v467_v20  ;;  %v539_v57 = vld [vmem:[%s11434_s0 + $0x1048] sm:$0xff] }
 0x23e   :  { %v5978_v22 = vpop.f32.mrb[165].mxu0  ;;  %v6042_v42 = vpop.f32.mrb[165].mxu1  ;;  %v7023_v59 = vld [vmem:[%s11433_s1 + $0x588] sm:$0xff]  }
 0x23f   :  { %v5979_v41 = vadd.f32 %v5978_v22, %v5977_v11  ;;  %v6043_v8 = vadd.f32 %v6042_v42, %v6041_v24  ;;  %v5980_v61 = vpop.f32.mrb[166].mxu0  ;;  %v6044_v21 = vpop.f32.mrb[166].mxu1 }
 0x240   :  { %v5981_v17 = vpop.f32.mrb[167].mxu0  ;;  %v6045_v18 = vpop.f32.mrb[167].mxu1 }
 0x241   :  { %v9745_v37 = vadd.f32 %v5979_v41, %v9409_v16  ;;  %v9748_v5 = vadd.f32 %v6043_v8, %v9412_v49  ;;  %v5982_v43 = vadd.f32 %v5981_v17, %v5980_v61  ;;  %v6046_v46 = vadd.f32 %v6045_v18, %v6044_v21  ;;  %v84_v16 = vld [vmem:[%s11434_s0 + $0x210] sm:$0xff] }
 0x242   :  { %4091 = vmatmul.mubr.bf16.gmra.mrb[16].mxu0 %v994_v1  ;;  %4188 = vmatmul.mubr.bf16.vlgmr.msra.gmra.mrb[16].mxu1 %v804_v25  ;;  %v108_v49 = vld [vmem:[%s11434_s0 + $0x2d0] sm:$0xff]  ;;  %v1043_v41 = vpack.c.bf16 %v539_v57, %v515_v38  ;;  %v7033_v38 = vld [vmem:[%s11433_s1 + $0x598] sm:$0xff]  }
 0x243   :  { %v9763_v10 = vadd.f32 %v5982_v43, %v9436_v6  ;;  %v9766_v28 = vadd.f32 %v6046_v46, %v9439_v29  ;;  %6668 = vmatpush3.bf16.msra.mxu1 %v7019_v55  ;;  %4098 = vmatprep.mubr.bf16.mxu0 %v1019_v15  ;;  %v133_v6 = vld [vmem:[%s11434_s0 + $0x398] sm:$0xff]  ;;  %v828_v54 = vpack.c.bf16 %v108_v49, %v84_v16  ;;  %v7027_v55 = vld [vmem:[%s11433_s1 + $0x590] sm:$0xff]   ;;  %v514_v43 = vld [vmem:[%s11434_s0 + $0xf80] sm:$0xff] }
 0x244   :  { %4195 = vmatprep.mubr.bf16.mxu1 %v829_v26  ;;  %v157_v29 = vld [vmem:[%s11434_s0 + $0x458] sm:$0xff]  ;;  %6669 = vmatprep.subr.bf16.mxu1 %v7022_v7  ;;  %v563_v16 = vld [vmem:[%s11434_s0 + $0x1108] sm:$0xff] }
 0x245   :  { %v5983_v20 = vpop.f32.mrb[168].mxu0  ;;  %v6047_v62 = vpop.f32.mrb[168].mxu1  ;;  %v853_v8 = vpack.c.bf16 %v157_v29, %v133_v6  ;;  %v7031_v7 = vld [vmem:[%s11433_s1 + $0x5d8] sm:$0xff]   ;;  %v587_v49 = vld [vmem:[%s11434_s0 + $0x11c8] sm:$0xff]  ;;  %v7040_v6 = vld [vmem:[%s11433_s1 + $0x5e0] sm:$0xff]  }
 0x246   :  { %v5984_v11 = vpop.f32.mrb[169].mxu0  ;;  %v6048_v24 = vpop.f32.mrb[169].mxu1 }
 0x247   :  { %v5985_v22 = vadd.f32 %v5984_v11, %v5983_v20  ;;  %v6049_v42 = vadd.f32 %v6048_v24, %v6047_v62  ;;  %v5986_v1 = vpop.f32.mrb[170].mxu0  ;;  %v6050_v25 = vpop.f32.mrb[170].mxu1  ;;  %6670 = vmatpush3.bf16.msra.mxu1 %v7023_v59 }
 0x248   :  { %v5987_v61 = vpop.f32.mrb[171].mxu0  ;;  %v6051_v21 = vpop.f32.mrb[171].mxu1  ;;  %6671 = vmatprep.subr.bf16.mxu1 %v7026_v27 }
 0x249   :  { %v9790_v15 = vadd.f32 %v5985_v22, %v9457_v56  ;;  %v9793_v17 = vadd.f32 %v6049_v42, %v9460_v40  ;;  %v5988_v18 = vadd.f32 %v5987_v61, %v5986_v1  ;;  %v6052_v26 = vadd.f32 %v6051_v21, %v6050_v25  ;;  %v538_v56 = vld [vmem:[%s11434_s0 + $0x1040] sm:$0xff]  ;;  %v132_v40 = vld [vmem:[%s11434_s0 + $0x390] sm:$0xff] }
 0x24a   :  { %4099 = vmatmul.mubr.bf16.gmra.mrb[20].mxu0 %v1018_v53  ;;  %4196 = vmatmul.mubr.bf16.gmra.mrb[20].mxu1 %v828_v54  ;;  %v1042_v20 = vpack.c.bf16 %v538_v56, %v514_v43  ;;  %v852_v62 = vpack.c.bf16 %v156_v9, %v132_v40  ;;  %v1067_v22 = vpack.c.bf16 %v587_v49, %v563_v16  ;;  %v204_v56 = vld [vmem:[%s11434_s0 + $0x5d0] sm:$0xff]  ;;  %v611_v40 = vld [vmem:[%s11434_s0 + $0x1288] sm:$0xff] }
 0x24b   :  { %v9808_v46 = vadd.f32 %v5988_v18, %v9484_v48  ;;  %v9811_v12 = vadd.f32 %v6052_v26, %v9487_v63  ;;  %4106 = vmatprep.mubr.bf16.mxu0 %v1043_v41  ;;  %4203 = vmatprep.mubr.bf16.mxu1 %v853_v8  ;;  %v181_v48 = vld [vmem:[%s11434_s0 + $0x518] sm:$0xff]  ;;  %v7041_v41 = vld [vmem:[%s11433_s1 + $0x5a0] sm:$0xff]   ;;  %v7042_v18 = vld [vmem:[%s11433_s1 + $0x5e8] sm:$0xff]  }
 0x24c   :  { %v205_v63 = vld [vmem:[%s11434_s0 + $0x5d8] sm:$0xff]  ;;  %6672 = vmatpush3.bf16.msra.mxu1 %v7027_v55  ;;  %v562_v26 = vld [vmem:[%s11434_s0 + $0x1100] sm:$0xff]  ;;  %v635_v9 = vld [vmem:[%s11434_s0 + $0x1348] sm:$0xff] }
 0x24d   :  { %v5989_v57 = vpop.f32.mrb[172].mxu0  ;;  %v6053_v59 = vpop.f32.mrb[172].mxu1  ;;  %6673 = vmatprep.subr.bf16.mxu1 %v7031_v7  ;;  %v877_v42 = vpack.c.bf16 %v205_v63, %v181_v48  ;;  %v7043_v16 = vld [vmem:[%s11433_s1 + $0x5a8] sm:$0xff]   ;;  %v7044_v63 = vld [vmem:[%s11433_s1 + $0x5f0] sm:$0xff]  }
 0x24e   :  { %v5990_v29 = vpop.f32.mrb[173].mxu0  ;;  %v6054_v27 = vpop.f32.mrb[173].mxu1 }
 0x24f   :  { %v5991_v11 = vadd.f32 %v5990_v29, %v5989_v57  ;;  %v6055_v24 = vadd.f32 %v6054_v27, %v6053_v59  ;;  %v5992_v53 = vpop.f32.mrb[174].mxu0  ;;  %v6056_v54 = vpop.f32.mrb[174].mxu1 }
 0x250   :  { %v5993_v1 = vpop.f32.mrb[175].mxu0  ;;  %v6057_v25 = vpop.f32.mrb[175].mxu1  ;;  %6674 = vmatpush3.bf16.msra.mxu1 %v7033_v38 }
 0x251   :  { %v9838_v8 = vadd.f32 %v5991_v11, %v9505_v34  ;;  %v9841_v61 = vadd.f32 %v6055_v24, %v9508_v58  ;;  %v5994_v21 = vadd.f32 %v5993_v1, %v5992_v53  ;;  %v6058_v55 = vadd.f32 %v6057_v25, %v6056_v54  ;;  %6675 = vmatprep.subr.bf16.mxu1 %v7040_v6  ;;  %v586_v34 = vld [vmem:[%s11434_s0 + $0x11c0] sm:$0xff]  ;;  %v180_v58 = vld [vmem:[%s11434_s0 + $0x510] sm:$0xff] }
 0x252   :  { %4107 = vmatmul.mubr.bf16.gmra.mrb[24].mxu0 %v1042_v20  ;;  %4204 = vmatmul.mubr.bf16.gmra.mrb[24].mxu1 %v852_v62  ;;  %v1066_v59 = vpack.c.bf16 %v586_v34, %v562_v26  ;;  %v876_v6 = vpack.c.bf16 %v204_v56, %v180_v58  ;;  %v1091_v11 = vpack.c.bf16 %v635_v9, %v611_v40  ;;  %v252_v34 = vld [vmem:[%s11434_s0 + $0x750] sm:$0xff]  ;;  %v659_v58 = vld [vmem:[%s11434_s0 + $0x1408] sm:$0xff]  ;;  %v7047_v40 = vld [vmem:[%s11433_s1 + $0x5b8] sm:$0xff]  }
 0x253   :  { %v9856_v7 = vadd.f32 %v5994_v21, %v9532_v44  ;;  %v9859_v43 = vadd.f32 %v6058_v55, %v9535_v32  ;;  %4114 = vmatprep.mubr.bf16.mxu0 %v1067_v22  ;;  %4211 = vmatprep.mubr.bf16.mxu1 %v877_v42  ;;  %v229_v44 = vld [vmem:[%s11434_s0 + $0x698] sm:$0xff]  ;;  %v7045_v22 = vld [vmem:[%s11433_s1 + $0x5b0] sm:$0xff]   ;;  %v610_v55 = vld [vmem:[%s11434_s0 + $0x1280] sm:$0xff] }
 0x254   :  { %v253_v32 = vld [vmem:[%s11434_s0 + $0x758] sm:$0xff]  ;;  %6676 = vmatpush3.bf16.msra.mxu1 %v7041_v41  ;;  %v683_v56 = vld [vmem:[%s11434_s0 + $0x14c8] sm:$0xff] }
 0x255   :  { %v6059_v49 = vpop.f32.mrb[176].mxu1  ;;  %v6123_v48 = vpop.f32.mrb[176].mxu0  ;;  %6677 = vmatprep.subr.bf16.mxu1 %v7042_v18  ;;  %v901_v24 = vpack.c.bf16 %v253_v32, %v229_v44  ;;  %v7046_v21 = vld [vmem:[%s11433_s1 + $0x5f8] sm:$0xff]  }
 0x256   :  { %v6060_v38 = vpop.f32.mrb[177].mxu1  ;;  %v6124_v57 = vpop.f32.mrb[177].mxu0 }
 0x257   :  { %v6061_v29 = vadd.f32 %v6060_v38, %v6059_v49  ;;  %v6125_v27 = vadd.f32 %v6124_v57, %v6123_v48  ;;  %v6062_v20 = vpop.f32.mrb[178].mxu1  ;;  %v6126_v62 = vpop.f32.mrb[178].mxu0 }
 0x258   :  { %v6063_v53 = vpop.f32.mrb[179].mxu1  ;;  %v6127_v54 = vpop.f32.mrb[179].mxu0  ;;  %6678 = vmatpush3.bf16.msra.mxu1 %v7043_v16 }
 0x259   :  { %v9886_v42 = vadd.f32 %v6061_v29, %v9553_v23  ;;  %v9889_v1 = vadd.f32 %v6125_v27, %v9556_v4  ;;  %v6064_v25 = vadd.f32 %v6063_v53, %v6062_v20  ;;  %v6128_v41 = vadd.f32 %v6127_v54, %v6126_v62  ;;  %6679 = vmatprep.subr.bf16.mxu1 %v7044_v63  ;;  %v634_v23 = vld [vmem:[%s11434_s0 + $0x1340] sm:$0xff]  ;;  %v228_v4 = vld [vmem:[%s11434_s0 + $0x690] sm:$0xff] }
 0x25a   :  { %4115 = vmatmul.mubr.bf16.gmra.mrb[28].mxu0 %v1066_v59  ;;  %4212 = vmatmul.mubr.bf16.gmra.mrb[28].mxu1 %v876_v6  ;;  %v1090_v49 = vpack.c.bf16 %v634_v23, %v610_v55  ;;  %v900_v48 = vpack.c.bf16 %v252_v34, %v228_v4  ;;  %v1115_v6 = vpack.c.bf16 %v683_v56, %v659_v58  ;;  %v658_v54 = vld [vmem:[%s11434_s0 + $0x1400] sm:$0xff]  ;;  %v349_v55 = vld [vmem:[%s11434_s0 + $0xa58] sm:$0xff] }
 0x25b   :  { %v9904_v18 = vadd.f32 %v6064_v25, %v9571_v35  ;;  %v9907_v26 = vadd.f32 %v6128_v41, %v9574_v36  ;;  %4122 = vmatprep.mubr.bf16.mxu0 %v1091_v11  ;;  %4219 = vmatprep.mubr.bf16.mxu1 %v901_v24  ;;  %v277_v35 = vld [vmem:[%s11434_s0 + $0x818] sm:$0xff]  ;;  %v300_v41 = vld [vmem:[%s11434_s0 + $0x8d0] sm:$0xff] }
 0x25c   :  { %v301_v36 = vld [vmem:[%s11434_s0 + $0x8d8] sm:$0xff]  ;;  %6680 = vmatpush3.bf16.msra.mxu1 %v7045_v22  ;;  %v682_v22 = vld [vmem:[%s11434_s0 + $0x14c0] sm:$0xff] }
 0x25d   :  { %v6065_v9 = vpop.f32.mrb[180].mxu1  ;;  %v6129_v44 = vpop.f32.mrb[180].mxu0  ;;  %6681 = vmatprep.subr.bf16.mxu1 %v7046_v21  ;;  %v925_v29 = vpack.c.bf16 %v301_v36, %v277_v35  ;;  %v707_v21 = vld [vmem:[%s11434_s0 + $0x1588] sm:$0xff]  ;;  %v1114_v56 = vpack.c.bf16 %v682_v22, %v658_v54 }
 0x25e   :  { %v6066_v32 = vpop.f32.mrb[181].mxu1  ;;  %v6130_v16 = vpop.f32.mrb[181].mxu0 }
 0x25f   :  { %v6067_v63 = vadd.f32 %v6066_v32, %v6065_v9  ;;  %v6131_v38 = vadd.f32 %v6130_v16, %v6129_v44  ;;  %v6068_v57 = vpop.f32.mrb[182].mxu1  ;;  %v6132_v59 = vpop.f32.mrb[182].mxu0 }
 0x260   :  { %v6069_v27 = vpop.f32.mrb[183].mxu1  ;;  %v6133_v20 = vpop.f32.mrb[183].mxu0  ;;  %6682 = vmatpush3.bf16.msra.mxu1 %v7047_v40 }
 0x261   :  { %v9928_v62 = vadd.f32 %v6067_v63, %v9595_v52  ;;  %v9931_v11 = vadd.f32 %v6131_v38, %v9598_v14  ;;  %v6070_v24 = vadd.f32 %v6069_v27, %v6068_v57  ;;  %v6134_v53 = vadd.f32 %v6133_v20, %v6132_v59  ;;  %v276_v14 = vld [vmem:[%s11434_s0 + $0x810] sm:$0xff] }
 0x262   :  { %4123 = vmatmul.mubr.bf16.gmra.mrb[32].mxu0 %v1090_v49  ;;  %4220 = vmatmul.mubr.bf16.gmra.mrb[32].mxu1 %v900_v48  ;;  %v924_v35 = vpack.c.bf16 %v300_v41, %v276_v14  ;;  %v348_v20 = vld [vmem:[%s11434_s0 + $0xa50] sm:$0xff] }
 0x263   :  { %v9940_v25 = vadd.f32 %v6070_v24, %v9607_v60  ;;  %v9943_v52 = vadd.f32 %v6134_v53, %v9610_v51  ;;  %4130 = vmatprep.mubr.bf16.mxu0 %v1115_v6  ;;  %4227 = vmatprep.mubr.bf16.mxu1 %v925_v29  ;;  %v731_v60 = vld [vmem:[%s11434_s0 + $0x1648] sm:$0xff]  ;;  %v325_v51 = vld [vmem:[%s11434_s0 + $0x998] sm:$0xff]  ;;  %v706_v6 = vld [vmem:[%s11434_s0 + $0x1580] sm:$0xff] }
 0x264   :  { %v1139_v32 = vpack.c.bf16 %v731_v60, %v707_v21  ;;  %v949_v16 = vpack.c.bf16 %v349_v55, %v325_v51  ;;  %v730_v29 = vld [vmem:[%s11434_s0 + $0x1640] sm:$0xff]  ;;  %v755_v24 = vld [vmem:[%s11434_s0 + $0x1708] sm:$0xff]  ;;  %v397_v53 = vld [vmem:[%s11434_s0 + $0xbd8] sm:$0xff] }
 0x265   :  { %v6071_v23 = vpop.f32.mrb[184].mxu1  ;;  %v6135_v4 = vpop.f32.mrb[184].mxu0  ;;  %v1138_v21 = vpack.c.bf16 %v730_v29, %v706_v6 }
 0x266   :  { %v6072_v34 = vpop.f32.mrb[185].mxu1  ;;  %v6136_v58 = vpop.f32.mrb[185].mxu0 }
 0x267   :  { %v6073_v36 = vadd.f32 %v6072_v34, %v6071_v23  ;;  %v6137_v40 = vadd.f32 %v6136_v58, %v6135_v4  ;;  %v6074_v9 = vpop.f32.mrb[186].mxu1  ;;  %v6138_v44 = vpop.f32.mrb[186].mxu0 }
 0x268   :  { %v6075_v49 = vpop.f32.mrb[187].mxu1  ;;  %v6139_v48 = vpop.f32.mrb[187].mxu0 }
 0x269   :  { %v9964_v63 = vadd.f32 %v6073_v36, %v9631_v39  ;;  %v9967_v38 = vadd.f32 %v6137_v40, %v9634_v47  ;;  %v6076_v57 = vadd.f32 %v6075_v49, %v6074_v9  ;;  %v6140_v59 = vadd.f32 %v6139_v48, %v6138_v44  ;;  %v324_v47 = vld [vmem:[%s11434_s0 + $0x990] sm:$0xff] }
 0x26a   :  { %4131 = vmatmul.mubr.bf16.gmra.mrb[36].mxu0 %v1114_v56  ;;  %4228 = vmatmul.mubr.bf16.gmra.mrb[36].mxu1 %v924_v35  ;;  %v948_v60 = vpack.c.bf16 %v348_v20, %v324_v47  ;;  %v396_v48 = vld [vmem:[%s11434_s0 + $0xbd0] sm:$0xff] }
 0x26b   :  { %v9976_v27 = vadd.f32 %v6076_v57, %v9643_v31  ;;  %v9979_v39 = vadd.f32 %v6140_v59, %v9646_v30  ;;  %4138 = vmatprep.mubr.bf16.mxu0 %v1139_v32  ;;  %4235 = vmatprep.mubr.bf16.mxu1 %v949_v16  ;;  %v779_v31 = vld [vmem:[%s11434_s0 + $0x17c8] sm:$0xff]  ;;  %v373_v30 = vld [vmem:[%s11434_s0 + $0xb18] sm:$0xff]  ;;  %v754_v32 = vld [vmem:[%s11434_s0 + $0x1700] sm:$0xff] }
 0x26c   :  { %v1163_v34 = vpack.c.bf16 %v779_v31, %v755_v24  ;;  %v973_v58 = vpack.c.bf16 %v397_v53, %v373_v30  ;;  %v778_v16 = vld [vmem:[%s11434_s0 + $0x17c0] sm:$0xff]  ;;  %v421_v57 = vld [vmem:[%s11434_s0 + $0xc98] sm:$0xff]  ;;  %v63_v59 = vld [vmem:[%s11434_s0 + $0x168] sm:$0xff] }
 0x26d   :  { %v6077_v54 = vpop.f32.mrb[188].mxu1  ;;  %v6141_v22 = vpop.f32.mrb[188].mxu0  ;;  %v1162_v24 = vpack.c.bf16 %v778_v16, %v754_v32 }
 0x26e   :  { %v6078_v14 = vpop.f32.mrb[189].mxu1  ;;  %v6142_v41 = vpop.f32.mrb[189].mxu0 }
 0x26f   :  { %v6079_v51 = vadd.f32 %v6078_v14, %v6077_v54  ;;  %v6143_v55 = vadd.f32 %v6142_v41, %v6141_v22  ;;  %v6080_v23 = vpop.f32.mrb[190].mxu1  ;;  %v6144_v4 = vpop.f32.mrb[190].mxu0 }
 0x270   :  { %v6081_v56 = vpop.f32.mrb[191].mxu1  ;;  %v6145_v35 = vpop.f32.mrb[191].mxu0 }
 0x271   :  { %v10000_v36 = vadd.f32 %v6079_v51, %v9667_v3  ;;  %v10003_v40 = vadd.f32 %v6143_v55, %v9670_v2  ;;  %v6082_v9 = vadd.f32 %v6081_v56, %v6080_v23  ;;  %v6146_v44 = vadd.f32 %v6145_v35, %v6144_v4  ;;  %v372_v2 = vld [vmem:[%s11434_s0 + $0xb10] sm:$0xff]  ;;  %v62_v35 = vld [vmem:[%s11434_s0 + $0x160] sm:$0xff] }
 0x272   :  { %4139 = vmatmul.mubr.bf16.gmra.mrb[40].mxu0 %v1138_v21  ;;  %4236 = vmatmul.mubr.bf16.gmra.mrb[40].mxu1 %v948_v60  ;;  %v972_v31 = vpack.c.bf16 %v396_v48, %v372_v2 }
 0x273   :  { %v10012_v49 = vadd.f32 %v6082_v9, %v9679_v33  ;;  %v10015_v3 = vadd.f32 %v6146_v44, %v9682_v13  ;;  %4146 = vmatprep.mubr.bf16.mxu0 %v1163_v34  ;;  %4243 = vmatprep.mubr.bf16.mxu1 %v973_v58  ;;  %v445_v33 = vld [vmem:[%s11434_s0 + $0xd58] sm:$0xff]  ;;  %v39_v13 = vld [vmem:[%s11434_s0 + $0xa8] sm:$0xff]  ;;  %v420_v34 = vld [vmem:[%s11434_s0 + $0xc90] sm:$0xff] }
 0x274   :  { %v997_v14 = vpack.c.bf16 %v445_v33, %v421_v57  ;;  %v807_v41 = vpack.c.bf16 %v63_v59, %v39_v13  ;;  %v444_v58 = vld [vmem:[%s11434_s0 + $0xd50] sm:$0xff]  ;;  %v469_v9 = vld [vmem:[%s11434_s0 + $0xe18] sm:$0xff]  ;;  %v111_v44 = vld [vmem:[%s11434_s0 + $0x2e8] sm:$0xff] }
 0x275   :  { %v6083_v6 = vpop.f32.mrb[192].mxu1  ;;  %v6147_v29 = vpop.f32.mrb[192].mxu0  ;;  %v996_v57 = vpack.c.bf16 %v444_v58, %v420_v34 }
 0x276   :  { %v6084_v47 = vpop.f32.mrb[193].mxu1  ;;  %v6148_v20 = vpop.f32.mrb[193].mxu0 }
 0x277   :  { %v6085_v30 = vadd.f32 %v6084_v47, %v6083_v6  ;;  %v6149_v53 = vadd.f32 %v6148_v20, %v6147_v29  ;;  %v6086_v54 = vpop.f32.mrb[194].mxu1  ;;  %v6150_v22 = vpop.f32.mrb[194].mxu0 }
 0x278   :  { %v6087_v21 = vpop.f32.mrb[195].mxu1  ;;  %v6151_v60 = vpop.f32.mrb[195].mxu0 }
 0x279   :  { %v10036_v51 = vadd.f32 %v6085_v30, %v9703_v19  ;;  %v10039_v55 = vadd.f32 %v6149_v53, %v9706_v45  ;;  %v6088_v23 = vadd.f32 %v6087_v21, %v6086_v54  ;;  %v6152_v4 = vadd.f32 %v6151_v60, %v6150_v22  ;;  %v38_v45 = vld [vmem:[%s11434_s0 + $0xa0] sm:$0xff] }
 0x27a   :  { %4147 = vmatmul.mubr.bf16.gmra.mrb[44].mxu0 %v1162_v24  ;;  %4244 = vmatmul.mubr.bf16.gmra.mrb[44].mxu1 %v972_v31  ;;  %v806_v33 = vpack.c.bf16 %v62_v35, %v38_v45  ;;  %v110_v60 = vld [vmem:[%s11434_s0 + $0x2e0] sm:$0xff] }
 0x27b   :  { %v10048_v56 = vadd.f32 %v6088_v23, %v9712_v0  ;;  %v10051_v19 = vadd.f32 %v6152_v4, %v9715_v50  ;;  %4251 = vmatprep.mubr.bf16.mxu1 %v997_v14  ;;  %4348 = vmatprep.mubr.bf16.mxu0 %v807_v41  ;;  %v493_v0 = vld [vmem:[%s11434_s0 + $0xed8] sm:$0xff]  ;;  %v87_v50 = vld [vmem:[%s11434_s0 + $0x228] sm:$0xff]  ;;  %v468_v14 = vld [vmem:[%s11434_s0 + $0xe10] sm:$0xff] }
 0x27c   :  { %v1021_v47 = vpack.c.bf16 %v493_v0, %v469_v9  ;;  %v831_v20 = vpack.c.bf16 %v111_v44, %v87_v50  ;;  %v492_v41 = vld [vmem:[%s11434_s0 + $0xed0] sm:$0xff]  ;;  %v517_v23 = vld [vmem:[%s11434_s0 + $0xf98] sm:$0xff]  ;;  %v159_v4 = vld [vmem:[%s11434_s0 + $0x468] sm:$0xff] }
 0x27d   :  { %v6089_v32 = vpop.f32.mrb[196].mxu1  ;;  %v6153_v16 = vpop.f32.mrb[196].mxu0  ;;  %v1020_v9 = vpack.c.bf16 %v492_v41, %v468_v14 }
 0x27e   :  { %v6090_v2 = vpop.f32.mrb[197].mxu1  ;;  %v6154_v48 = vpop.f32.mrb[197].mxu0 }
 0x27f   :  { %v6091_v13 = vadd.f32 %v6090_v2, %v6089_v32  ;;  %v6155_v59 = vadd.f32 %v6154_v48, %v6153_v16  ;;  %v6092_v6 = vpop.f32.mrb[198].mxu1  ;;  %v6156_v29 = vpop.f32.mrb[198].mxu0 }
 0x280   :  { %v6093_v24 = vpop.f32.mrb[199].mxu1  ;;  %v6157_v31 = vpop.f32.mrb[199].mxu0 }
 0x281   :  { %v10072_v30 = vadd.f32 %v6091_v13, %v9745_v37  ;;  %v10075_v53 = vadd.f32 %v6155_v59, %v9748_v5  ;;  %v6094_v54 = vadd.f32 %v6093_v24, %v6092_v6  ;;  %v6158_v22 = vadd.f32 %v6157_v31, %v6156_v29  ;;  %v86_v5 = vld [vmem:[%s11434_s0 + $0x220] sm:$0xff] }
 0x282   :  { %4252 = vmatmul.mubr.bf16.gmra.mrb[48].mxu1 %v996_v57  ;;  %4349 = vmatmul.mubr.bf16.vlgmr.msra.gmra.mrb[48].mxu0 %v806_v33  ;;  %v830_v0 = vpack.c.bf16 %v110_v60, %v86_v5  ;;  %v158_v31 = vld [vmem:[%s11434_s0 + $0x460] sm:$0xff] }
 0x283   :  { %v10084_v21 = vadd.f32 %v6094_v54, %v9763_v10  ;;  %v10087_v37 = vadd.f32 %v6158_v22, %v9766_v28  ;;  %4259 = vmatprep.mubr.bf16.mxu1 %v1021_v47  ;;  %4356 = vmatprep.mubr.bf16.mxu0 %v831_v20  ;;  %v541_v10 = vld [vmem:[%s11434_s0 + $0x1058] sm:$0xff]  ;;  %v135_v28 = vld [vmem:[%s11434_s0 + $0x3a8] sm:$0xff]  ;;  %v516_v47 = vld [vmem:[%s11434_s0 + $0xf90] sm:$0xff] }
 0x284   :  { %v1045_v2 = vpack.c.bf16 %v541_v10, %v517_v23  ;;  %v855_v48 = vpack.c.bf16 %v159_v4, %v135_v28  ;;  %v540_v20 = vld [vmem:[%s11434_s0 + $0x1050] sm:$0xff]  ;;  %v565_v54 = vld [vmem:[%s11434_s0 + $0x1118] sm:$0xff]  ;;  %v207_v22 = vld [vmem:[%s11434_s0 + $0x5e8] sm:$0xff] }
 0x285   :  { %v6095_v34 = vpop.f32.mrb[200].mxu1  ;;  %v6159_v58 = vpop.f32.mrb[200].mxu0  ;;  %v1044_v23 = vpack.c.bf16 %v540_v20, %v516_v47 }
 0x286   :  { %v6096_v45 = vpop.f32.mrb[201].mxu1  ;;  %v6160_v35 = vpop.f32.mrb[201].mxu0 }
 0x287   :  { %v6097_v50 = vadd.f32 %v6096_v45, %v6095_v34  ;;  %v6161_v44 = vadd.f32 %v6160_v35, %v6159_v58  ;;  %v6098_v32 = vpop.f32.mrb[202].mxu1  ;;  %v6162_v16 = vpop.f32.mrb[202].mxu0 }
 0x288   :  { %v6099_v57 = vpop.f32.mrb[203].mxu1  ;;  %v6163_v33 = vpop.f32.mrb[203].mxu0 }
 0x289   :  { %v10108_v13 = vadd.f32 %v6097_v50, %v9790_v15  ;;  %v10111_v59 = vadd.f32 %v6161_v44, %v9793_v17  ;;  %v6100_v6 = vadd.f32 %v6099_v57, %v6098_v32  ;;  %v6164_v29 = vadd.f32 %v6163_v33, %v6162_v16  ;;  %v134_v17 = vld [vmem:[%s11434_s0 + $0x3a0] sm:$0xff] }
 0x28a   :  { %4260 = vmatmul.mubr.bf16.gmra.mrb[52].mxu1 %v1020_v9  ;;  %4357 = vmatmul.mubr.bf16.gmra.mrb[52].mxu0 %v830_v0  ;;  %v854_v10 = vpack.c.bf16 %v158_v31, %v134_v17  ;;  %v206_v33 = vld [vmem:[%s11434_s0 + $0x5e0] sm:$0xff] }
 0x28b   :  { %v10120_v24 = vadd.f32 %v6100_v6, %v9808_v46  ;;  %v10123_v15 = vadd.f32 %v6164_v29, %v9811_v12  ;;  %4267 = vmatprep.mubr.bf16.mxu1 %v1045_v2  ;;  %4364 = vmatprep.mubr.bf16.mxu0 %v855_v48  ;;  %v589_v46 = vld [vmem:[%s11434_s0 + $0x11d8] sm:$0xff]  ;;  %v183_v12 = vld [vmem:[%s11434_s0 + $0x528] sm:$0xff]  ;;  %v564_v2 = vld [vmem:[%s11434_s0 + $0x1110] sm:$0xff] }
 0x28c   :  { %v1069_v45 = vpack.c.bf16 %v589_v46, %v565_v54  ;;  %v879_v35 = vpack.c.bf16 %v207_v22, %v183_v12  ;;  %v588_v48 = vld [vmem:[%s11434_s0 + $0x11d0] sm:$0xff]  ;;  %v613_v6 = vld [vmem:[%s11434_s0 + $0x1298] sm:$0xff]  ;;  %v255_v29 = vld [vmem:[%s11434_s0 + $0x768] sm:$0xff] }
 0x28d   :  { %v6101_v14 = vpop.f32.mrb[204].mxu1  ;;  %v6165_v41 = vpop.f32.mrb[204].mxu0  ;;  %v1068_v54 = vpack.c.bf16 %v588_v48, %v564_v2 }
 0x28e   :  { %v6102_v5 = vpop.f32.mrb[205].mxu1  ;;  %v6166_v60 = vpop.f32.mrb[205].mxu0 }
 0x28f   :  { %v6103_v28 = vadd.f32 %v6102_v5, %v6101_v14  ;;  %v6167_v4 = vadd.f32 %v6166_v60, %v6165_v41  ;;  %v6104_v34 = vpop.f32.mrb[206].mxu1  ;;  %v6168_v58 = vpop.f32.mrb[206].mxu0 }
 0x290   :  { %v6105_v9 = vpop.f32.mrb[207].mxu1  ;;  %v6169_v0 = vpop.f32.mrb[207].mxu0 }
 0x291   :  { %v10144_v50 = vadd.f32 %v6103_v28, %v9838_v8  ;;  %v10147_v44 = vadd.f32 %v6167_v4, %v9841_v61  ;;  %v6106_v32 = vadd.f32 %v6105_v9, %v6104_v34  ;;  %v6170_v16 = vadd.f32 %v6169_v0, %v6168_v58  ;;  %v182_v61 = vld [vmem:[%s11434_s0 + $0x520] sm:$0xff] }
 0x292   :  { %4268 = vmatmul.mubr.bf16.gmra.mrb[56].mxu1 %v1044_v23  ;;  %4365 = vmatmul.mubr.bf16.gmra.mrb[56].mxu0 %v854_v10  ;;  %v878_v46 = vpack.c.bf16 %v206_v33, %v182_v61  ;;  %v254_v0 = vld [vmem:[%s11434_s0 + $0x760] sm:$0xff] }
 0x293   :  { %v10156_v57 = vadd.f32 %v6106_v32, %v9856_v7  ;;  %v10159_v8 = vadd.f32 %v6170_v16, %v9859_v43  ;;  %4275 = vmatprep.mubr.bf16.mxu1 %v1069_v45  ;;  %4372 = vmatprep.mubr.bf16.mxu0 %v879_v35  ;;  %v637_v7 = vld [vmem:[%s11434_s0 + $0x1358] sm:$0xff]  ;;  %v231_v43 = vld [vmem:[%s11434_s0 + $0x6a8] sm:$0xff]  ;;  %v612_v45 = vld [vmem:[%s11434_s0 + $0x1290] sm:$0xff] }
 0x294   :  { %v1093_v5 = vpack.c.bf16 %v637_v7, %v613_v6  ;;  %v903_v60 = vpack.c.bf16 %v255_v29, %v231_v43  ;;  %v636_v35 = vld [vmem:[%s11434_s0 + $0x1350] sm:$0xff]  ;;  %v661_v32 = vld [vmem:[%s11434_s0 + $0x1418] sm:$0xff]  ;;  %v303_v16 = vld [vmem:[%s11434_s0 + $0x8e8] sm:$0xff] }
 0x295   :  { %v6171_v47 = vpop.f32.mrb[208].mxu0  ;;  %v6235_v20 = vpop.f32.mrb[208].mxu1  ;;  %v1092_v6 = vpack.c.bf16 %v636_v35, %v612_v45 }
 0x296   :  { %v6172_v17 = vpop.f32.mrb[209].mxu0  ;;  %v6236_v31 = vpop.f32.mrb[209].mxu1 }
 0x297   :  { %v6173_v12 = vadd.f32 %v6172_v17, %v6171_v47  ;;  %v6237_v22 = vadd.f32 %v6236_v31, %v6235_v20  ;;  %v6174_v14 = vpop.f32.mrb[210].mxu0  ;;  %v6238_v41 = vpop.f32.mrb[210].mxu1 }
 0x298   :  { %v6175_v23 = vpop.f32.mrb[211].mxu0  ;;  %v6239_v10 = vpop.f32.mrb[211].mxu1 }
 0x299   :  { %v10180_v28 = vadd.f32 %v6173_v12, %v9886_v42  ;;  %v10183_v4 = vadd.f32 %v6237_v22, %v9889_v1  ;;  %v6176_v34 = vadd.f32 %v6175_v23, %v6174_v14  ;;  %v6240_v58 = vadd.f32 %v6239_v10, %v6238_v41  ;;  %v230_v1 = vld [vmem:[%s11434_s0 + $0x6a0] sm:$0xff] }
 0x29a   :  { %4276 = vmatmul.mubr.bf16.gmra.mrb[60].mxu1 %v1068_v54  ;;  %4373 = vmatmul.mubr.bf16.gmra.mrb[60].mxu0 %v878_v46  ;;  %v902_v7 = vpack.c.bf16 %v254_v0, %v230_v1  ;;  %v302_v10 = vld [vmem:[%s11434_s0 + $0x8e0] sm:$0xff] }
 0x29b   :  { %v10192_v9 = vadd.f32 %v6176_v34, %v9904_v18  ;;  %v10195_v42 = vadd.f32 %v6240_v58, %v9907_v26  ;;  %4283 = vmatprep.mubr.bf16.mxu1 %v1093_v5  ;;  %4380 = vmatprep.mubr.bf16.mxu0 %v903_v60  ;;  %v685_v18 = vld [vmem:[%s11434_s0 + $0x14d8] sm:$0xff]  ;;  %v279_v26 = vld [vmem:[%s11434_s0 + $0x828] sm:$0xff]  ;;  %v660_v5 = vld [vmem:[%s11434_s0 + $0x1410] sm:$0xff] }
 0x29c   :  { %v1117_v17 = vpack.c.bf16 %v685_v18, %v661_v32  ;;  %v927_v31 = vpack.c.bf16 %v303_v16, %v279_v26  ;;  %v684_v60 = vld [vmem:[%s11434_s0 + $0x14d0] sm:$0xff]  ;;  %v709_v34 = vld [vmem:[%s11434_s0 + $0x1598] sm:$0xff]  ;;  %v351_v58 = vld [vmem:[%s11434_s0 + $0xa68] sm:$0xff] }
 0x29d   :  { %v6177_v2 = vpop.f32.mrb[212].mxu0  ;;  %v6241_v48 = vpop.f32.mrb[212].mxu1  ;;  %v1116_v32 = vpack.c.bf16 %v684_v60, %v660_v5 }
 0x29e   :  { %v6178_v61 = vpop.f32.mrb[213].mxu0  ;;  %v6242_v33 = vpop.f32.mrb[213].mxu1 }
 0x29f   :  { %v6179_v43 = vadd.f32 %v6178_v61, %v6177_v2  ;;  %v6243_v29 = vadd.f32 %v6242_v33, %v6241_v48  ;;  %v6180_v47 = vpop.f32.mrb[214].mxu0  ;;  %v6244_v20 = vpop.f32.mrb[214].mxu1 }
 0x2a0   :  { %v6181_v54 = vpop.f32.mrb[215].mxu0  ;;  %v6245_v46 = vpop.f32.mrb[215].mxu1 }
 0x2a1   :  { %v10216_v12 = vadd.f32 %v6179_v43, %v9928_v62  ;;  %v10219_v22 = vadd.f32 %v6243_v29, %v9931_v11  ;;  %v6182_v14 = vadd.f32 %v6181_v54, %v6180_v47  ;;  %v6246_v41 = vadd.f32 %v6245_v46, %v6244_v20  ;;  %v278_v11 = vld [vmem:[%s11434_s0 + $0x820] sm:$0xff] }
 0x2a2   :  { %4284 = vmatmul.mubr.bf16.gmra.mrb[64].mxu1 %v1092_v6  ;;  %4381 = vmatmul.mubr.bf16.gmra.mrb[64].mxu0 %v902_v7  ;;  %v926_v18 = vpack.c.bf16 %v302_v10, %v278_v11  ;;  %v350_v46 = vld [vmem:[%s11434_s0 + $0xa60] sm:$0xff] }
 0x2a3   :  { %v10228_v23 = vadd.f32 %v6182_v14, %v9940_v25  ;;  %v10231_v62 = vadd.f32 %v6246_v41, %v9943_v52  ;;  %4291 = vmatprep.mubr.bf16.mxu1 %v1117_v17  ;;  %4388 = vmatprep.mubr.bf16.mxu0 %v927_v31  ;;  %v733_v25 = vld [vmem:[%s11434_s0 + $0x1658] sm:$0xff]  ;;  %v327_v52 = vld [vmem:[%s11434_s0 + $0x9a8] sm:$0xff]  ;;  %v708_v17 = vld [vmem:[%s11434_s0 + $0x1590] sm:$0xff] }
 0x2a4   :  { %v1141_v61 = vpack.c.bf16 %v733_v25, %v709_v34  ;;  %v951_v33 = vpack.c.bf16 %v351_v58, %v327_v52  ;;  %v732_v31 = vld [vmem:[%s11434_s0 + $0x1650] sm:$0xff]  ;;  %v757_v14 = vld [vmem:[%s11434_s0 + $0x1718] sm:$0xff]  ;;  %v399_v41 = vld [vmem:[%s11434_s0 + $0xbe8] sm:$0xff] }
 0x2a5   :  { %v6183_v45 = vpop.f32.mrb[216].mxu0  ;;  %v6247_v35 = vpop.f32.mrb[216].mxu1  ;;  %v1140_v34 = vpack.c.bf16 %v732_v31, %v708_v17 }
 0x2a6   :  { %v6184_v1 = vpop.f32.mrb[217].mxu0  ;;  %v6248_v0 = vpop.f32.mrb[217].mxu1 }
 0x2a7   :  { %v6185_v26 = vadd.f32 %v6184_v1, %v6183_v45  ;;  %v6249_v16 = vadd.f32 %v6248_v0, %v6247_v35  ;;  %v6186_v2 = vpop.f32.mrb[218].mxu0  ;;  %v6250_v48 = vpop.f32.mrb[218].mxu1 }
 0x2a8   :  { %v6187_v6 = vpop.f32.mrb[219].mxu0  ;;  %v6251_v7 = vpop.f32.mrb[219].mxu1 }
 0x2a9   :  { %v10252_v43 = vadd.f32 %v6185_v26, %v9964_v63  ;;  %v10255_v29 = vadd.f32 %v6249_v16, %v9967_v38  ;;  %v6188_v47 = vadd.f32 %v6187_v6, %v6186_v2  ;;  %v6252_v20 = vadd.f32 %v6251_v7, %v6250_v48  ;;  %v326_v38 = vld [vmem:[%s11434_s0 + $0x9a0] sm:$0xff] }
 0x2aa   :  { %4292 = vmatmul.mubr.bf16.gmra.mrb[68].mxu1 %v1116_v32  ;;  %4389 = vmatmul.mubr.bf16.gmra.mrb[68].mxu0 %v926_v18  ;;  %v950_v25 = vpack.c.bf16 %v350_v46, %v326_v38  ;;  %v398_v7 = vld [vmem:[%s11434_s0 + $0xbe0] sm:$0xff] }
 0x2ab   :  { %v10264_v54 = vadd.f32 %v6188_v47, %v9976_v27  ;;  %v10267_v63 = vadd.f32 %v6252_v20, %v9979_v39  ;;  %4299 = vmatprep.mubr.bf16.mxu1 %v1141_v61  ;;  %4396 = vmatprep.mubr.bf16.mxu0 %v951_v33  ;;  %v781_v27 = vld [vmem:[%s11434_s0 + $0x17d8] sm:$0xff]  ;;  %v375_v39 = vld [vmem:[%s11434_s0 + $0xb28] sm:$0xff]  ;;  %v756_v61 = vld [vmem:[%s11434_s0 + $0x1710] sm:$0xff] }
 0x2ac   :  { %v1165_v1 = vpack.c.bf16 %v781_v27, %v757_v14  ;;  %v975_v0 = vpack.c.bf16 %v399_v41, %v375_v39  ;;  %v780_v33 = vld [vmem:[%s11434_s0 + $0x17d0] sm:$0xff]  ;;  %v423_v47 = vld [vmem:[%s11434_s0 + $0xca8] sm:$0xff]  ;;  %v65_v20 = vld [vmem:[%s11434_s0 + $0x178] sm:$0xff] }
 0x2ad   :  { %v6189_v5 = vpop.f32.mrb[220].mxu0  ;;  %v6253_v60 = vpop.f32.mrb[220].mxu1  ;;  %v1164_v14 = vpack.c.bf16 %v780_v33, %v756_v61 }
 0x2ae   :  { %v6190_v11 = vpop.f32.mrb[221].mxu0  ;;  %v6254_v10 = vpop.f32.mrb[221].mxu1 }
 0x2af   :  { %v6191_v52 = vadd.f32 %v6190_v11, %v6189_v5  ;;  %v6255_v58 = vadd.f32 %v6254_v10, %v6253_v60  ;;  %v6192_v45 = vpop.f32.mrb[222].mxu0  ;;  %v6256_v35 = vpop.f32.mrb[222].mxu1 }
 0x2b0   :  { %v6193_v32 = vpop.f32.mrb[223].mxu0  ;;  %v6257_v18 = vpop.f32.mrb[223].mxu1 }
 0x2b1   :  { %v10288_v26 = vadd.f32 %v6191_v52, %v10000_v36  ;;  %v10291_v16 = vadd.f32 %v6255_v58, %v10003_v40  ;;  %v6194_v2 = vadd.f32 %v6193_v32, %v6192_v45  ;;  %v6258_v48 = vadd.f32 %v6257_v18, %v6256_v35  ;;  %v374_v40 = vld [vmem:[%s11434_s0 + $0xb20] sm:$0xff]  ;;  %v64_v18 = vld [vmem:[%s11434_s0 + $0x170] sm:$0xff] }
 0x2b2   :  { %4300 = vmatmul.mubr.bf16.gmra.mrb[72].mxu1 %v1140_v34  ;;  %4397 = vmatmul.mubr.bf16.gmra.mrb[72].mxu0 %v950_v25  ;;  %v974_v27 = vpack.c.bf16 %v398_v7, %v374_v40 }
 0x2b3   :  { %v10300_v6 = vadd.f32 %v6194_v2, %v10012_v49  ;;  %v10303_v36 = vadd.f32 %v6258_v48, %v10015_v3  ;;  %4307 = vmatprep.mubr.bf16.mxu1 %v1165_v1  ;;  %4404 = vmatprep.mubr.bf16.mxu0 %v975_v0  ;;  %v447_v49 = vld [vmem:[%s11434_s0 + $0xd68] sm:$0xff]  ;;  %v41_v3 = vld [vmem:[%s11434_s0 + $0xb8] sm:$0xff]  ;;  %v422_v1 = vld [vmem:[%s11434_s0 + $0xca0] sm:$0xff] }
 0x2b4   :  { %v999_v11 = vpack.c.bf16 %v447_v49, %v423_v47  ;;  %v809_v10 = vpack.c.bf16 %v65_v20, %v41_v3  ;;  %v446_v0 = vld [vmem:[%s11434_s0 + $0xd60] sm:$0xff]  ;;  %v471_v2 = vld [vmem:[%s11434_s0 + $0xe28] sm:$0xff]  ;;  %v113_v48 = vld [vmem:[%s11434_s0 + $0x2f8] sm:$0xff] }
 0x2b5   :  { %v6195_v17 = vpop.f32.mrb[224].mxu0  ;;  %v6259_v31 = vpop.f32.mrb[224].mxu1  ;;  %v998_v47 = vpack.c.bf16 %v446_v0, %v422_v1 }
 0x2b6   :  { %v6196_v38 = vpop.f32.mrb[225].mxu0  ;;  %v6260_v46 = vpop.f32.mrb[225].mxu1 }
 0x2b7   :  { %v6197_v39 = vadd.f32 %v6196_v38, %v6195_v17  ;;  %v6261_v41 = vadd.f32 %v6260_v46, %v6259_v31  ;;  %v6198_v5 = vpop.f32.mrb[226].mxu0  ;;  %v6262_v60 = vpop.f32.mrb[226].mxu1 }
 0x2b8   :  { %v6199_v34 = vpop.f32.mrb[227].mxu0  ;;  %v6263_v25 = vpop.f32.mrb[227].mxu1 }
 0x2b9   :  { %v10324_v52 = vadd.f32 %v6197_v39, %v10036_v51  ;;  %v10327_v58 = vadd.f32 %v6261_v41, %v10039_v55  ;;  %v6200_v45 = vadd.f32 %v6199_v34, %v6198_v5  ;;  %v6264_v35 = vadd.f32 %v6263_v25, %v6262_v60  ;;  %v40_v55 = vld [vmem:[%s11434_s0 + $0xb0] sm:$0xff] }
 0x2ba   :  { %4308 = vmatmul.mubr.bf16.gmra.mrb[76].mxu1 %v1164_v14  ;;  %4405 = vmatmul.mubr.bf16.gmra.mrb[76].mxu0 %v974_v27  ;;  %v808_v49 = vpack.c.bf16 %v64_v18, %v40_v55  ;;  %v112_v25 = vld [vmem:[%s11434_s0 + $0x2f0] sm:$0xff] }
 0x2bb   :  { %v10336_v32 = vadd.f32 %v6200_v45, %v10048_v56  ;;  %v10339_v51 = vadd.f32 %v6264_v35, %v10051_v19  ;;  %4412 = vmatprep.mubr.bf16.mxu0 %v999_v11  ;;  %4509 = vmatprep.mubr.bf16.mxu1 %v809_v10  ;;  %v495_v56 = vld [vmem:[%s11434_s0 + $0xee8] sm:$0xff]  ;;  %v89_v19 = vld [vmem:[%s11434_s0 + $0x238] sm:$0xff]  ;;  %v470_v11 = vld [vmem:[%s11434_s0 + $0xe20] sm:$0xff] }
 0x2bc   :  { %v1023_v38 = vpack.c.bf16 %v495_v56, %v471_v2  ;;  %v833_v46 = vpack.c.bf16 %v113_v48, %v89_v19  ;;  %v494_v10 = vld [vmem:[%s11434_s0 + $0xee0] sm:$0xff]  ;;  %v519_v45 = vld [vmem:[%s11434_s0 + $0xfa8] sm:$0xff]  ;;  %v161_v35 = vld [vmem:[%s11434_s0 + $0x478] sm:$0xff] }
 0x2bd   :  { %v6201_v61 = vpop.f32.mrb[228].mxu0  ;;  %v6265_v33 = vpop.f32.mrb[228].mxu1  ;;  %v1022_v2 = vpack.c.bf16 %v494_v10, %v470_v11 }
 0x2be   :  { %v6202_v40 = vpop.f32.mrb[229].mxu0  ;;  %v6266_v7 = vpop.f32.mrb[229].mxu1 }
 0x2bf   :  { %v6203_v3 = vadd.f32 %v6202_v40, %v6201_v61  ;;  %v6267_v20 = vadd.f32 %v6266_v7, %v6265_v33  ;;  %v6204_v17 = vpop.f32.mrb[230].mxu0  ;;  %v6268_v31 = vpop.f32.mrb[230].mxu1 }
 0x2c0   :  { %v6205_v14 = vpop.f32.mrb[231].mxu0  ;;  %v6269_v27 = vpop.f32.mrb[231].mxu1 }
 0x2c1   :  { %v10360_v39 = vadd.f32 %v6203_v3, %v10072_v30  ;;  %v10363_v41 = vadd.f32 %v6267_v20, %v10075_v53  ;;  %v6206_v5 = vadd.f32 %v6205_v14, %v6204_v17  ;;  %v6270_v60 = vadd.f32 %v6269_v27, %v6268_v31  ;;  %v88_v53 = vld [vmem:[%s11434_s0 + $0x230] sm:$0xff] }
 0x2c2   :  { %4413 = vmatmul.mubr.bf16.gmra.mrb[80].mxu0 %v998_v47  ;;  %4510 = vmatmul.mubr.bf16.vlgmr.msra.gmra.mrb[80].mxu1 %v808_v49  ;;  %v832_v56 = vpack.c.bf16 %v112_v25, %v88_v53  ;;  %v160_v27 = vld [vmem:[%s11434_s0 + $0x470] sm:$0xff] }
 0x2c3   :  { %v10372_v34 = vadd.f32 %v6206_v5, %v10084_v21  ;;  %v10375_v30 = vadd.f32 %v6270_v60, %v10087_v37  ;;  %4420 = vmatprep.mubr.bf16.mxu0 %v1023_v38  ;;  %4517 = vmatprep.mubr.bf16.mxu1 %v833_v46  ;;  %v543_v21 = vld [vmem:[%s11434_s0 + $0x1068] sm:$0xff]  ;;  %v137_v37 = vld [vmem:[%s11434_s0 + $0x3b8] sm:$0xff]  ;;  %v518_v38 = vld [vmem:[%s11434_s0 + $0xfa0] sm:$0xff] }
 0x2c4   :  { %v1047_v40 = vpack.c.bf16 %v543_v21, %v519_v45  ;;  %v857_v7 = vpack.c.bf16 %v161_v35, %v137_v37  ;;  %v542_v46 = vld [vmem:[%s11434_s0 + $0x1060] sm:$0xff]  ;;  %v567_v5 = vld [vmem:[%s11434_s0 + $0x1128] sm:$0xff]  ;;  %v209_v60 = vld [vmem:[%s11434_s0 + $0x5f8] sm:$0xff] }
 0x2c5   :  { %v6207_v1 = vpop.f32.mrb[232].mxu0  ;;  %v6271_v0 = vpop.f32.mrb[232].mxu1  ;;  %v1046_v45 = vpack.c.bf16 %v542_v46, %v518_v38 }
 0x2c6   :  { %v6208_v55 = vpop.f32.mrb[233].mxu0  ;;  %v6272_v18 = vpop.f32.mrb[233].mxu1 }
 0x2c7   :  { %v6209_v19 = vadd.f32 %v6208_v55, %v6207_v1  ;;  %v6273_v48 = vadd.f32 %v6272_v18, %v6271_v0  ;;  %v6210_v61 = vpop.f32.mrb[234].mxu0  ;;  %v6274_v33 = vpop.f32.mrb[234].mxu1 }
 0x2c8   :  { %v6211_v47 = vpop.f32.mrb[235].mxu0  ;;  %v6275_v49 = vpop.f32.mrb[235].mxu1 }
 0x2c9   :  { %v10396_v3 = vadd.f32 %v6209_v19, %v10108_v13  ;;  %v10399_v20 = vadd.f32 %v6273_v48, %v10111_v59  ;;  %v6212_v17 = vadd.f32 %v6211_v47, %v6210_v61  ;;  %v6276_v31 = vadd.f32 %v6275_v49, %v6274_v33  ;;  %v136_v59 = vld [vmem:[%s11434_s0 + $0x3b0] sm:$0xff] }
 0x2ca   :  { %4421 = vmatmul.mubr.bf16.gmra.mrb[84].mxu0 %v1022_v2  ;;  %4518 = vmatmul.mubr.bf16.gmra.mrb[84].mxu1 %v832_v56  ;;  %v856_v21 = vpack.c.bf16 %v160_v27, %v136_v59  ;;  %v208_v49 = vld [vmem:[%s11434_s0 + $0x5f0] sm:$0xff] }
 0x2cb   :  { %v10408_v14 = vadd.f32 %v6212_v17, %v10120_v24  ;;  %v10411_v13 = vadd.f32 %v6276_v31, %v10123_v15  ;;  %4428 = vmatprep.mubr.bf16.mxu0 %v1047_v40  ;;  %4525 = vmatprep.mubr.bf16.mxu1 %v857_v7  ;;  %v591_v24 = vld [vmem:[%s11434_s0 + $0x11e8] sm:$0xff]  ;;  %v185_v15 = vld [vmem:[%s11434_s0 + $0x538] sm:$0xff]  ;;  %v566_v40 = vld [vmem:[%s11434_s0 + $0x1120] sm:$0xff] }
 0x2cc   :  { %v1071_v55 = vpack.c.bf16 %v591_v24, %v567_v5  ;;  %v881_v18 = vpack.c.bf16 %v209_v60, %v185_v15  ;;  %v590_v7 = vld [vmem:[%s11434_s0 + $0x11e0] sm:$0xff]  ;;  %v615_v17 = vld [vmem:[%s11434_s0 + $0x12a8] sm:$0xff]  ;;  %v257_v31 = vld [vmem:[%s11434_s0 + $0x778] sm:$0xff] }
 0x2cd   :  { %v6213_v11 = vpop.f32.mrb[236].mxu0  ;;  %v6277_v10 = vpop.f32.mrb[236].mxu1  ;;  %v1070_v5 = vpack.c.bf16 %v590_v7, %v566_v40 }
 0x2ce   :  { %v6214_v53 = vpop.f32.mrb[237].mxu0  ;;  %v6278_v25 = vpop.f32.mrb[237].mxu1 }
 0x2cf   :  { %v6215_v37 = vadd.f32 %v6214_v53, %v6213_v11  ;;  %v6279_v35 = vadd.f32 %v6278_v25, %v6277_v10  ;;  %v6216_v1 = vpop.f32.mrb[238].mxu0  ;;  %v6280_v0 = vpop.f32.mrb[238].mxu1 }
 0x2d0   :  { %v6217_v2 = vpop.f32.mrb[239].mxu0  ;;  %v6281_v56 = vpop.f32.mrb[239].mxu1 }
 0x2d1   :  { %v10432_v19 = vadd.f32 %v6215_v37, %v10144_v50  ;;  %v10435_v48 = vadd.f32 %v6279_v35, %v10147_v44  ;;  %v6218_v61 = vadd.f32 %v6217_v2, %v6216_v1  ;;  %v6282_v33 = vadd.f32 %v6281_v56, %v6280_v0  ;;  %v184_v44 = vld [vmem:[%s11434_s0 + $0x530] sm:$0xff] }
 0x2d2   :  { %4429 = vmatmul.mubr.bf16.gmra.mrb[88].mxu0 %v1046_v45  ;;  %4526 = vmatmul.mubr.bf16.gmra.mrb[88].mxu1 %v856_v21  ;;  %v880_v24 = vpack.c.bf16 %v208_v49, %v184_v44  ;;  %v256_v56 = vld [vmem:[%s11434_s0 + $0x770] sm:$0xff] }
 0x2d3   :  { %v10444_v47 = vadd.f32 %v6218_v61, %v10156_v57  ;;  %v10447_v50 = vadd.f32 %v6282_v33, %v10159_v8  ;;  %4436 = vmatprep.mubr.bf16.mxu0 %v1071_v55  ;;  %4533 = vmatprep.mubr.bf16.mxu1 %v881_v18  ;;  %v639_v57 = vld [vmem:[%s11434_s0 + $0x1368] sm:$0xff]  ;;  %v233_v8 = vld [vmem:[%s11434_s0 + $0x6b8] sm:$0xff]  ;;  %v614_v55 = vld [vmem:[%s11434_s0 + $0x12a0] sm:$0xff] }
 0x2d4   :  { %v1095_v53 = vpack.c.bf16 %v639_v57, %v615_v17  ;;  %v905_v25 = vpack.c.bf16 %v257_v31, %v233_v8  ;;  %v638_v18 = vld [vmem:[%s11434_s0 + $0x1360] sm:$0xff]  ;;  %v663_v61 = vld [vmem:[%s11434_s0 + $0x1428] sm:$0xff]  ;;  %v305_v33 = vld [vmem:[%s11434_s0 + $0x8f8] sm:$0xff] }
 0x2d5   :  { %v6283_v38 = vpop.f32.mrb[240].mxu1  ;;  %v6347_v46 = vpop.f32.mrb[240].mxu0  ;;  %v1094_v17 = vpack.c.bf16 %v638_v18, %v614_v55 }
 0x2d6   :  { %v6284_v59 = vpop.f32.mrb[241].mxu1  ;;  %v6348_v27 = vpop.f32.mrb[241].mxu0 }
 0x2d7   :  { %v6285_v15 = vadd.f32 %v6284_v59, %v6283_v38  ;;  %v6349_v60 = vadd.f32 %v6348_v27, %v6347_v46  ;;  %v6286_v11 = vpop.f32.mrb[242].mxu1  ;;  %v6350_v10 = vpop.f32.mrb[242].mxu0 }
 0x2d8   :  { %v6287_v45 = vpop.f32.mrb[243].mxu1  ;;  %v6351_v21 = vpop.f32.mrb[243].mxu0 }
 0x2d9   :  { %v10468_v37 = vadd.f32 %v6285_v15, %v10180_v28  ;;  %v10471_v35 = vadd.f32 %v6349_v60, %v10183_v4  ;;  %v6288_v1 = vadd.f32 %v6287_v45, %v6286_v11  ;;  %v6352_v0 = vadd.f32 %v6351_v21, %v6350_v10  ;;  %v232_v4 = vld [vmem:[%s11434_s0 + $0x6b0] sm:$0xff] }
 0x2da   :  { %4437 = vmatmul.mubr.bf16.gmra.mrb[92].mxu0 %v1070_v5  ;;  %4534 = vmatmul.mubr.bf16.gmra.mrb[92].mxu1 %v880_v24  ;;  %v904_v57 = vpack.c.bf16 %v256_v56, %v232_v4  ;;  %v304_v21 = vld [vmem:[%s11434_s0 + $0x8f0] sm:$0xff] }
 0x2db   :  { %v10480_v2 = vadd.f32 %v6288_v1, %v10192_v9  ;;  %v10483_v28 = vadd.f32 %v6352_v0, %v10195_v42  ;;  %4444 = vmatprep.mubr.bf16.mxu0 %v1095_v53  ;;  %4541 = vmatprep.mubr.bf16.mxu1 %v905_v25  ;;  %v687_v9 = vld [vmem:[%s11434_s0 + $0x14e8] sm:$0xff]  ;;  %v281_v42 = vld [vmem:[%s11434_s0 + $0x838] sm:$0xff]  ;;  %v662_v53 = vld [vmem:[%s11434_s0 + $0x1420] sm:$0xff] }
 0x2dc   :  { %v1119_v59 = vpack.c.bf16 %v687_v9, %v663_v61  ;;  %v929_v27 = vpack.c.bf16 %v305_v33, %v281_v42  ;;  %v686_v25 = vld [vmem:[%s11434_s0 + $0x14e0] sm:$0xff]  ;;  %v711_v1 = vld [vmem:[%s11434_s0 + $0x15a8] sm:$0xff]  ;;  %v353_v0 = vld [vmem:[%s11434_s0 + $0xa78] sm:$0xff] }
 0x2dd   :  { %v6289_v40 = vpop.f32.mrb[244].mxu1  ;;  %v6353_v7 = vpop.f32.mrb[244].mxu0  ;;  %v1118_v61 = vpack.c.bf16 %v686_v25, %v662_v53 }
 0x2de   :  { %v6290_v44 = vpop.f32.mrb[245].mxu1  ;;  %v6354_v49 = vpop.f32.mrb[245].mxu0 }
 0x2df   :  { %v6291_v8 = vadd.f32 %v6290_v44, %v6289_v40  ;;  %v6355_v31 = vadd.f32 %v6354_v49, %v6353_v7  ;;  %v6292_v38 = vpop.f32.mrb[246].mxu1  ;;  %v6356_v46 = vpop.f32.mrb[246].mxu0 }
 0x2e0   :  { %v6293_v5 = vpop.f32.mrb[247].mxu1  ;;  %v6357_v24 = vpop.f32.mrb[247].mxu0 }
 0x2e1   :  { %v10504_v15 = vadd.f32 %v6291_v8, %v10216_v12  ;;  %v10507_v60 = vadd.f32 %v6355_v31, %v10219_v22  ;;  %v6294_v11 = vadd.f32 %v6293_v5, %v6292_v38  ;;  %v6358_v10 = vadd.f32 %v6357_v24, %v6356_v46  ;;  %v280_v22 = vld [vmem:[%s11434_s0 + $0x830] sm:$0xff] }
 0x2e2   :  { %4445 = vmatmul.mubr.bf16.gmra.mrb[96].mxu0 %v1094_v17  ;;  %4542 = vmatmul.mubr.bf16.gmra.mrb[96].mxu1 %v904_v57  ;;  %v928_v9 = vpack.c.bf16 %v304_v21, %v280_v22  ;;  %v352_v24 = vld [vmem:[%s11434_s0 + $0xa70] sm:$0xff] }
 0x2e3   :  { %v10516_v45 = vadd.f32 %v6294_v11, %v10228_v23  ;;  %v10519_v12 = vadd.f32 %v6358_v10, %v10231_v62  ;;  %4452 = vmatprep.mubr.bf16.mxu0 %v1119_v59  ;;  %4549 = vmatprep.mubr.bf16.mxu1 %v929_v27  ;;  %v735_v23 = vld [vmem:[%s11434_s0 + $0x1668] sm:$0xff]  ;;  %v329_v62 = vld [vmem:[%s11434_s0 + $0x9b8] sm:$0xff]  ;;  %v710_v59 = vld [vmem:[%s11434_s0 + $0x15a0] sm:$0xff] }
 0x2e4   :  { %v1143_v44 = vpack.c.bf16 %v735_v23, %v711_v1  ;;  %v953_v49 = vpack.c.bf16 %v353_v0, %v329_v62  ;;  %v734_v27 = vld [vmem:[%s11434_s0 + $0x1660] sm:$0xff]  ;;  %v759_v11 = vld [vmem:[%s11434_s0 + $0x1728] sm:$0xff]  ;;  %v401_v10 = vld [vmem:[%s11434_s0 + $0xbf8] sm:$0xff] }
 0x2e5   :  { %v6295_v55 = vpop.f32.mrb[248].mxu1  ;;  %v6359_v18 = vpop.f32.mrb[248].mxu0  ;;  %v1142_v1 = vpack.c.bf16 %v734_v27, %v710_v59 }
 0x2e6   :  { %v6296_v4 = vpop.f32.mrb[249].mxu1  ;;  %v6360_v56 = vpop.f32.mrb[249].mxu0 }
 0x2e7   :  { %v6297_v42 = vadd.f32 %v6296_v4, %v6295_v55  ;;  %v6361_v33 = vadd.f32 %v6360_v56, %v6359_v18  ;;  %v6298_v40 = vpop.f32.mrb[250].mxu1  ;;  %v6362_v7 = vpop.f32.mrb[250].mxu0 }
 0x2e8   :  { %v6299_v17 = vpop.f32.mrb[251].mxu1  ;;  %v6363_v57 = vpop.f32.mrb[251].mxu0 }
 0x2e9   :  { %v10540_v8 = vadd.f32 %v6297_v42, %v10252_v43  ;;  %v10543_v31 = vadd.f32 %v6361_v33, %v10255_v29  ;;  %v6300_v38 = vadd.f32 %v6299_v17, %v6298_v40  ;;  %v6364_v46 = vadd.f32 %v6363_v57, %v6362_v7  ;;  %v328_v29 = vld [vmem:[%s11434_s0 + $0x9b0] sm:$0xff] }
 0x2ea   :  { %4453 = vmatmul.mubr.bf16.gmra.mrb[100].mxu0 %v1118_v61  ;;  %4550 = vmatmul.mubr.bf16.gmra.mrb[100].mxu1 %v928_v9  ;;  %v952_v23 = vpack.c.bf16 %v352_v24, %v328_v29  ;;  %v400_v57 = vld [vmem:[%s11434_s0 + $0xbf0] sm:$0xff] }
 0x2eb   :  { %v10552_v5 = vadd.f32 %v6300_v38, %v10264_v54  ;;  %v10555_v43 = vadd.f32 %v6364_v46, %v10267_v63  ;;  %4460 = vmatprep.mubr.bf16.mxu0 %v1143_v44  ;;  %4557 = vmatprep.mubr.bf16.mxu1 %v953_v49  ;;  %v783_v54 = vld [vmem:[%s11434_s0 + $0x17e8] sm:$0xff]  ;;  %v377_v63 = vld [vmem:[%s11434_s0 + $0xb38] sm:$0xff]  ;;  %v758_v44 = vld [vmem:[%s11434_s0 + $0x1720] sm:$0xff] }
 0x2ec   :  { %v1167_v4 = vpack.c.bf16 %v783_v54, %v759_v11  ;;  %v977_v56 = vpack.c.bf16 %v401_v10, %v377_v63 }
 0x2ed   :  { %v6301_v53 = vpop.f32.mrb[252].mxu1  ;;  %v6365_v25 = vpop.f32.mrb[252].mxu0 }
 0x2ee   :  { %v6302_v22 = vpop.f32.mrb[253].mxu1  ;;  %v6366_v21 = vpop.f32.mrb[253].mxu0 }
 0x2ef   :  { %v6303_v62 = vadd.f32 %v6302_v22, %v6301_v53  ;;  %v6367_v0 = vadd.f32 %v6366_v21, %v6365_v25  ;;  %v6304_v55 = vpop.f32.mrb[254].mxu1  ;;  %v6368_v18 = vpop.f32.mrb[254].mxu0 }
 0x2f0   :  { %v6305_v61 = vpop.f32.mrb[255].mxu1  ;;  %v6369_v9 = vpop.f32.mrb[255].mxu0 }
 0x2f1   :  { %v10576_v42 = vadd.f32 %v6303_v62, %v10288_v26  ;;  %v10579_v33 = vadd.f32 %v6367_v0, %v10291_v16  ;;  %v6306_v40 = vadd.f32 %v6305_v61, %v6304_v55  ;;  %v6370_v7 = vadd.f32 %v6369_v9, %v6368_v18  ;;  %v782_v26 = vld [vmem:[%s11434_s0 + $0x17e0] sm:$0xff]  ;;  %v376_v16 = vld [vmem:[%s11434_s0 + $0xb30] sm:$0xff] }
 0x2f2   :  { %4461 = vmatmul.mubr.bf16.gmra.mrb[104].mxu0 %v1142_v1  ;;  %4558 = vmatmul.mubr.bf16.gmra.mrb[104].mxu1 %v952_v23  ;;  %v1166_v29 = vpack.c.bf16 %v782_v26, %v758_v44  ;;  %v976_v24 = vpack.c.bf16 %v400_v57, %v376_v16  ;;  %v424_v18 = vld [vmem:[%s11434_s0 + $0xcb0] sm:$0xff] }
 0x2f3   :  { %v10585_v49 = vadd.f32 %v6306_v40, %v10300_v6  ;;  %v10588_v17 = vadd.f32 %v6370_v7, %v10303_v36  ;;  %4468 = vmatprep.mubr.bf16.mxu0 %v1167_v4  ;;  %4565 = vmatprep.mubr.bf16.mxu1 %v977_v56  ;;  %v425_v6 = vld [vmem:[%s11434_s0 + $0xcb8] sm:$0xff] }
 0x2f4   :  { %v449_v36 = vld [vmem:[%s11434_s0 + $0xd78] sm:$0xff] }
 0x2f5   :  { %v6307_v38 = vpop.f32.mrb[0].mxu1  ;;  %v6371_v46 = vpop.f32.mrb[0].mxu0  ;;  %v1001_v53 = vpack.c.bf16 %v449_v36, %v425_v6 }
 0x2f6   :  { %v6308_v59 = vpop.f32.mrb[1].mxu1  ;;  %v6372_v27 = vpop.f32.mrb[1].mxu0 }
 0x2f7   :  { %v6309_v11 = vadd.f32 %v6308_v59, %v6307_v38  ;;  %v6373_v54 = vadd.f32 %v6372_v27, %v6371_v46  ;;  %v6310_v63 = vpop.f32.mrb[2].mxu1  ;;  %v6374_v10 = vpop.f32.mrb[2].mxu0 }
 0x2f8   :  { %v6311_v25 = vpop.f32.mrb[3].mxu1  ;;  %v6375_v22 = vpop.f32.mrb[3].mxu0 }
 0x2f9   :  { %v10606_v21 = vadd.f32 %v6309_v11, %v10324_v52  ;;  %v10609_v1 = vadd.f32 %v6373_v54, %v10327_v58  ;;  %v6312_v23 = vadd.f32 %v6311_v25, %v6310_v63  ;;  %v6376_v62 = vadd.f32 %v6375_v22, %v6374_v10  ;;  %v448_v52 = vld [vmem:[%s11434_s0 + $0xd70] sm:$0xff]  ;;  %v473_v58 = vld [vmem:[%s11434_s0 + $0xe38] sm:$0xff] }
 0x2fa   :  { %4469 = vmatmul.mubr.bf16.gmra.mrb[108].mxu0 %v1166_v29  ;;  %4566 = vmatmul.mubr.bf16.gmra.mrb[108].mxu1 %v976_v24  ;;  %v1000_v9 = vpack.c.bf16 %v448_v52, %v424_v18  ;;  %v472_v24 = vld [vmem:[%s11434_s0 + $0xe30] sm:$0xff] }
 0x2fb   :  { %v10612_v0 = vadd.f32 %v6312_v23, %v10336_v32  ;;  %v10615_v55 = vadd.f32 %v6376_v62, %v10339_v51  ;;  %4573 = vmatprep.mubr.bf16.mxu1 %v1001_v53  ;;  %v497_v32 = vld [vmem:[%s11434_s0 + $0xef8] sm:$0xff] }
 0x2fc   :  { %v1025_v16 = vpack.c.bf16 %v497_v32, %v473_v58 }
 0x2fd   :  { %v6313_v4 = vpop.f32.mrb[4].mxu1  ;;  %v6377_v51 = vpop.f32.mrb[4].mxu0 }
 0x2fe   :  { %v6314_v56 = vpop.f32.mrb[5].mxu1  ;;  %v6378_v61 = vpop.f32.mrb[5].mxu0 }
 0x2ff   :  { %v6315_v40 = vadd.f32 %v6314_v56, %v6313_v4  ;;  %v6379_v7 = vadd.f32 %v6378_v61, %v6377_v51  ;;  %v6316_v44 = vpop.f32.mrb[6].mxu1  ;;  %v6380_v26 = vpop.f32.mrb[6].mxu0 }
 0x300   :  { %v6317_v57 = vpop.f32.mrb[7].mxu1  ;;  %v6381_v6 = vpop.f32.mrb[7].mxu0 }
 0x301   :  { %v10630_v36 = vadd.f32 %v6315_v40, %v10360_v39  ;;  %v10633_v38 = vadd.f32 %v6379_v7, %v10363_v41  ;;  %v6318_v46 = vadd.f32 %v6317_v57, %v6316_v44  ;;  %v6382_v59 = vadd.f32 %v6381_v6, %v6380_v26  ;;  %v496_v39 = vld [vmem:[%s11434_s0 + $0xef0] sm:$0xff]  ;;  %v521_v41 = vld [vmem:[%s11434_s0 + $0xfb8] sm:$0xff] }
 0x302   :  { %4574 = vmatmul.mubr.bf16.gmra.mrb[112].mxu1 %v1000_v9  ;;  %v1024_v10 = vpack.c.bf16 %v496_v39, %v472_v24  ;;  %v520_v9 = vld [vmem:[%s11434_s0 + $0xfb0] sm:$0xff] }
 0x303   :  { %v10636_v27 = vadd.f32 %v6318_v46, %v10372_v34  ;;  %v10639_v29 = vadd.f32 %v6382_v59, %v10375_v30  ;;  %4581 = vmatprep.mubr.bf16.mxu1 %v1025_v16  ;;  %v545_v34 = vld [vmem:[%s11434_s0 + $0x1078] sm:$0xff] }
 0x304   :  { %v1049_v62 = vpack.c.bf16 %v545_v34, %v521_v41 }
 0x305   :  { %v6319_v11 = vpop.f32.mrb[8].mxu1  ;;  %v6383_v30 = vpop.f32.mrb[8].mxu0 }
 0x306   :  { %v6320_v54 = vpop.f32.mrb[9].mxu1  ;;  %v6384_v63 = vpop.f32.mrb[9].mxu0 }
 0x307   :  { %v6321_v53 = vadd.f32 %v6320_v54, %v6319_v11  ;;  %v6385_v25 = vadd.f32 %v6384_v63, %v6383_v30  ;;  %v6322_v22 = vpop.f32.mrb[10].mxu1  ;;  %v6386_v23 = vpop.f32.mrb[10].mxu0 }
 0x308   :  { %v6323_v18 = vpop.f32.mrb[11].mxu1  ;;  %v6387_v52 = vpop.f32.mrb[11].mxu0 }
 0x309   :  { %v10654_v58 = vadd.f32 %v6321_v53, %v10396_v3  ;;  %v10657_v32 = vadd.f32 %v6385_v25, %v10399_v20  ;;  %v6324_v4 = vadd.f32 %v6323_v18, %v6322_v22  ;;  %v6388_v51 = vadd.f32 %v6387_v52, %v6386_v23  ;;  %v544_v3 = vld [vmem:[%s11434_s0 + $0x1070] sm:$0xff]  ;;  %v569_v20 = vld [vmem:[%s11434_s0 + $0x1138] sm:$0xff] }
 0x30a   :  { %4582 = vmatmul.mubr.bf16.gmra.mrb[116].mxu1 %v1024_v10  ;;  %v1048_v26 = vpack.c.bf16 %v544_v3, %v520_v9  ;;  %v568_v10 = vld [vmem:[%s11434_s0 + $0x1130] sm:$0xff] }
 0x30b   :  { %v10660_v56 = vadd.f32 %v6324_v4, %v10408_v14  ;;  %v10663_v61 = vadd.f32 %v6388_v51, %v10411_v13  ;;  %4589 = vmatprep.mubr.bf16.mxu1 %v1049_v62  ;;  %v593_v14 = vld [vmem:[%s11434_s0 + $0x11f8] sm:$0xff] }
 0x30c   :  { %v1073_v59 = vpack.c.bf16 %v593_v14, %v569_v20 }
 0x30d   :  { %v6325_v40 = vpop.f32.mrb[12].mxu1  ;;  %v6389_v13 = vpop.f32.mrb[12].mxu0 }
 0x30e   :  { %v6326_v7 = vpop.f32.mrb[13].mxu1  ;;  %v6390_v44 = vpop.f32.mrb[13].mxu0 }
 0x30f   :  { %v6327_v16 = vadd.f32 %v6326_v7, %v6325_v40  ;;  %v6391_v57 = vadd.f32 %v6390_v44, %v6389_v13  ;;  %v6328_v6 = vpop.f32.mrb[14].mxu1  ;;  %v6392_v46 = vpop.f32.mrb[14].mxu0 }
 0x310   :  { %v6329_v24 = vpop.f32.mrb[15].mxu1  ;;  %v6393_v39 = vpop.f32.mrb[15].mxu0 }
 0x311   :  { %v10678_v41 = vadd.f32 %v6327_v16, %v10432_v19  ;;  %v10681_v34 = vadd.f32 %v6391_v57, %v10435_v48  ;;  %v6330_v11 = vadd.f32 %v6329_v24, %v6328_v6  ;;  %v6394_v30 = vadd.f32 %v6393_v39, %v6392_v46  ;;  %v592_v19 = vld [vmem:[%s11434_s0 + $0x11f0] sm:$0xff]  ;;  %v617_v48 = vld [vmem:[%s11434_s0 + $0x12b8] sm:$0xff] }
 0x312   :  { %4590 = vmatmul.mubr.bf16.gmra.mrb[120].mxu1 %v1048_v26  ;;  %v1072_v23 = vpack.c.bf16 %v592_v19, %v568_v10  ;;  %v616_v26 = vld [vmem:[%s11434_s0 + $0x12b0] sm:$0xff] }
 0x313   :  { %v10684_v54 = vadd.f32 %v6330_v11, %v10444_v47  ;;  %v10687_v63 = vadd.f32 %v6394_v30, %v10447_v50  ;;  %4597 = vmatprep.mubr.bf16.mxu1 %v1073_v59  ;;  %v641_v47 = vld [vmem:[%s11434_s0 + $0x1378] sm:$0xff] }
 0x314   :  { %v1097_v51 = vpack.c.bf16 %v641_v47, %v617_v48 }
 0x315   :  { %v6395_v53 = vpop.f32.mrb[16].mxu0  ;;  %v6459_v50 = vpop.f32.mrb[16].mxu1 }
 0x316   :  { %v6396_v25 = vpop.f32.mrb[17].mxu0  ;;  %v6460_v22 = vpop.f32.mrb[17].mxu1 }
 0x317   :  { %v6397_v62 = vadd.f32 %v6396_v25, %v6395_v53  ;;  %v6461_v18 = vadd.f32 %v6460_v22, %v6459_v50  ;;  %v6398_v52 = vpop.f32.mrb[18].mxu0  ;;  %v6462_v4 = vpop.f32.mrb[18].mxu1 }
 0x318   :  { %v6399_v9 = vpop.f32.mrb[19].mxu0  ;;  %v6463_v3 = vpop.f32.mrb[19].mxu1 }
 0x319   :  { %v10702_v20 = vadd.f32 %v6397_v62, %v10468_v37  ;;  %v10705_v14 = vadd.f32 %v6461_v18, %v10471_v35  ;;  %v6400_v40 = vadd.f32 %v6399_v9, %v6398_v52  ;;  %v6464_v13 = vadd.f32 %v6463_v3, %v6462_v4  ;;  %v640_v37 = vld [vmem:[%s11434_s0 + $0x1370] sm:$0xff]  ;;  %v665_v35 = vld [vmem:[%s11434_s0 + $0x1438] sm:$0xff] }
 0x31a   :  { %4598 = vmatmul.mubr.bf16.gmra.mrb[124].mxu1 %v1072_v23  ;;  %v1096_v46 = vpack.c.bf16 %v640_v37, %v616_v26  ;;  %v664_v23 = vld [vmem:[%s11434_s0 + $0x1430] sm:$0xff] }
 0x31b   :  { %v10708_v7 = vadd.f32 %v6400_v40, %v10480_v2  ;;  %v10711_v44 = vadd.f32 %v6464_v13, %v10483_v28  ;;  %4605 = vmatprep.mubr.bf16.mxu1 %v1097_v51  ;;  %v689_v2 = vld [vmem:[%s11434_s0 + $0x14f8] sm:$0xff] }
 0x31c   :  { %v1121_v30 = vpack.c.bf16 %v689_v2, %v665_v35 }
 0x31d   :  { %v6401_v16 = vpop.f32.mrb[20].mxu0  ;;  %v6465_v28 = vpop.f32.mrb[20].mxu1 }
 0x31e   :  { %v6402_v57 = vpop.f32.mrb[21].mxu0  ;;  %v6466_v6 = vpop.f32.mrb[21].mxu1 }
 0x31f   :  { %v6403_v59 = vadd.f32 %v6402_v57, %v6401_v16  ;;  %v6467_v24 = vadd.f32 %v6466_v6, %v6465_v28  ;;  %v6404_v39 = vpop.f32.mrb[22].mxu0  ;;  %v6468_v11 = vpop.f32.mrb[22].mxu1 }
 0x320   :  { %v6405_v10 = vpop.f32.mrb[23].mxu0  ;;  %v6469_v19 = vpop.f32.mrb[23].mxu1 }
 0x321   :  { %v10726_v48 = vadd.f32 %v6403_v59, %v10504_v15  ;;  %v10729_v47 = vadd.f32 %v6467_v24, %v10507_v60  ;;  %v6406_v53 = vadd.f32 %v6405_v10, %v6404_v39  ;;  %v6470_v50 = vadd.f32 %v6469_v19, %v6468_v11  ;;  %v688_v15 = vld [vmem:[%s11434_s0 + $0x14f0] sm:$0xff]  ;;  %v713_v60 = vld [vmem:[%s11434_s0 + $0x15b8] sm:$0xff] }
 0x322   :  { %4606 = vmatmul.mubr.bf16.gmra.mrb[128].mxu1 %v1096_v46  ;;  %v1120_v4 = vpack.c.bf16 %v688_v15, %v664_v23  ;;  %v712_v46 = vld [vmem:[%s11434_s0 + $0x15b0] sm:$0xff] }
 0x323   :  { %v10732_v25 = vadd.f32 %v6406_v53, %v10516_v45  ;;  %v10735_v22 = vadd.f32 %v6470_v50, %v10519_v12  ;;  %4613 = vmatprep.mubr.bf16.mxu1 %v1121_v30  ;;  %v737_v45 = vld [vmem:[%s11434_s0 + $0x1678] sm:$0xff] }
 0x324   :  { %v1145_v13 = vpack.c.bf16 %v737_v45, %v713_v60 }
 0x325   :  { %v6407_v62 = vpop.f32.mrb[24].mxu0  ;;  %v6471_v12 = vpop.f32.mrb[24].mxu1 }
 0x326   :  { %v6408_v18 = vpop.f32.mrb[25].mxu0  ;;  %v6472_v52 = vpop.f32.mrb[25].mxu1 }
 0x327   :  { %v6409_v51 = vadd.f32 %v6408_v18, %v6407_v62  ;;  %v6473_v9 = vadd.f32 %v6472_v52, %v6471_v12  ;;  %v6410_v3 = vpop.f32.mrb[26].mxu0  ;;  %v6474_v40 = vpop.f32.mrb[26].mxu1 }
 0x328   :  { %v6411_v26 = vpop.f32.mrb[27].mxu0  ;;  %v6475_v37 = vpop.f32.mrb[27].mxu1 }
 0x329   :  { %v10750_v35 = vadd.f32 %v6409_v51, %v10540_v8  ;;  %v10753_v2 = vadd.f32 %v6473_v9, %v10543_v31  ;;  %v6412_v16 = vadd.f32 %v6411_v26, %v6410_v3  ;;  %v6476_v28 = vadd.f32 %v6475_v37, %v6474_v40  ;;  %v736_v8 = vld [vmem:[%s11434_s0 + $0x1670] sm:$0xff]  ;;  %v761_v31 = vld [vmem:[%s11434_s0 + $0x1738] sm:$0xff] }
 0x32a   :  { %4614 = vmatmul.mubr.bf16.gmra.mrb[132].mxu1 %v1120_v4  ;;  %v1144_v11 = vpack.c.bf16 %v736_v8, %v712_v46  ;;  %v760_v4 = vld [vmem:[%s11434_s0 + $0x1730] sm:$0xff] }
 0x32b   :  { %v10756_v57 = vadd.f32 %v6412_v16, %v10552_v5  ;;  %v10759_v6 = vadd.f32 %v6476_v28, %v10555_v43  ;;  %4621 = vmatprep.mubr.bf16.mxu1 %v1145_v13  ;;  %v785_v5 = vld [vmem:[%s11434_s0 + $0x17f8] sm:$0xff] }
 0x32c   :  { %v1169_v50 = vpack.c.bf16 %v785_v5, %v761_v31 }
 0x32d   :  { %v6413_v59 = vpop.f32.mrb[28].mxu0  ;;  %v6477_v43 = vpop.f32.mrb[28].mxu1 }
 0x32e   :  { %v6414_v24 = vpop.f32.mrb[29].mxu0  ;;  %v6478_v39 = vpop.f32.mrb[29].mxu1 }
 0x32f   :  { %v6415_v30 = vadd.f32 %v6414_v24, %v6413_v59  ;;  %v6479_v10 = vadd.f32 %v6478_v39, %v6477_v43  ;;  %v6416_v19 = vpop.f32.mrb[30].mxu0  ;;  %v6480_v53 = vpop.f32.mrb[30].mxu1 }
 0x330   :  { %v6417_v23 = vpop.f32.mrb[31].mxu0  ;;  %v6481_v15 = vpop.f32.mrb[31].mxu1 }
 0x331   :  { %v10774_v60 = vadd.f32 %v6415_v30, %v10576_v42  ;;  %v10777_v45 = vadd.f32 %v6479_v10, %v10579_v33  ;;  %v6418_v62 = vadd.f32 %v6417_v23, %v6416_v19  ;;  %v6482_v12 = vadd.f32 %v6481_v15, %v6480_v53  ;;  %v784_v42 = vld [vmem:[%s11434_s0 + $0x17f0] sm:$0xff] }
 0x332   :  { %4622 = vmatmul.mubr.bf16.gmra.mrb[136].mxu1 %v1144_v11  ;;  %v1168_v40 = vpack.c.bf16 %v784_v42, %v760_v4 }
 0x333   :  { %v10780_v18 = vadd.f32 %v6418_v62, %v10585_v49  ;;  %v10783_v52 = vadd.f32 %v6482_v12, %v10588_v17  ;;  %4629 = vmatprep.mubr.bf16.mxu1 %v1169_v50 }
 0x335   :  { %v6419_v33 = vpop.f32.mrb[32].mxu0  ;;  %v6483_v51 = vpop.f32.mrb[32].mxu1 }
 0x336   :  { %v6420_v9 = vpop.f32.mrb[33].mxu0  ;;  %v6484_v3 = vpop.f32.mrb[33].mxu1 }
 0x337   :  { %v6421_v13 = vadd.f32 %v6420_v9, %v6419_v33  ;;  %v6485_v49 = vadd.f32 %v6484_v3, %v6483_v51  ;;  %v6422_v26 = vpop.f32.mrb[34].mxu0  ;;  %v6486_v37 = vpop.f32.mrb[34].mxu1 }
 0x338   :  { %v6423_v17 = vpop.f32.mrb[35].mxu0  ;;  %v6487_v16 = vpop.f32.mrb[35].mxu1 }
 0x339   :  { %v10792_v28 = vadd.f32 %v6421_v13, %v10606_v21  ;;  %v10795_v46 = vadd.f32 %v6485_v49, %v10609_v1  ;;  %v6424_v8 = vadd.f32 %v6423_v17, %v6422_v26  ;;  %v6488_v31 = vadd.f32 %v6487_v16, %v6486_v37 }
 0x33a   :  { %4630 = vmatmul.mubr.bf16.gmra.mrb[140].mxu1 %v1168_v40 }
 0x33b   :  { %v10798_v5 = vadd.f32 %v6424_v8, %v10612_v0  ;;  %v10801_v59 = vadd.f32 %v6488_v31, %v10615_v55 }
 0x33d   :  { %v6425_v43 = vpop.f32.mrb[36].mxu0  ;;  %v6489_v24 = vpop.f32.mrb[36].mxu1 }
 0x33e   :  { %v6426_v39 = vpop.f32.mrb[37].mxu0  ;;  %v6490_v11 = vpop.f32.mrb[37].mxu1 }
 0x33f   :  { %v6427_v30 = vadd.f32 %v6426_v39, %v6425_v43  ;;  %v6491_v10 = vadd.f32 %v6490_v11, %v6489_v24  ;;  %v6428_v21 = vpop.f32.mrb[38].mxu0  ;;  %v6492_v19 = vpop.f32.mrb[38].mxu1 }
 0x340   :  { %v6429_v53 = vpop.f32.mrb[39].mxu0  ;;  %v6493_v1 = vpop.f32.mrb[39].mxu1 }
 0x341   :  { %v10804_v50 = vadd.f32 %v6427_v30, %v10630_v36  ;;  %v10807_v23 = vadd.f32 %v6491_v10, %v10633_v38  ;;  %v6430_v0 = vadd.f32 %v6429_v53, %v6428_v21  ;;  %v6494_v15 = vadd.f32 %v6493_v1, %v6492_v19 }
 0x343   :  { %v10810_v55 = vadd.f32 %v6430_v0, %v10636_v27  ;;  %v10813_v62 = vadd.f32 %v6494_v15, %v10639_v29 }
 0x345   :  { %v6431_v12 = vpop.f32.mrb[40].mxu0  ;;  %v6495_v4 = vpop.f32.mrb[40].mxu1 }
 0x346   :  { %v6432_v42 = vpop.f32.mrb[41].mxu0  ;;  %v6496_v33 = vpop.f32.mrb[41].mxu1 }
 0x347   :  { %v6433_v51 = vadd.f32 %v6432_v42, %v6431_v12  ;;  %v6497_v9 = vadd.f32 %v6496_v33, %v6495_v4  ;;  %v6434_v3 = vpop.f32.mrb[42].mxu0  ;;  %v6498_v36 = vpop.f32.mrb[42].mxu1 }
 0x348   :  { %v6435_v40 = vpop.f32.mrb[43].mxu0  ;;  %v6499_v13 = vpop.f32.mrb[43].mxu1 }
 0x349   :  { %v10816_v38 = vadd.f32 %v6433_v51, %v10654_v58  ;;  %v10819_v49 = vadd.f32 %v6497_v9, %v10657_v32  ;;  %v6436_v27 = vadd.f32 %v6435_v40, %v6434_v3  ;;  %v6500_v26 = vadd.f32 %v6499_v13, %v6498_v36 }
 0x34b   :  { %v10822_v29 = vadd.f32 %v6436_v27, %v10660_v56  ;;  %v10825_v37 = vadd.f32 %v6500_v26, %v10663_v61  ;;  %v7048_v61 = vld [vmem:[%s11435_s2] sm:$0xff]  }
 0x34c   :  { %6799 = vmatprep.subr.bf16.mxu0 %v7048_v61 }
 0x34d   :  { %v6437_v17 = vpop.f32.mrb[44].mxu0  ;;  %v6501_v16 = vpop.f32.mrb[44].mxu1  ;;  %6800 = vmatpush3.bf16.msra.mxu0 %v7048_v61 }
 0x34e   :  { %v6438_v8 = vpop.f32.mrb[45].mxu0  ;;  %v6502_v31 = vpop.f32.mrb[45].mxu1 }
 0x34f   :  { %v6439_v43 = vadd.f32 %v6438_v8, %v6437_v17  ;;  %v6503_v24 = vadd.f32 %v6502_v31, %v6501_v16  ;;  %v6440_v39 = vpop.f32.mrb[46].mxu0  ;;  %v6504_v58 = vpop.f32.mrb[46].mxu1 }
 0x350   :  { %v6441_v11 = vpop.f32.mrb[47].mxu0  ;;  %v6505_v30 = vpop.f32.mrb[47].mxu1 }
 0x351   :  { %v10828_v32 = vadd.f32 %v6439_v43, %v10678_v41  ;;  %v10831_v10 = vadd.f32 %v6503_v24, %v10681_v34  ;;  %v6442_v56 = vadd.f32 %v6441_v11, %v6440_v39  ;;  %v6506_v21 = vadd.f32 %v6505_v30, %v6504_v58 }
 0x353   :  { %v10837_v19 = vadd.f32 %v6442_v56, %v10684_v54  ;;  %v10840_v53 = vadd.f32 %v6506_v21, %v10687_v63 }
 0x355   :  { %v6507_v1 = vpop.f32.mrb[48].mxu1  ;;  %v6571_v41 = vpop.f32.mrb[48].mxu0 }
 0x356   :  { %v6508_v0 = vpop.f32.mrb[49].mxu1  ;;  %v6572_v15 = vpop.f32.mrb[49].mxu0 }
 0x357   :  { %v6509_v34 = vadd.f32 %v6508_v0, %v6507_v1  ;;  %v6573_v12 = vadd.f32 %v6572_v15, %v6571_v41  ;;  %v6510_v4 = vpop.f32.mrb[50].mxu1  ;;  %v6574_v42 = vpop.f32.mrb[50].mxu0 }
 0x358   :  { %v6511_v33 = vpop.f32.mrb[51].mxu1  ;;  %v6575_v51 = vpop.f32.mrb[51].mxu0 }
 0x359   :  { %v10843_v9 = vadd.f32 %v6509_v34, %v10702_v20  ;;  %v10846_v54 = vadd.f32 %v6573_v12, %v10705_v14  ;;  %v6512_v63 = vadd.f32 %v6511_v33, %v6510_v4  ;;  %v6576_v3 = vadd.f32 %v6575_v51, %v6574_v42 }
 0x35b   :  { %v10849_v36 = vadd.f32 %v6512_v63, %v10708_v7  ;;  %v10852_v40 = vadd.f32 %v6576_v3, %v10711_v44 }
 0x35d   :  { %v6513_v13 = vpop.f32.mrb[52].mxu1  ;;  %v6577_v27 = vpop.f32.mrb[52].mxu0 }
 0x35e   :  { %v6514_v26 = vpop.f32.mrb[53].mxu1  ;;  %v6578_v17 = vpop.f32.mrb[53].mxu0 }
 0x35f   :  { %v6515_v16 = vadd.f32 %v6514_v26, %v6513_v13  ;;  %v6579_v8 = vadd.f32 %v6578_v17, %v6577_v27  ;;  %v6516_v31 = vpop.f32.mrb[54].mxu1  ;;  %v6580_v20 = vpop.f32.mrb[54].mxu0 }
 0x360   :  { %v6517_v43 = vpop.f32.mrb[55].mxu1  ;;  %v6581_v24 = vpop.f32.mrb[55].mxu0 }
 0x361   :  { %v10855_v14 = vadd.f32 %v6515_v16, %v10726_v48  ;;  %v10858_v39 = vadd.f32 %v6579_v8, %v10729_v47  ;;  %v6518_v7 = vadd.f32 %v6517_v43, %v6516_v31  ;;  %v6582_v58 = vadd.f32 %v6581_v24, %v6580_v20 }
 0x363   :  { %v10861_v44 = vadd.f32 %v6518_v7, %v10732_v25  ;;  %v10864_v11 = vadd.f32 %v6582_v58, %v10735_v22 }
 0x365   :  { %v6519_v30 = vpop.f32.mrb[56].mxu1  ;;  %v6583_v56 = vpop.f32.mrb[56].mxu0 }
 0x366   :  { %v6520_v21 = vpop.f32.mrb[57].mxu1  ;;  %v6584_v61 = vpop.f32.mrb[57].mxu0 }
 0x367   :  { %v6521_v1 = vadd.f32 %v6520_v21, %v6519_v30  ;;  %v6585_v41 = vadd.f32 %v6584_v61, %v6583_v56  ;;  %v6522_v0 = vpop.f32.mrb[58].mxu1  ;;  %v6586_v48 = vpop.f32.mrb[58].mxu0 }
 0x368   :  { %v6523_v15 = vpop.f32.mrb[59].mxu1  ;;  %v6587_v34 = vpop.f32.mrb[59].mxu0 }
 0x369   :  { %v10867_v47 = vadd.f32 %v6521_v1, %v10750_v35  ;;  %v10870_v12 = vadd.f32 %v6585_v41, %v10753_v2  ;;  %v6524_v25 = vadd.f32 %v6523_v15, %v6522_v0  ;;  %v6588_v4 = vadd.f32 %v6587_v34, %v6586_v48  ;;  %v7049_v2 = vld [vmem:[%s11435_s2 + $0x8] sm:$0xff]  }
 0x36a   :  { %6801 = vmatprep.subr.bf16.mxu0 %v7049_v2 }
 0x36b   :  { %v10873_v22 = vadd.f32 %v6524_v25, %v10756_v57  ;;  %v10876_v42 = vadd.f32 %v6588_v4, %v10759_v6  ;;  %6802 = vmatpush3.bf16.msra.mxu0 %v7049_v2 }
 0x36d   :  { %v6525_v33 = vpop.f32.mrb[60].mxu1  ;;  %v6589_v51 = vpop.f32.mrb[60].mxu0 }
 0x36e   :  { %v6526_v63 = vpop.f32.mrb[61].mxu1  ;;  %v6590_v3 = vpop.f32.mrb[61].mxu0 }
 0x36f   :  { %v6527_v13 = vadd.f32 %v6526_v63, %v6525_v33  ;;  %v6591_v27 = vadd.f32 %v6590_v3, %v6589_v51  ;;  %v6528_v26 = vpop.f32.mrb[62].mxu1  ;;  %v6592_v35 = vpop.f32.mrb[62].mxu0 }
 0x370   :  { %v6529_v17 = vpop.f32.mrb[63].mxu1  ;;  %v6593_v16 = vpop.f32.mrb[63].mxu0 }
 0x371   :  { %v10882_v57 = vadd.f32 %v6527_v13, %v10774_v60  ;;  %v10885_v6 = vadd.f32 %v6591_v27, %v10777_v45  ;;  %v6530_v8 = vadd.f32 %v6529_v17, %v6528_v26  ;;  %v6594_v31 = vadd.f32 %v6593_v16, %v6592_v35 }
 0x373   :  { %v10888_v20 = vadd.f32 %v6530_v8, %v10780_v18  ;;  %v10891_v43 = vadd.f32 %v6594_v31, %v10783_v52 }
 0x375   :  { %v6531_v24 = vpop.f32.mrb[64].mxu1  ;;  %v6595_v7 = vpop.f32.mrb[64].mxu0 }
 0x376   :  { %v6532_v58 = vpop.f32.mrb[65].mxu1  ;;  %v6596_v30 = vpop.f32.mrb[65].mxu0 }
 0x377   :  { %v6533_v56 = vadd.f32 %v6532_v58, %v6531_v24  ;;  %v6597_v60 = vadd.f32 %v6596_v30, %v6595_v7  ;;  %v6534_v21 = vpop.f32.mrb[66].mxu1  ;;  %v6598_v61 = vpop.f32.mrb[66].mxu0 }
 0x378   :  { %v6535_v45 = vpop.f32.mrb[67].mxu1  ;;  %v6599_v1 = vpop.f32.mrb[67].mxu0 }
 0x379   :  { %v10894_v41 = vadd.f32 %v6533_v56, %v10792_v28  ;;  %v10897_v18 = vadd.f32 %v6597_v60, %v10795_v46  ;;  %v6536_v0 = vadd.f32 %v6535_v45, %v6534_v21  ;;  %v6600_v52 = vadd.f32 %v6599_v1, %v6598_v61 }
 0x37b   :  { %v10900_v48 = vadd.f32 %v6536_v0, %v10798_v5  ;;  %v10903_v15 = vadd.f32 %v6600_v52, %v10801_v59 }
 0x37d   :  { %v6537_v34 = vpop.f32.mrb[68].mxu1  ;;  %v6601_v25 = vpop.f32.mrb[68].mxu0 }
 0x37e   :  { %v6538_v4 = vpop.f32.mrb[69].mxu1  ;;  %v6602_v33 = vpop.f32.mrb[69].mxu0 }
 0x37f   :  { %v6539_v51 = vadd.f32 %v6538_v4, %v6537_v34  ;;  %v6603_v63 = vadd.f32 %v6602_v33, %v6601_v25  ;;  %v6540_v3 = vpop.f32.mrb[70].mxu1  ;;  %v6604_v28 = vpop.f32.mrb[70].mxu0 }
 0x380   :  { %v6541_v13 = vpop.f32.mrb[71].mxu1  ;;  %v6605_v27 = vpop.f32.mrb[71].mxu0 }
 0x381   :  { %v10906_v46 = vadd.f32 %v6539_v51, %v10804_v50  ;;  %v10909_v26 = vadd.f32 %v6603_v63, %v10807_v23  ;;  %v6542_v5 = vadd.f32 %v6541_v13, %v6540_v3  ;;  %v6606_v35 = vadd.f32 %v6605_v27, %v6604_v28 }
 0x383   :  { %v10912_v59 = vadd.f32 %v6542_v5, %v10810_v55  ;;  %v10915_v17 = vadd.f32 %v6606_v35, %v10813_v62 }
 0x385   :  { %v6543_v16 = vpop.f32.mrb[72].mxu1  ;;  %v6607_v2 = vpop.f32.mrb[72].mxu0 }
 0x386   :  { %v6544_v8 = vpop.f32.mrb[73].mxu1  ;;  %v6608_v31 = vpop.f32.mrb[73].mxu0 }
 0x387   :  { %v6545_v24 = vadd.f32 %v6544_v8, %v6543_v16  ;;  %v6609_v7 = vadd.f32 %v6608_v31, %v6607_v2  ;;  %v6546_v58 = vpop.f32.mrb[74].mxu1  ;;  %v6610_v50 = vpop.f32.mrb[74].mxu0 }
 0x388   :  { %v6547_v30 = vpop.f32.mrb[75].mxu1  ;;  %v6611_v56 = vpop.f32.mrb[75].mxu0 }
 0x389   :  { %v10918_v23 = vadd.f32 %v6545_v24, %v10816_v38  ;;  %v10921_v60 = vadd.f32 %v6609_v7, %v10819_v49  ;;  %v6548_v55 = vadd.f32 %v6547_v30, %v6546_v58  ;;  %v6612_v21 = vadd.f32 %v6611_v56, %v6610_v50  ;;  %v7050_v49 = vld [vmem:[%s11435_s2 + $0x10] sm:$0xff]  }
 0x38a   :  { %6803 = vmatprep.subr.bf16.mxu0 %v7050_v49 }
 0x38b   :  { %v10924_v62 = vadd.f32 %v6548_v55, %v10822_v29  ;;  %v10927_v61 = vadd.f32 %v6612_v21, %v10825_v37  ;;  %6804 = vmatpush3.bf16.msra.mxu0 %v7050_v49 }
 0x38d   :  { %v6549_v45 = vpop.f32.mrb[76].mxu1  ;;  %v6613_v1 = vpop.f32.mrb[76].mxu0 }
 0x38e   :  { %v6550_v0 = vpop.f32.mrb[77].mxu1  ;;  %v6614_v52 = vpop.f32.mrb[77].mxu0 }
 0x38f   :  { %v6551_v34 = vadd.f32 %v6550_v0, %v6549_v45  ;;  %v6615_v25 = vadd.f32 %v6614_v52, %v6613_v1  ;;  %v6552_v4 = vpop.f32.mrb[78].mxu1  ;;  %v6616_v38 = vpop.f32.mrb[78].mxu0 }
 0x390   :  { %v6553_v33 = vpop.f32.mrb[79].mxu1  ;;  %v6617_v51 = vpop.f32.mrb[79].mxu0 }
 0x391   :  { %v10933_v29 = vadd.f32 %v6551_v34, %v10828_v32  ;;  %v10936_v37 = vadd.f32 %v6615_v25, %v10831_v10  ;;  %v6554_v63 = vadd.f32 %v6553_v33, %v6552_v4  ;;  %v6618_v3 = vadd.f32 %v6617_v51, %v6616_v38 }
 0x393   :  { %v10939_v28 = vadd.f32 %v6554_v63, %v10837_v19  ;;  %v10942_v13 = vadd.f32 %v6618_v3, %v10840_v53 }
 0x395   :  { %v6619_v27 = vpop.f32.mrb[80].mxu0  ;;  %v6683_v5 = vpop.f32.mrb[80].mxu1 }
 0x396   :  { %v6620_v35 = vpop.f32.mrb[81].mxu0  ;;  %v6684_v16 = vpop.f32.mrb[81].mxu1 }
 0x397   :  { %v6621_v2 = vadd.f32 %v6620_v35, %v6619_v27  ;;  %v6685_v32 = vadd.f32 %v6684_v16, %v6683_v5  ;;  %v6622_v8 = vpop.f32.mrb[82].mxu0  ;;  %v6686_v31 = vpop.f32.mrb[82].mxu1 }
 0x398   :  { %v6623_v10 = vpop.f32.mrb[83].mxu0  ;;  %v6687_v24 = vpop.f32.mrb[83].mxu1 }
 0x399   :  { %v10945_v7 = vadd.f32 %v6621_v2, %v10843_v9  ;;  %v10948_v19 = vadd.f32 %v6685_v32, %v10846_v54  ;;  %v6624_v58 = vadd.f32 %v6623_v10, %v6622_v8  ;;  %v6688_v53 = vadd.f32 %v6687_v24, %v6686_v31 }
 0x39b   :  { %v10951_v50 = vadd.f32 %v6624_v58, %v10849_v36  ;;  %v10954_v30 = vadd.f32 %v6688_v53, %v10852_v40 }
 0x39d   :  { %v6625_v56 = vpop.f32.mrb[84].mxu0  ;;  %v6689_v55 = vpop.f32.mrb[84].mxu1 }
 0x39e   :  { %v6626_v21 = vpop.f32.mrb[85].mxu0  ;;  %v6690_v45 = vpop.f32.mrb[85].mxu1 }
 0x39f   :  { %v6627_v1 = vadd.f32 %v6626_v21, %v6625_v56  ;;  %v6691_v0 = vadd.f32 %v6690_v45, %v6689_v55  ;;  %v6628_v52 = vpop.f32.mrb[86].mxu0  ;;  %v6692_v9 = vpop.f32.mrb[86].mxu1 }
 0x3a0   :  { %v6629_v34 = vpop.f32.mrb[87].mxu0  ;;  %v6693_v25 = vpop.f32.mrb[87].mxu1 }
 0x3a1   :  { %v10957_v54 = vadd.f32 %v6627_v1, %v10855_v14  ;;  %v10960_v4 = vadd.f32 %v6691_v0, %v10858_v39  ;;  %v6630_v36 = vadd.f32 %v6629_v34, %v6628_v52  ;;  %v6694_v38 = vadd.f32 %v6693_v25, %v6692_v9 }
 0x3a2   :  { %v4710_v34 = vmul.f32 %v10954_v30, %v10954_v30 }
 0x3a3   :  { %v10963_v40 = vadd.f32 %v6630_v36, %v10861_v44  ;;  %v10966_v33 = vadd.f32 %v6694_v38, %v10864_v11 }
 0x3a5   :  { %v6631_v51 = vpop.f32.mrb[88].mxu0  ;;  %v6695_v49 = vpop.f32.mrb[88].mxu1 }
 0x3a6   :  { %v6632_v63 = vpop.f32.mrb[89].mxu0  ;;  %v6696_v3 = vpop.f32.mrb[89].mxu1 }
 0x3a7   :  { %v6633_v27 = vadd.f32 %v6632_v63, %v6631_v51  ;;  %v6697_v5 = vadd.f32 %v6696_v3, %v6695_v49  ;;  %v6634_v35 = vpop.f32.mrb[90].mxu0  ;;  %v6698_v14 = vpop.f32.mrb[90].mxu1  ;;  %v4641_v51 = vsel %vm4639_vm0, %v10954_v30, 0.0 }
 0x3a8   :  { %v6635_v16 = vpop.f32.mrb[91].mxu0  ;;  %v6699_v2 = vpop.f32.mrb[91].mxu1 }
 0x3a9   :  { %v10969_v39 = vadd.f32 %v6633_v27, %v10867_v47  ;;  %v10972_v32 = vadd.f32 %v6697_v5, %v10870_v12  ;;  %v6636_v44 = vadd.f32 %v6635_v16, %v6634_v35  ;;  %v6700_v8 = vadd.f32 %v6699_v2, %v6698_v14 }
 0x3aa   :  { %v4640_v27 = vsel %vm4639_vm0, %v10948_v19, 0.0  ;;  %v4742_v5 = vsel %vm4639_vm0, %v4710_v34, 0.0  ;;  %v4643_v35 = vsel %vm4639_vm0, %v10960_v4, 0.0 }
 0x3ab   :  { %v10975_v11 = vadd.f32 %v6636_v44, %v10873_v22  ;;  %v10978_v31 = vadd.f32 %v6700_v8, %v10876_v42 }
 0x3ad   :  { %v6637_v10 = vpop.f32.mrb[92].mxu0  ;;  %v6701_v24 = vpop.f32.mrb[92].mxu1 }
 0x3ae   :  { %v6638_v58 = vpop.f32.mrb[93].mxu0  ;;  %v6702_v53 = vpop.f32.mrb[93].mxu1 }
 0x3af   :  { %v6639_v56 = vadd.f32 %v6638_v58, %v6637_v10  ;;  %v6703_v55 = vadd.f32 %v6702_v53, %v6701_v24  ;;  %v6640_v21 = vpop.f32.mrb[94].mxu0  ;;  %v6704_v47 = vpop.f32.mrb[94].mxu1  ;;  %v4642_v58 = vadd.f32 %v4641_v51, %v4640_v27 }
 0x3b0   :  { %v6641_v45 = vpop.f32.mrb[95].mxu0  ;;  %v6705_v1 = vpop.f32.mrb[95].mxu1 }
 0x3b1   :  { %v10981_v12 = vadd.f32 %v6639_v56, %v10882_v57  ;;  %v10984_v0 = vadd.f32 %v6703_v55, %v10885_v6  ;;  %v6642_v22 = vadd.f32 %v6641_v45, %v6640_v21  ;;  %v6706_v52 = vadd.f32 %v6705_v1, %v6704_v47 }
 0x3b2   :  { %v4709_v57 = vmul.f32 %v10948_v19, %v10948_v19  ;;  %v4712_v56 = vmul.f32 %v10966_v33, %v10966_v33  ;;  %v4644_v47 = vadd.f32 %v4643_v35, %v4642_v58  ;;  %v4645_v45 = vsel %vm4639_vm0, %v10966_v33, 0.0 }
 0x3b3   :  { %v10987_v42 = vadd.f32 %v6642_v22, %v10888_v20  ;;  %v10990_v9 = vadd.f32 %v6706_v52, %v10891_v43  ;;  %v4711_v20 = vmul.f32 %v10960_v4, %v10960_v4 }
 0x3b4   :  { %v4741_v24 = vsel %vm4639_vm0, %v4709_v57, 0.0  ;;  %v4646_v51 = vadd.f32 %v4645_v45, %v4644_v47 }
 0x3b5   :  { %v6643_v25 = vpop.f32.mrb[96].mxu0  ;;  %v6707_v36 = vpop.f32.mrb[96].mxu1  ;;  %v4744_v53 = vsel %vm4639_vm0, %v4711_v20, 0.0 }
 0x3b6   :  { %v6644_v38 = vpop.f32.mrb[97].mxu0  ;;  %v6708_v6 = vpop.f32.mrb[97].mxu1 }
 0x3b7   :  { %v6645_v49 = vadd.f32 %v6644_v38, %v6643_v25  ;;  %v6709_v43 = vadd.f32 %v6708_v6, %v6707_v36  ;;  %v6646_v63 = vpop.f32.mrb[98].mxu0  ;;  %v6710_v3 = vpop.f32.mrb[98].mxu1  ;;  %v4746_v36 = vsel %vm4639_vm0, %v4712_v56, 0.0 }
 0x3b8   :  { %v6647_v14 = vpop.f32.mrb[99].mxu0  ;;  %v6711_v16 = vpop.f32.mrb[99].mxu1 }
 0x3b9   :  { %v11006_v2 = vadd.f32 %v6645_v49, %v10894_v41  ;;  %v11009_v44 = vadd.f32 %v6709_v43, %v10897_v18  ;;  %v6648_v8 = vadd.f32 %v6647_v14, %v6646_v63  ;;  %v6712_v10 = vadd.f32 %v6711_v16, %v6710_v3 }
 0x3ba   :  { %v4743_v41 = vadd.f32 %v4742_v5, %v4741_v24  ;;  %v4713_v18 = vmul.f32 %v10972_v32, %v10972_v32  ;;  %v4714_v49 = vmul.f32 %v10978_v31, %v10978_v31 }
 0x3bb   :  { %v11016_v55 = vadd.f32 %v6648_v8, %v10900_v48  ;;  %v11019_v21 = vadd.f32 %v6712_v10, %v10903_v15  ;;  %v4647_v48 = vsel %vm4639_vm0, %v10972_v32, 0.0  ;;  %v4649_v8 = vsel %vm4639_vm0, %v10978_v31, 0.0 }
 0x3bc   :  { %v4745_v52 = vadd.f32 %v4744_v53, %v4743_v41  ;;  %v4748_v20 = vsel %vm4639_vm0, %v4713_v18, 0.0  ;;  %v4648_v16 = vadd.f32 %v4647_v48, %v4646_v51  ;;  %v4715_v10 = vmul.f32 %v10984_v0, %v10984_v0 }
 0x3bd   :  { %v6649_v1 = vpop.f32.mrb[100].mxu0  ;;  %v6713_v22 = vpop.f32.mrb[100].mxu1  ;;  %v4651_v53 = vsel %vm4639_vm0, %v10984_v0, 0.0  ;;  %v4653_v48 = vsel %vm4639_vm0, %v10990_v9, 0.0 }
 0x3be   :  { %v6650_v34 = vpop.f32.mrb[101].mxu0  ;;  %v6714_v25 = vpop.f32.mrb[101].mxu1  ;;  %v4747_v14 = vadd.f32 %v4746_v36, %v4745_v52  ;;  %v4650_v47 = vadd.f32 %v4649_v8, %v4648_v16 }
 0x3bf   :  { %v6651_v15 = vadd.f32 %v6650_v34, %v6649_v1  ;;  %v6715_v57 = vadd.f32 %v6714_v25, %v6713_v22  ;;  %v6652_v38 = vpop.f32.mrb[102].mxu0  ;;  %v6716_v6 = vpop.f32.mrb[102].mxu1  ;;  %v4752_v1 = vsel %vm4639_vm0, %v4715_v10, 0.0 }
 0x3c0   :  { %v6653_v43 = vpop.f32.mrb[103].mxu0  ;;  %v6717_v63 = vpop.f32.mrb[103].mxu1  ;;  %v4652_v36 = vadd.f32 %v4651_v53, %v4650_v47  ;;  %v4657_v53 = vsel %vm4639_vm0, %v11019_v21, 0.0 }
 0x3c1   :  { %v11032_v3 = vadd.f32 %v6651_v15, %v10906_v46  ;;  %v11035_v27 = vadd.f32 %v6715_v57, %v10909_v26  ;;  %v6654_v5 = vadd.f32 %v6653_v43, %v6652_v38  ;;  %v6718_v35 = vadd.f32 %v6717_v63, %v6716_v6 }
 0x3c2   :  { %v4749_v46 = vadd.f32 %v4748_v20, %v4747_v14  ;;  %v4750_v26 = vsel %vm4639_vm0, %v4714_v49, 0.0  ;;  %v4717_v15 = vmul.f32 %v11009_v44, %v11009_v44  ;;  %v4654_v16 = vadd.f32 %v4653_v48, %v4652_v36 }
 0x3c3   :  { %v11042_v24 = vadd.f32 %v6654_v5, %v10912_v59  ;;  %v11045_v58 = vadd.f32 %v6718_v35, %v10915_v17  ;;  %v4716_v59 = vmul.f32 %v10990_v9, %v10990_v9  ;;  %v4655_v5 = vsel %vm4639_vm0, %v11009_v44, 0.0 }
 0x3c4   :  { %v4751_v25 = vadd.f32 %v4750_v26, %v4749_v46  ;;  %v4656_v26 = vadd.f32 %v4655_v5, %v4654_v16 }
 0x3c5   :  { %v6655_v56 = vpop.f32.mrb[104].mxu0  ;;  %v6719_v41 = vpop.f32.mrb[104].mxu1  ;;  %v4754_v63 = vsel %vm4639_vm0, %v4716_v59, 0.0 }
 0x3c6   :  { %v6656_v18 = vpop.f32.mrb[105].mxu0  ;;  %v6720_v45 = vpop.f32.mrb[105].mxu1  ;;  %v4753_v43 = vadd.f32 %v4752_v1, %v4751_v25 }
 0x3c7   :  { %v6657_v22 = vadd.f32 %v6656_v18, %v6655_v56  ;;  %v6721_v52 = vadd.f32 %v6720_v45, %v6719_v41  ;;  %v6658_v17 = vpop.f32.mrb[106].mxu0  ;;  %v6722_v34 = vpop.f32.mrb[106].mxu1 }
 0x3c8   :  { %v6659_v57 = vpop.f32.mrb[107].mxu0  ;;  %v6723_v38 = vpop.f32.mrb[107].mxu1  ;;  %v4755_v46 = vadd.f32 %v4754_v63, %v4753_v43 }
 0x3c9   :  { %v11058_v6 = vadd.f32 %v6657_v22, %v10918_v23  ;;  %v11061_v51 = vadd.f32 %v6721_v52, %v10921_v60  ;;  %v6660_v20 = vadd.f32 %v6659_v57, %v6658_v17  ;;  %v6724_v49 = vadd.f32 %v6723_v38, %v6722_v34 }
 0x3ca   :  { %v4718_v23 = vmul.f32 %v11019_v21, %v11019_v21  ;;  %v4756_v60 = vsel %vm4639_vm0, %v4717_v15, 0.0  ;;  %v4659_v52 = vsel %vm4639_vm0, %v11035_v27, 0.0  ;;  %v4658_v38 = vadd.f32 %v4657_v53, %v4656_v26 }
 0x3cb   :  { %v11067_v35 = vadd.f32 %v6660_v20, %v10924_v62  ;;  %v11070_v14 = vadd.f32 %v6724_v49, %v10927_v61  ;;  %v7051_v62 = vld [vmem:[%s11435_s2 + $0x18] ss:$0 sps:$4 sm:$0x11]   ;;  %v4719_v61 = vmul.f32 %v11035_v27, %v11035_v27  ;;  %v4757_v59 = vadd.f32 %v4756_v60, %v4755_v46 }
 0x3cc   :  { %v4758_v22 = vsel %vm4639_vm0, %v4718_v23, 0.0  ;;  %6855 = vmatprep.subr.msk.bf16.mxu0 %vm5022_vm1, %v7051_v62  ;;  %v5024_v25 = vsel %vm5022_vm1, %v7051_v62, 0  ;;  %v4720_v49 = vmul.f32 %v11045_v58, %v11045_v58  ;;  %v4660_v5 = vadd.f32 %v4659_v52, %v4658_v38 }
 0x3cd   :  { %v6661_v8 = vpop.f32.mrb[108].mxu0  ;;  %v6725_v10 = vpop.f32.mrb[108].mxu1  ;;  %6806 = vmatpush3.bf16.msra.mxu0 %v5024_v25  ;;  %v4760_v20 = vsel %vm4639_vm0, %v4719_v61, 0.0  ;;  %v4721_v16 = vmul.f32 %v11061_v51, %v11061_v51 }
 0x3ce   :  { %v6662_v56 = vpop.f32.mrb[109].mxu0  ;;  %v6726_v41 = vpop.f32.mrb[109].mxu1 }
 0x3cf   :  { %v6663_v47 = vadd.f32 %v6662_v56, %v6661_v8  ;;  %v6727_v18 = vadd.f32 %v6726_v41, %v6725_v10  ;;  %v6664_v45 = vpop.f32.mrb[110].mxu0  ;;  %v6728_v1 = vpop.f32.mrb[110].mxu1  ;;  %v4762_v10 = vsel %vm4639_vm0, %v4720_v49, 0.0  ;;  %v4764_v56 = vsel %vm4639_vm0, %v4721_v16, 0.0 }
 0x3d0   :  { %v6665_v17 = vpop.f32.mrb[111].mxu0  ;;  %v6729_v34 = vpop.f32.mrb[111].mxu1  ;;  %v4722_v41 = vmul.f32 %v11070_v14, %v11070_v14 }
 0x3d1   :  { %v11086_v36 = vadd.f32 %v6663_v47, %v10933_v29  ;;  %v11089_v48 = vadd.f32 %v6727_v18, %v10936_v37  ;;  %v6666_v15 = vadd.f32 %v6665_v17, %v6664_v45  ;;  %v6730_v57 = vadd.f32 %v6729_v34, %v6728_v1 }
 0x3d2   :  { %v4759_v29 = vadd.f32 %v4758_v22, %v4757_v59  ;;  %v4661_v37 = vsel %vm4639_vm0, %v11045_v58, 0.0  ;;  %v4665_v45 = vsel %vm4639_vm0, %v11070_v14, 0.0  ;;  %v4766_v52 = vsel %vm4639_vm0, %v4722_v41, 0.0 }
 0x3d3   :  { %v11095_v43 = vadd.f32 %v6666_v15, %v10939_v28  ;;  %v11098_v63 = vadd.f32 %v6730_v57, %v10942_v13  ;;  %v4663_v28 = vsel %vm4639_vm0, %v11061_v51, 0.0  ;;  %v4662_v13 = vadd.f32 %v4661_v37, %v4660_v5 }
 0x3d4   :  { %v4761_v60 = vadd.f32 %v4760_v20, %v4759_v29  ;;  %v4723_v1 = vmul.f32 %v11089_v48, %v11089_v48  ;;  %v4667_v17 = vsel %vm4639_vm0, %v11089_v48, 0.0 }
 0x3d5   :  { %v6731_v23 = vpop.f32.mrb[112].mxu1  ;;  %v4664_v18 = vadd.f32 %v4663_v28, %v4662_v13  ;;  %v4724_v57 = vmul.f32 %v11098_v63, %v11098_v63  ;;  %v4669_v5 = vsel %vm4639_vm0, %v11098_v63, 0.0 }
 0x3d6   :  { %v6732_v8 = vpop.f32.mrb[113].mxu1  ;;  %v4763_v47 = vadd.f32 %v4762_v10, %v4761_v60  ;;  %v4768_v15 = vsel %vm4639_vm0, %v4723_v1, 0.0 }
 0x3d7   :  { %v6733_v46 = vadd.f32 %v6732_v8, %v6731_v23  ;;  %v6734_v26 = vpop.f32.mrb[114].mxu1  ;;  %v4666_v34 = vadd.f32 %v4665_v45, %v4664_v18  ;;  %v4770_v8 = vsel %vm4639_vm0, %v4724_v57, 0.0 }
 0x3d8   :  { %v6735_v53 = vpop.f32.mrb[115].mxu1  ;;  %v4765_v22 = vadd.f32 %v4764_v56, %v4763_v47 }
 0x3d9   :  { %v11111_v62 = vadd.f32 %v6733_v46, %v10945_v7  ;;  %v6736_v61 = vadd.f32 %v6735_v53, %v6734_v26  ;;  %v4668_v29 = vadd.f32 %v4667_v17, %v4666_v34 }
 0x3da   :  { %v4767_v49 = vadd.f32 %v4766_v52, %v4765_v22 }
 0x3db   :  { %v11118_v59 = vadd.f32 %v6736_v61, %v10951_v50  ;;  %v4725_v37 = vmul.f32 %v11111_v62, %v11111_v62  ;;  %v4671_v10 = vsel %vm4639_vm0, %v11111_v62, 0.0  ;;  %v4670_v46 = vadd.f32 %v4669_v5, %v4668_v29 }
 0x3dc   :  { %v4769_v60 = vadd.f32 %v4768_v15, %v4767_v49 }
 0x3dd   :  { %v6737_v7 = vpop.f32.mrb[116].mxu1  ;;  %v4772_v26 = vsel %vm4639_vm0, %v4725_v37, 0.0  ;;  %v4726_v13 = vmul.f32 %v11118_v59, %v11118_v59  ;;  %v4673_v61 = vsel %vm4639_vm0, %v11118_v59, 0.0 }
 0x3de   :  { %v6738_v25 = vpop.f32.mrb[117].mxu1  ;;  %v4771_v56 = vadd.f32 %v4770_v8, %v4769_v60 }
 0x3df   :  { %v6739_v38 = vadd.f32 %v6738_v25, %v6737_v7  ;;  %v6740_v20 = vpop.f32.mrb[118].mxu1  ;;  %v4774_v22 = vsel %vm4639_vm0, %v4726_v13, 0.0 }
 0x3e0   :  { %v6741_v50 = vpop.f32.mrb[119].mxu1 }
 0x3e1   :  { %v11131_v16 = vadd.f32 %v6739_v38, %v10957_v54  ;;  %v6742_v23 = vadd.f32 %v6741_v50, %v6740_v20  ;;  %v4672_v54 = vadd.f32 %v4671_v10, %v4670_v46 }
 0x3e3   :  { %v11137_v28 = vadd.f32 %v6742_v23, %v10963_v40  ;;  %v4727_v47 = vmul.f32 %v11131_v16, %v11131_v16  ;;  %v4773_v40 = vadd.f32 %v4772_v26, %v4771_v56  ;;  %v4675_v52 = vsel %vm4639_vm0, %v11131_v16, 0.0 }
 0x3e4   :  { %v4674_v34 = vadd.f32 %v4673_v61, %v4672_v54 }
 0x3e5   :  { %v6743_v53 = vpop.f32.mrb[120].mxu1  ;;  %v4776_v25 = vsel %vm4639_vm0, %v4727_v47, 0.0  ;;  %v4728_v15 = vmul.f32 %v11137_v28, %v11137_v28  ;;  %v4775_v38 = vadd.f32 %v4774_v22, %v4773_v40  ;;  %v4677_v49 = vsel %vm4639_vm0, %v11137_v28, 0.0 }
 0x3e6   :  { %v6744_v41 = vpop.f32.mrb[121].mxu1  ;;  %v4676_v20 = vadd.f32 %v4675_v52, %v4674_v34 }
 0x3e7   :  { %v6745_v18 = vadd.f32 %v6744_v41, %v6743_v53  ;;  %v6746_v45 = vpop.f32.mrb[122].mxu1  ;;  %v4777_v50 = vadd.f32 %v4776_v25, %v4775_v38  ;;  %v4778_v37 = vsel %vm4639_vm0, %v4728_v15, 0.0 }
 0x3e8   :  { %v6747_v1 = vpop.f32.mrb[123].mxu1 }
 0x3e9   :  { %v11150_v17 = vadd.f32 %v6745_v18, %v10969_v39  ;;  %v6748_v7 = vadd.f32 %v6747_v1, %v6746_v45  ;;  %v4779_v56 = vadd.f32 %v4778_v37, %v4777_v50 }
 0x3eb   :  { %v11156_v57 = vadd.f32 %v6748_v7, %v10975_v11  ;;  %v4729_v29 = vmul.f32 %v11150_v17, %v11150_v17  ;;  %v4679_v23 = vsel %vm4639_vm0, %v11150_v17, 0.0  ;;  %v4678_v11 = vadd.f32 %v4677_v49, %v4676_v20 }
 0x3ed   :  { %v6749_v39 = vpop.f32.mrb[124].mxu1  ;;  %v4780_v46 = vsel %vm4639_vm0, %v4729_v29, 0.0  ;;  %v4730_v26 = vmul.f32 %v11156_v57, %v11156_v57  ;;  %v4680_v54 = vadd.f32 %v4679_v23, %v4678_v11  ;;  %v4681_v41 = vsel %vm4639_vm0, %v11156_v57, 0.0 }
 0x3ee   :  { %v6750_v5 = vpop.f32.mrb[125].mxu1  ;;  %v4781_v18 = vadd.f32 %v4780_v46, %v4779_v56 }
 0x3ef   :  { %v6751_v60 = vadd.f32 %v6750_v5, %v6749_v39  ;;  %v6752_v8 = vpop.f32.mrb[126].mxu1  ;;  %v4782_v45 = vsel %vm4639_vm0, %v4730_v26, 0.0  ;;  %v4682_v1 = vadd.f32 %v4681_v41, %v4680_v54 }
 0x3f0   :  { %v6753_v10 = vpop.f32.mrb[127].mxu1  ;;  %v4783_v15 = vadd.f32 %v4782_v45, %v4781_v18 }
 0x3f1   :  { %v11169_v13 = vadd.f32 %v6751_v60, %v10981_v12  ;;  %v6754_v53 = vadd.f32 %v6753_v10, %v6752_v8 }
 0x3f3   :  { %v4731_v61 = vmul.f32 %v11169_v13, %v11169_v13  ;;  %v11176_v47 = vadd.f32 %v6754_v53, %v10987_v42  ;;  %v4683_v40 = vsel %vm4639_vm0, %v11169_v13, 0.0 }
 0x3f4   :  { %v4684_v38 = vadd.f32 %v4683_v40, %v4682_v1 }
 0x3f5   :  { %v6755_v12 = vpop.f32.mrb[128].mxu1  ;;  %v4784_v52 = vsel %vm4639_vm0, %v4731_v61, 0.0  ;;  %v4732_v7 = vmul.f32 %v11176_v47, %v11176_v47  ;;  %v4685_v20 = vsel %vm4639_vm0, %v11176_v47, 0.0 }
 0x3f6   :  { %v6756_v22 = vpop.f32.mrb[129].mxu1  ;;  %v4785_v39 = vadd.f32 %v4784_v52, %v4783_v15  ;;  %v4686_v60 = vadd.f32 %v4685_v20, %v4684_v38 }
 0x3f7   :  { %v6757_v34 = vadd.f32 %v6756_v22, %v6755_v12  ;;  %v6758_v25 = vpop.f32.mrb[130].mxu1  ;;  %v4786_v50 = vsel %vm4639_vm0, %v4732_v7, 0.0 }
 0x3f8   :  { %v6759_v42 = vpop.f32.mrb[131].mxu1  ;;  %v4787_v10 = vadd.f32 %v4786_v50, %v4785_v39 }
 0x3f9   :  { %v11187_v49 = vadd.f32 %v6757_v34, %v11006_v2  ;;  %v6760_v29 = vadd.f32 %v6759_v42, %v6758_v25 }
 0x3fb   :  { %v4687_v5 = vsel %vm4639_vm0, %v11187_v49, 0.0  ;;  %v4733_v37 = vmul.f32 %v11187_v49, %v11187_v49  ;;  %v11195_v23 = vadd.f32 %v6760_v29, %v11016_v55 }
 0x3fc   :  { %v4688_v46 = vadd.f32 %v4687_v5, %v4686_v60 }
 0x3fd   :  { %v4788_v8 = vsel %vm4639_vm0, %v4733_v37, 0.0  ;;  %v4734_v2 = vmul.f32 %v11195_v23, %v11195_v23  ;;  %v6761_v11 = vpop.f32.mrb[132].mxu1  ;;  %v4689_v53 = vsel %vm4639_vm0, %v11195_v23, 0.0 }
 0x3fe   :  { %v6762_v26 = vpop.f32.mrb[133].mxu1  ;;  %v4789_v41 = vadd.f32 %v4788_v8, %v4787_v10  ;;  %v4690_v40 = vadd.f32 %v4689_v53, %v4688_v46 }
 0x3ff   :  { %v6763_v56 = vadd.f32 %v6762_v26, %v6761_v11  ;;  %v6764_v54 = vpop.f32.mrb[134].mxu1  ;;  %v4790_v55 = vsel %vm4639_vm0, %v4734_v2, 0.0 }
 0x400   :  { %v6765_v61 = vpop.f32.mrb[135].mxu1  ;;  %v4791_v52 = vadd.f32 %v4790_v55, %v4789_v41 }
 0x401   :  { %v11204_v18 = vadd.f32 %v6763_v56, %v11032_v3  ;;  %v6766_v45 = vadd.f32 %v6765_v61, %v6764_v54 }
 0x403   :  { %v4691_v12 = vsel %vm4639_vm0, %v11204_v18, 0.0  ;;  %v4735_v1 = vmul.f32 %v11204_v18, %v11204_v18  ;;  %v11211_v22 = vadd.f32 %v6766_v45, %v11042_v24 }
 0x404   :  { %v4692_v7 = vadd.f32 %v4691_v12, %v4690_v40 }
 0x405   :  { %v4792_v34 = vsel %vm4639_vm0, %v4735_v1, 0.0  ;;  %v4693_v25 = vsel %vm4639_vm0, %v11211_v22, 0.0  ;;  %v4736_v3 = vmul.f32 %v11211_v22, %v11211_v22  ;;  %v6767_v15 = vpop.f32.mrb[136].mxu1 }
 0x406   :  { %v4793_v38 = vadd.f32 %v4792_v34, %v4791_v52  ;;  %v4694_v42 = vadd.f32 %v4693_v25, %v4692_v7  ;;  %v6768_v20 = vpop.f32.mrb[137].mxu1 }
 0x407   :  { %v4794_v29 = vsel %vm4639_vm0, %v4736_v3, 0.0  ;;  %v6769_v39 = vadd.f32 %v6768_v20, %v6767_v15  ;;  %v6770_v50 = vpop.f32.mrb[138].mxu1 }
 0x408   :  { %v4795_v24 = vadd.f32 %v4794_v29, %v4793_v38  ;;  %v6771_v5 = vpop.f32.mrb[139].mxu1 }
 0x409   :  { %v11220_v37 = vadd.f32 %v6769_v39, %v11058_v6  ;;  %v6772_v60 = vadd.f32 %v6771_v5, %v6770_v50 }
 0x40b   :  { %v4695_v8 = vsel %vm4639_vm0, %v11220_v37, 0.0  ;;  %v4737_v2 = vmul.f32 %v11220_v37, %v11220_v37  ;;  %v11227_v11 = vadd.f32 %v6772_v60, %v11067_v35 }
 0x40c   :  { %v4696_v10 = vadd.f32 %v4695_v8, %v4694_v42 }
 0x40d   :  { %v4796_v46 = vsel %vm4639_vm0, %v4737_v2, 0.0  ;;  %v4697_v26 = vsel %vm4639_vm0, %v11227_v11, 0.0  ;;  %v4738_v6 = vmul.f32 %v11227_v11, %v11227_v11  ;;  %v6773_v53 = vpop.f32.mrb[140].mxu1 }
 0x40e   :  { %v4797_v56 = vadd.f32 %v4796_v46, %v4795_v24  ;;  %v4698_v54 = vadd.f32 %v4697_v26, %v4696_v10  ;;  %v6774_v41 = vpop.f32.mrb[141].mxu1 }
 0x40f   :  { %v4798_v61 = vsel %vm4639_vm0, %v4738_v6, 0.0  ;;  %v6775_v55 = vadd.f32 %v6774_v41, %v6773_v53  ;;  %v6776_v45 = vpop.f32.mrb[142].mxu1 }
 0x410   :  { %v4799_v40 = vadd.f32 %v4798_v61, %v4797_v56  ;;  %v6777_v35 = vpop.f32.mrb[143].mxu1 }
 0x411   :  { %v4632_v12 = vadd.f32 %v6775_v55, %v11086_v36  ;;  %v6778_v1 = vadd.f32 %v6777_v35, %v6776_v45  ;;  %v4822_v55 = vlaneseq }
 0x413   :  { %v4699_v52 = vsel %vm4639_vm0, %v4632_v12, 0.0  ;;  %v4739_v7 = vmul.f32 %v4632_v12, %v4632_v12  ;;  %v4635_v34 = vadd.f32 %v6778_v1, %v11095_v43  ;;  %v11241_v45 = vshrl.u32 %v4822_v55, 7 }
 0x414   :  { %v4700_v25 = vadd.f32 %v4699_v52, %v4698_v54 }
 0x415   :  { %v4800_v3 = vsel %vm4639_vm0, %v4739_v7, 0.0  ;;  %v4701_v15 = vsel %vm4639_vm0, %v4635_v34, 0.0  ;;  %v4740_v38 = vmul.f32 %v4635_v34, %v4635_v34  ;;  %v4824_v35 = vsub.s32 0, %v11241_v45 }
 0x416   :  { %v4801_v42 = vadd.f32 %v4800_v3, %v4799_v40  ;;  %v4702_v20 = vadd.f32 %v4701_v15, %v4700_v25  ;;  %v11246_v40 = vld [vmem:[%s11436_s3] sm:$0xff]  ;;  %v4860_v3 = vsub.s32 1, %v11241_v45 }
 0x417   :  { %v4802_v29 = vsel %vm4639_vm0, %v4740_v38, 0.0 }
 0x418   :  { %v4703_v39 = vrot.slane %v4702_v20, 4  ;;  %v4803_v50 = vadd.f32 %v4802_v29, %v4801_v42 }
 0x41a   :  { %v4704_v24 = vadd.f32 %v4703_v39, %v4702_v20  ;;  %v4804_v36 = vrot.slane %v4803_v50, 4 }
 0x41c   :  { %v4705_v5 = vrot.slane %v4704_v24, 2  ;;  %v4805_v60 = vadd.f32 %v4804_v36, %v4803_v50 }
 0x41e   :  { %v4706_v8 = vadd.f32 %v4705_v5, %v4704_v24  ;;  %v4806_v2 = vrot.slane %v4805_v60, 2 }
 0x420   :  { %v4707_v10 = vrot.slane %v4706_v8, 1  ;;  %v4807_v43 = vadd.f32 %v4806_v2, %v4805_v60 }
 0x422   :  { %v4708_v46 = vadd.f32 %v4707_v10, %v4706_v8  ;;  %v4808_v26 = vrot.slane %v4807_v43, 1 }
 0x424   :  { %v4809_v6 = vadd.f32 %v4808_v26, %v4807_v43  ;;  %v4810_v53 = vmul.f32 0.00390625, %v4708_v46 }
 0x426   :  { %v4811_v56 = vmul.f32 0.00390625, %v4809_v6  ;;  %v4812_v54 = vmul.f32 %v4810_v53, %v4810_v53 }
 0x428   :  { %v4813_v41 = vsub.f32 %v4811_v56, %v4812_v54 }
 0x42a   :  { %v4814_v61 = vadd.f32 1e-05, %v4813_v41 }
 0x42c   :  { %7052 = vrsqrt.f32 %v4814_v61 }
 0x436   :  { %v7053_v1 = vpop.eup %7052 }
 0x437   :  { %v4816_v52 = vmul.f32 %v7053_v1, %v11246_v40 }
 0x439   :  { %v4817_v7 = vmul.f32 %v4816_v52, %v4810_v53  ;;  %v4825_v25 = vrot.slane %v4816_v52, %v4824_v35 }
 0x43b   :  { %v4819_v15 = vrot.slane %v4817_v7, 7  ;;  %v4856_v38 = vmul.f32 %v4825_v25, %v4632_v12  ;;  %v4857_v42 = vmul.f32 %v4825_v25, %v4635_v34  ;;  %v4826_v20 = vmul.f32 %v4825_v25, %v10948_v19 }
 0x43c   :  { %v4827_v29 = vmul.f32 %v4825_v25, %v10954_v30  ;;  %v4828_v39 = vmul.f32 %v4825_v25, %v10960_v4  ;;  %v4829_v50 = vmul.f32 %v4825_v25, %v10966_v33  ;;  %v4830_v24 = vmul.f32 %v4825_v25, %v10972_v32 }
 0x43d   :  { %v4821_v36 = vsub.f32 %v11246_v40, %v4819_v15  ;;  %v4831_v5 = vmul.f32 %v4825_v25, %v10978_v31  ;;  %v4832_v60 = vmul.f32 %v4825_v25, %v10984_v0  ;;  %v4833_v8 = vmul.f32 %v4825_v25, %v10990_v9 }
 0x43e   :  { %v4834_v12 = vmul.f32 %v4825_v25, %v11009_v44  ;;  %v4835_v19 = vmul.f32 %v4825_v25, %v11019_v21  ;;  %v4836_v30 = vmul.f32 %v4825_v25, %v11035_v27  ;;  %v4837_v4 = vmul.f32 %v4825_v25, %v11045_v58 }
 0x43f   :  { %v4861_v34 = vrot.slane %v4821_v36, %v4860_v3  ;;  %v4838_v33 = vmul.f32 %v4825_v25, %v11061_v51  ;;  %v4839_v32 = vmul.f32 %v4825_v25, %v11070_v14  ;;  %v4840_v2 = vmul.f32 %v4825_v25, %v11089_v48 }
 0x440   :  { %v4841_v31 = vmul.f32 %v4825_v25, %v11098_v63  ;;  %v4842_v0 = vmul.f32 %v4825_v25, %v11111_v62  ;;  %v4843_v9 = vmul.f32 %v4825_v25, %v11118_v59  ;;  %v4844_v44 = vmul.f32 %v4825_v25, %v11131_v16 }
 0x441   :  { %v4892_v21 = vadd.f32 %v4861_v34, %v4856_v38  ;;  %v4893_v10 = vadd.f32 %v4861_v34, %v4857_v42  ;;  %v4845_v27 = vmul.f32 %v4825_v25, %v11137_v28  ;;  %v4846_v58 = vmul.f32 %v4825_v25, %v11150_v17 }
 0x442   :  { %v4847_v51 = vmul.f32 %v4825_v25, %v11156_v57  ;;  %v4848_v14 = vmul.f32 %v4825_v25, %v11169_v13  ;;  %v4849_v48 = vmul.f32 %v4825_v25, %v11176_v47  ;;  %v4850_v63 = vmul.f32 %v4825_v25, %v11187_v49 }
 0x443   :  { %v4924_v43 = vmax.f32 %v4892_v21, 0.0  ;;  %v4925_v62 = vmax.f32 %v4893_v10, 0.0  ;;  %v4851_v59 = vmul.f32 %v4825_v25, %v11195_v23  ;;  %v4852_v16 = vmul.f32 %v4825_v25, %v11204_v18 }
 0x444   :  { %v4853_v46 = vmul.f32 %v4825_v25, %v11211_v22  ;;  %v4854_v28 = vmul.f32 %v4825_v25, %v11220_v37  ;;  %v4855_v17 = vmul.f32 %v4825_v25, %v11227_v11  ;;  %v4862_v26 = vadd.f32 %v4861_v34, %v4826_v20 }
 0x445   :  { %v11282_v57 = vpack.c.bf16 %v4925_v62, %v4924_v43  ;;  %v4863_v13 = vadd.f32 %v4861_v34, %v4827_v29  ;;  %v4864_v6 = vadd.f32 %v4861_v34, %v4828_v39  ;;  %v4865_v47 = vadd.f32 %v4861_v34, %v4829_v50 }
 0x446   :  { %v4866_v53 = vadd.f32 %v4861_v34, %v4830_v24  ;;  %v4867_v49 = vadd.f32 %v4861_v34, %v4831_v5  ;;  %v4868_v56 = vadd.f32 %v4861_v34, %v4832_v60  ;;  %v4869_v54 = vadd.f32 %v4861_v34, %v4833_v8 }
 0x447   :  { %v4870_v41 = vadd.f32 %v4861_v34, %v4834_v12  ;;  %v4871_v23 = vadd.f32 %v4861_v34, %v4835_v19  ;;  %v4872_v61 = vadd.f32 %v4861_v34, %v4836_v30  ;;  %v4873_v18 = vadd.f32 %v4861_v34, %v4837_v4 }
 0x448   :  { %v4874_v55 = vadd.f32 %v4861_v34, %v4838_v33  ;;  %v4875_v22 = vadd.f32 %v4861_v34, %v4839_v32  ;;  %v4876_v35 = vadd.f32 %v4861_v34, %v4840_v2  ;;  %v4877_v37 = vadd.f32 %v4861_v34, %v4841_v31 }
 0x449   :  { %v4878_v1 = vadd.f32 %v4861_v34, %v4842_v0  ;;  %v4879_v11 = vadd.f32 %v4861_v34, %v4843_v9  ;;  %v4880_v52 = vadd.f32 %v4861_v34, %v4844_v44  ;;  %v4881_v7 = vadd.f32 %v4861_v34, %v4845_v27 }
 0x44a   :  { %v4882_v25 = vadd.f32 %v4861_v34, %v4846_v58  ;;  %v4883_v3 = vadd.f32 %v4861_v34, %v4847_v51  ;;  %v4884_v15 = vadd.f32 %v4861_v34, %v4848_v14  ;;  %v4885_v38 = vadd.f32 %v4861_v34, %v4849_v48 }
 0x44b   :  { %v4886_v42 = vadd.f32 %v4861_v34, %v4850_v63  ;;  %v4887_v20 = vadd.f32 %v4861_v34, %v4851_v59  ;;  %v4888_v29 = vadd.f32 %v4861_v34, %v4852_v16  ;;  %v4889_v39 = vadd.f32 %v4861_v34, %v4853_v46 }
 0x44c   :  { %v4890_v50 = vadd.f32 %v4861_v34, %v4854_v28  ;;  %v4891_v24 = vadd.f32 %v4861_v34, %v4855_v17  ;;  %v4896_v36 = vmax.f32 %v4864_v6, 0.0  ;;  %v4897_v5 = vmax.f32 %v4865_v47, 0.0 }
 0x44d   :  { %v4900_v60 = vmax.f32 %v4868_v56, 0.0  ;;  %v4901_v8 = vmax.f32 %v4869_v54, 0.0  ;;  %v4904_v12 = vmax.f32 %v4872_v61, 0.0  ;;  %v4905_v19 = vmax.f32 %v4873_v18, 0.0 }
 0x44e   :  { %v4908_v30 = vmax.f32 %v4876_v35, 0.0  ;;  %v4909_v4 = vmax.f32 %v4877_v37, 0.0  ;;  %v4912_v33 = vmax.f32 %v4880_v52, 0.0  ;;  %v4913_v32 = vmax.f32 %v4881_v7, 0.0 }
 0x44f   :  { %v4916_v2 = vmax.f32 %v4884_v15, 0.0  ;;  %v4917_v31 = vmax.f32 %v4885_v38, 0.0  ;;  %v4920_v0 = vmax.f32 %v4888_v29, 0.0  ;;  %v4921_v9 = vmax.f32 %v4889_v39, 0.0 }
 0x450   :  { %v4927_v44 = vpack.c.bf16 %v4897_v5, %v4896_v36  ;;  %v4929_v21 = vpack.c.bf16 %v4901_v8, %v4900_v60  ;;  %v4931_v10 = vpack.c.bf16 %v4905_v19, %v4904_v12  ;;  %v4933_v27 = vpack.c.bf16 %v4909_v4, %v4908_v30 }
 0x451   :  { %v4935_v58 = vpack.c.bf16 %v4913_v32, %v4912_v33  ;;  %v4937_v34 = vpack.c.bf16 %v4917_v31, %v4916_v2  ;;  %v4939_v51 = vpack.c.bf16 %v4921_v9, %v4920_v0  ;;  %v4894_v14 = vmax.f32 %v4862_v26, 0.0 }
 0x452   :  { %v4895_v48 = vmax.f32 %v4863_v13, 0.0  ;;  %v4898_v63 = vmax.f32 %v4866_v53, 0.0  ;;  %v4899_v43 = vmax.f32 %v4867_v49, 0.0  ;;  %v4902_v62 = vmax.f32 %v4870_v41, 0.0 }
 0x453   :  { %v4903_v59 = vmax.f32 %v4871_v23, 0.0  ;;  %v4906_v16 = vmax.f32 %v4874_v55, 0.0  ;;  %v4907_v46 = vmax.f32 %v4875_v22, 0.0  ;;  %v4910_v28 = vmax.f32 %v4878_v1, 0.0 }
 0x454   :  { %v4926_v17 = vpack.c.bf16 %v4895_v48, %v4894_v14  ;;  %v4928_v6 = vpack.c.bf16 %v4899_v43, %v4898_v63  ;;  %v4911_v47 = vmax.f32 %v4879_v11, 0.0  ;;  %v4914_v56 = vmax.f32 %v4882_v25, 0.0 }
 0x455   :  { %v4930_v54 = vpack.c.bf16 %v4903_v59, %v4902_v62  ;;  %v4932_v61 = vpack.c.bf16 %v4907_v46, %v4906_v16  ;;  %v4915_v18 = vmax.f32 %v4883_v3, 0.0  ;;  %v4918_v35 = vmax.f32 %v4886_v42, 0.0 }
 0x456   :  { %6807 = vmatprep.mubr.msk.bf16.mxu0 %vm4639_vm0, %v4926_v17  ;;  %v4934_v37 = vpack.c.bf16 %v4911_v47, %v4910_v28  ;;  %v4919_v26 = vmax.f32 %v4887_v20, 0.0  ;;  %v4922_v13 = vmax.f32 %v4890_v50, 0.0  ;;  %v4923_v53 = vmax.f32 %v4891_v24, 0.0 }
 0x457   :  { %6808 = vmatmul.mubr.msk.bf16.vlgmr.msra.gmra.mrb[112].mxu0 %vm4639_vm0, %v4927_v44  ;;  %v4936_v49 = vpack.c.bf16 %v4915_v18, %v4914_v56  ;;  %v4951_v55 = vsub.s32 2, %v11241_v45 }
 0x458   :  { %6811 = vmatprep.mubr.msk.bf16.mxu0 %vm4639_vm0, %v4928_v6  ;;  %v4938_v41 = vpack.c.bf16 %v4919_v26, %v4918_v35  ;;  %v4940_v23 = vpack.c.bf16 %v4923_v53, %v4922_v13 }
 0x459   :  { %v11303_v22 = vrot.slane %v11246_v40, %v4951_v55 }
 0x45f   :  { %6812 = vmatmul.mubr.msk.bf16.gmra.mrb[116].mxu0 %vm4639_vm0, %v4929_v21 }
 0x460   :  { %6815 = vmatprep.mubr.msk.bf16.mxu0 %vm4639_vm0, %v4930_v54 }
 0x467   :  { %6816 = vmatmul.mubr.msk.bf16.gmra.mrb[120].mxu0 %vm4639_vm0, %v4931_v10 }
 0x468   :  { %6819 = vmatprep.mubr.msk.bf16.mxu0 %vm4639_vm0, %v4932_v61 }
 0x46f   :  { %6820 = vmatmul.mubr.msk.bf16.gmra.mrb[124].mxu0 %vm4639_vm0, %v4933_v27 }
 0x470   :  { %6823 = vmatprep.mubr.msk.bf16.mxu0 %vm4639_vm0, %v4934_v37 }
 0x477   :  { %6824 = vmatmul.mubr.msk.bf16.gmra.mrb[128].mxu0 %vm4639_vm0, %v4935_v58 }
 0x478   :  { %6827 = vmatprep.mubr.msk.bf16.mxu0 %vm4639_vm0, %v4936_v49 }
 0x47f   :  { %6828 = vmatmul.mubr.msk.bf16.gmra.mrb[132].mxu0 %vm4639_vm0, %v4937_v34 }
 0x480   :  { %6831 = vmatprep.mubr.msk.bf16.mxu0 %vm4639_vm0, %v4938_v41 }
 0x487   :  { %6832 = vmatmul.mubr.msk.bf16.gmra.mrb[136].mxu0 %vm4639_vm0, %v4939_v51 }
 0x488   :  { %6835 = vmatprep.mubr.msk.bf16.mxu0 %vm4639_vm0, %v4940_v23 }
 0x48f   :  { %6836 = vmatmul.mubr.msk.bf16.gmra.mrb[140].mxu0 %vm4639_vm0, %v11282_v57 }
 0x52a   :  { %v6809_v1 = vpop.f32.mrb[112].mxu0 }
 0x52b   :  { %v5069_v11 = vadd.f32 %v6809_v1, %v11303_v22  ;;  %v5060_v52 = vpop.f32.mrb[113].mxu0 }
 0x52c   :  { %v5061_v7 = vadd.f32 %v5060_v52, %v11303_v22  ;;  %v6810_v25 = vpop.f32.mrb[114].mxu0 }
 0x52d   :  { %5189 = vst [vmem:[%s11437_s4 + $0x10] sm:$0xff] %v5069_v11  ;;  %v5072_v3 = vadd.f32 %v6810_v25, %v11303_v22  ;;  %v5063_v15 = vpop.f32.mrb[115].mxu0 }
 0x52e   :  { %5187 = vst [vmem:[%s11437_s4] sm:$0xff] %v5061_v7  ;;  %v5064_v45 = vadd.f32 %v5063_v15, %v11303_v22 }
 0x52f   :  { %5190 = vst [vmem:[%s11437_s4 + $0x18] sm:$0xff] %v5072_v3 }
 0x530   :  { %5188 = vst [vmem:[%s11437_s4 + $0x8] sm:$0xff] %v5064_v45 }
 0x532   :  { %v6813_v40 = vpop.f32.mrb[116].mxu0 }
 0x533   :  { %v5085_v57 = vadd.f32 %v6813_v40, %v11303_v22  ;;  %v5076_v38 = vpop.f32.mrb[117].mxu0 }
 0x534   :  { %v5077_v42 = vadd.f32 %v5076_v38, %v11303_v22  ;;  %v6814_v20 = vpop.f32.mrb[118].mxu0 }
 0x535   :  { %5193 = vst [vmem:[%s11437_s4 + $0x30] sm:$0xff] %v5085_v57  ;;  %v5088_v29 = vadd.f32 %v6814_v20, %v11303_v22  ;;  %v5079_v39 = vpop.f32.mrb[119].mxu0 }
 0x536   :  { %5191 = vst [vmem:[%s11437_s4 + $0x20] sm:$0xff] %v5077_v42  ;;  %v5080_v50 = vadd.f32 %v5079_v39, %v11303_v22 }
 0x537   :  { %5194 = vst [vmem:[%s11437_s4 + $0x38] sm:$0xff] %v5088_v29 }
 0x538   :  { %5192 = vst [vmem:[%s11437_s4 + $0x28] sm:$0xff] %v5080_v50 }
 0x53a   :  { %v6817_v24 = vpop.f32.mrb[120].mxu0 }
 0x53b   :  { %v5101_v36 = vadd.f32 %v6817_v24, %v11303_v22  ;;  %v5092_v5 = vpop.f32.mrb[121].mxu0 }
 0x53c   :  { %v5093_v60 = vadd.f32 %v5092_v5, %v11303_v22  ;;  %v6818_v8 = vpop.f32.mrb[122].mxu0 }
 0x53d   :  { %5197 = vst [vmem:[%s11437_s4 + $0x50] sm:$0xff] %v5101_v36  ;;  %v5104_v12 = vadd.f32 %v6818_v8, %v11303_v22  ;;  %v5095_v19 = vpop.f32.mrb[123].mxu0 }
 0x53e   :  { %5195 = vst [vmem:[%s11437_s4 + $0x40] sm:$0xff] %v5093_v60  ;;  %v5096_v30 = vadd.f32 %v5095_v19, %v11303_v22 }
 0x53f   :  { %5198 = vst [vmem:[%s11437_s4 + $0x58] sm:$0xff] %v5104_v12 }
 0x540   :  { %5196 = vst [vmem:[%s11437_s4 + $0x48] sm:$0xff] %v5096_v30 }
 0x542   :  { %v6821_v4 = vpop.f32.mrb[124].mxu0 }
 0x543   :  { %v5117_v33 = vadd.f32 %v6821_v4, %v11303_v22  ;;  %v5108_v32 = vpop.f32.mrb[125].mxu0 }
 0x544   :  { %v5109_v2 = vadd.f32 %v5108_v32, %v11303_v22  ;;  %v6822_v31 = vpop.f32.mrb[126].mxu0 }
 0x545   :  { %5201 = vst [vmem:[%s11437_s4 + $0x70] sm:$0xff] %v5117_v33  ;;  %v5120_v0 = vadd.f32 %v6822_v31, %v11303_v22  ;;  %v5111_v9 = vpop.f32.mrb[127].mxu0 }
 0x546   :  { %5199 = vst [vmem:[%s11437_s4 + $0x60] sm:$0xff] %v5109_v2  ;;  %v5112_v44 = vadd.f32 %v5111_v9, %v11303_v22 }
 0x547   :  { %5202 = vst [vmem:[%s11437_s4 + $0x78] sm:$0xff] %v5120_v0 }
 0x548   :  { %5200 = vst [vmem:[%s11437_s4 + $0x68] sm:$0xff] %v5112_v44 }
 0x54a   :  { %v6825_v21 = vpop.f32.mrb[128].mxu0 }
 0x54b   :  { %v5133_v10 = vadd.f32 %v6825_v21, %v11303_v22  ;;  %v5124_v27 = vpop.f32.mrb[129].mxu0 }
 0x54c   :  { %v5125_v58 = vadd.f32 %v5124_v27, %v11303_v22  ;;  %v6826_v34 = vpop.f32.mrb[130].mxu0 }
 0x54d   :  { %5205 = vst [vmem:[%s11437_s4 + $0x90] sm:$0xff] %v5133_v10  ;;  %v5136_v51 = vadd.f32 %v6826_v34, %v11303_v22  ;;  %v5127_v14 = vpop.f32.mrb[131].mxu0 }
 0x54e   :  { %5203 = vst [vmem:[%s11437_s4 + $0x80] sm:$0xff] %v5125_v58  ;;  %v5128_v48 = vadd.f32 %v5127_v14, %v11303_v22 }
 0x54f   :  { %5206 = vst [vmem:[%s11437_s4 + $0x98] sm:$0xff] %v5136_v51 }
 0x550   :  { %5204 = vst [vmem:[%s11437_s4 + $0x88] sm:$0xff] %v5128_v48 }
 0x552   :  { %v6829_v63 = vpop.f32.mrb[132].mxu0 }
 0x553   :  { %v5149_v43 = vadd.f32 %v6829_v63, %v11303_v22  ;;  %v5140_v62 = vpop.f32.mrb[133].mxu0 }
 0x554   :  { %v5141_v59 = vadd.f32 %v5140_v62, %v11303_v22  ;;  %v6830_v16 = vpop.f32.mrb[134].mxu0 }
 0x555   :  { %5209 = vst [vmem:[%s11437_s4 + $0xb0] sm:$0xff] %v5149_v43  ;;  %v5152_v46 = vadd.f32 %v6830_v16, %v11303_v22  ;;  %v5143_v28 = vpop.f32.mrb[135].mxu0 }
 0x556   :  { %5207 = vst [vmem:[%s11437_s4 + $0xa0] sm:$0xff] %v5141_v59  ;;  %v5144_v17 = vadd.f32 %v5143_v28, %v11303_v22 }
 0x557   :  { %5210 = vst [vmem:[%s11437_s4 + $0xb8] sm:$0xff] %v5152_v46 }
 0x558   :  { %5208 = vst [vmem:[%s11437_s4 + $0xa8] sm:$0xff] %v5144_v17 }
 0x55a   :  { %v6833_v6 = vpop.f32.mrb[136].mxu0 }
 0x55b   :  { %v5165_v47 = vadd.f32 %v6833_v6, %v11303_v22  ;;  %v5156_v56 = vpop.f32.mrb[137].mxu0 }
 0x55c   :  { %v5157_v54 = vadd.f32 %v5156_v56, %v11303_v22  ;;  %v6834_v61 = vpop.f32.mrb[138].mxu0 }
 0x55d   :  { %5213 = vst [vmem:[%s11437_s4 + $0xd0] sm:$0xff] %v5165_v47  ;;  %v5168_v18 = vadd.f32 %v6834_v61, %v11303_v22  ;;  %v5159_v35 = vpop.f32.mrb[139].mxu0 }
 0x55e   :  { %5211 = vst [vmem:[%s11437_s4 + $0xc0] sm:$0xff] %v5157_v54  ;;  %v5160_v37 = vadd.f32 %v5159_v35, %v11303_v22 }
 0x55f   :  { %5214 = vst [vmem:[%s11437_s4 + $0xd8] sm:$0xff] %v5168_v18 }
 0x560   :  { %5212 = vst [vmem:[%s11437_s4 + $0xc8] sm:$0xff] %v5160_v37 }
 0x562   :  { %v6837_v26 = vpop.f32.mrb[140].mxu0 }
 0x563   :  { %v5181_v13 = vadd.f32 %v6837_v26, %v11303_v22  ;;  %v5172_v53 = vpop.f32.mrb[141].mxu0 }
 0x564   :  { %v5173_v49 = vadd.f32 %v5172_v53, %v11303_v22  ;;  %v6838_v41 = vpop.f32.mrb[142].mxu0 }
 0x565   :  { %5217 = vst [vmem:[%s11437_s4 + $0xf0] sm:$0xff] %v5181_v13  ;;  %v5184_v23 = vadd.f32 %v6838_v41, %v11303_v22  ;;  %v5175_v55 = vpop.f32.mrb[143].mxu0 }
 0x566   :  { %5215 = vst [vmem:[%s11437_s4 + $0xe0] sm:$0xff] %v5173_v49  ;;  %v5176_v1 = vadd.f32 %v5175_v55, %v11303_v22 }
 0x567   :  { %5218 = vst [vmem:[%s11437_s4 + $0xf8] sm:$0xff] %v5184_v23 }
 0x568   :  { %5216 = vst [vmem:[%s11437_s4 + $0xe8] sm:$0xff] %v5176_v1 }

</bundles_post_ra>
